<compile_context>
chip_gen: v7x
topology: tpu7x:2x2x1
jax: 0.10.0
libtpu: 0.0.40
codegen_flags: <defaults>
</compile_context>

<pallas_src>
import jax
import jax.numpy as jnp
from jax.experimental import pallas as pl
from jax.experimental.pallas import tpu as pltpu

C = 768       # in/out channels (fixed by the module)
KSIZE = 16    # kernel_size == stride


# ----------------------------- Pallas kernel --------------------------------
def _matmul_bias_relu_kernel(a_ref, b_ref, bias_ref, o_ref, acc_ref):
    """One (tm, tk) x (tk, N) MXU step; f32 accumulate in VMEM scratch."""
    k = pl.program_id(1)

    @pl.when(k == 0)
    def _():
        acc_ref[...] = jnp.zeros_like(acc_ref)

    acc_ref[...] += jnp.dot(a_ref[...], b_ref[...],
                            preferred_element_type=jnp.float32)

    @pl.when(k == pl.num_programs(1) - 1)
    def _():
        o_ref[...] = jnp.maximum(acc_ref[...] + bias_ref[...],
                                 0.0).astype(o_ref.dtype)


def matmul_bias_relu(a, b, bias, *, tm, tk=1536, out_dtype=jnp.float32):
    """relu(a @ b + bias), M- and K-tiled.

    a:(M,K) bf16, b:(K,N) bf16, bias:(1,N) f32 -> (M,N) out_dtype.
    """
    M, K = a.shape
    _, N = b.shape
    assert M % tm == 0, (M, tm)
    assert K % tk == 0, (K, tk)

    cost = pl.CostEstimate(
        flops=2 * M * K * N,
        transcendentals=0,
        bytes_accessed=(a.size * 2 + (M // tm) * b.size * 2
                        + bias.size * 4 + M * N * jnp.dtype(out_dtype).itemsize),
    )

    return pl.pallas_call(
        _matmul_bias_relu_kernel,
        out_shape=jax.ShapeDtypeStruct((M, N), out_dtype),
        grid_spec=pltpu.PrefetchScalarGridSpec(
            num_scalar_prefetch=0,
            grid=(M // tm, K // tk),
            in_specs=[
                pl.BlockSpec((tm, tk), lambda i, k: (i, k)),
                pl.BlockSpec((tk, N), lambda i, k: (k, 0)),
                pl.BlockSpec((1, N), lambda i, k: (0, 0)),
            ],
            out_specs=pl.BlockSpec((tm, N), lambda i, k: (i, 0)),
            scratch_shapes=[pltpu.VMEM((tm, N), jnp.float32)],
        ),
        compiler_params=pltpu.CompilerParams(
            dimension_semantics=("parallel", "arbitrary")),
        cost_estimate=cost,
    )(a, b, bias)


# ------------------------------ JAX glue -------------------------------------
def _choose_tm(m):
    # Large M tile amortizes the per-M-block weight re-stream; cap by the
    # (16-row bf16-packed) padded M itself for tiny inputs.
    m16 = ((m + 15) // 16) * 16          # bf16 sublane packing -> multiple of 16
    return min(512, m16)


def _matmul_layer(a, w_flat, bias, *, out_dtype, tk=1536):
    """Pad rows, run the fused bf16 matmul+bias+relu, slice padding back off."""
    m = a.shape[0]
    tm = _choose_tm(m)
    m_pad = pl.cdiv(m, tm) * tm
    a = a.astype(jnp.bfloat16)
    if m_pad != m:
        a = jnp.pad(a, ((0, m_pad - m), (0, 0)))
    out = matmul_bias_relu(a,
                           w_flat.astype(jnp.bfloat16),
                           bias.reshape(1, -1).astype(jnp.float32),
                           tm=tm, tk=tk, out_dtype=out_dtype)
    # padded rows hold relu(bias); must be sliced off before any reuse
    return out[:m]


def _patchify_ncl(x):
    # x: (N, C, L) -> A: (N*P, C*KSIZE),  A[n*P+p, ci*16+k] = x[n, ci, p*16+k]
    n, c, l = x.shape
    p = l // KSIZE
    xp = x.reshape(n, c, p, KSIZE)          # (N, C, P, K)
    xp = jnp.transpose(xp, (0, 2, 1, 3))    # (N, P, C, K)
    return xp.reshape(n * p, c * KSIZE), n, p


def cnn_encoder_forward(x, params):
    w1, b1, w2, b2 = params
    n, c, l = x.shape
    assert c == C and l % (KSIZE * KSIZE) == 0

    # ---- layer 1: patch-major matmul (A columns ordered ci*16+k), bf16 out.
    a1, _, p1 = _patchify_ncl(x)
    w1_flat = w1.reshape(C, C * KSIZE).T                  # (C*16, C)
    h1 = _matmul_layer(a1, w1_flat, b1, out_dtype=jnp.bfloat16)   # (N*P1, C)

    # ---- layer 2: consumes patch-major bf16 output directly (no NCL round
    # trip, no cast pass). h1.reshape gives columns ordered k*C+ci, so W2's
    # rows are statically permuted to match: W2_flat[k*C+ci, co] = w2[co, ci, k].
    p2 = p1 // KSIZE
    a2 = h1.reshape(n * p2, KSIZE * C)
    w2_flat = jnp.transpose(w2, (2, 1, 0)).reshape(KSIZE * C, C)
    h2 = _matmul_layer(a2, w2_flat, b2, out_dtype=jnp.float32)    # (N*P2, C)

    # (N*P2, C) -> (N, P2, C) is exactly the module's transpose(1, 2); then
    # torch.squeeze drops all size-1 dims.
    out = h2.reshape(n, p2, C)
    return jnp.squeeze(out)


# --------------------------- reference (for check) ---------------------------
def ref_forward(x, params):
    w1, b1, w2, b2 = params

    def conv(x, w, b):
        y = jax.lax.conv_general_dilated(
            x, w, window_strides=(KSIZE,), padding="VALID",
            dimension_numbers=("NCH", "OIH", "NCH"))
        return jax.nn.relu(y + b[None, :, None])

    x = conv(x, w1, b1)
    x = conv(x, w2, b2)
    x = jnp.transpose(x, (0, 2, 1))
    return jnp.squeeze(x)


# ------------------------------- params --------------------------------------
def init_params(key):
    # PyTorch Conv1d default init: U(-1/sqrt(fan_in), 1/sqrt(fan_in)),
    # fan_in = C_in * kernel_size.
    k1, k2, k3, k4 = jax.random.split(key, 4)
    bound = 1.0 / jnp.sqrt(C * KSIZE)
    w1 = jax.random.uniform(k1, (C, C, KSIZE), jnp.float32, -bound, bound)
    b1 = jax.random.uniform(k2, (C,), jnp.float32, -bound, bound)
    w2 = jax.random.uniform(k3, (C, C, KSIZE), jnp.float32, -bound, bound)
    b2 = jax.random.uniform(k4, (C,), jnp.float32, -bound, bound)
    return (w1, b1, w2, b2)


if __name__ == "__main__":
    key = jax.random.PRNGKey(0)
    pkey, xkey = jax.random.split(key)
    params = init_params(pkey)

    # Small input consistent with the module: batch=2, channels=768 (fixed by
    # the Conv1d defs), length=256 (divisible by 16*16 so both convs apply).
    x = jax.random.normal(xkey, (2, C, 256), jnp.float32)

    out = jax.jit(cnn_encoder_forward)(x, params)
    out = jax.block_until_ready(out)

    ref = jax.block_until_ready(jax.jit(ref_forward)(x, params))
    assert out.shape == ref.shape, (out.shape, ref.shape)
    assert jnp.allclose(out, ref, rtol=2e-2, atol=2e-2), "mismatch vs reference"

    print("KERNEL_OK")
</pallas_src>

<mosaic_0001>
module attributes {stable_mosaic.version = 11 : i64} {
  func.func @_matmul_bias_relu_kernel(%arg0: i32, %arg1: i32, %arg2: memref<32x1536xbf16, #tpu.memory_space<vmem>>, %arg3: memref<1536x768xbf16, #tpu.memory_space<vmem>>, %arg4: memref<1x768xf32, #tpu.memory_space<vmem>>, %arg5: memref<32x768xbf16, #tpu.memory_space<vmem>>, %arg6: memref<32x768xf32, #tpu.memory_space<vmem>>) attributes {dimension_semantics = [#tpu.dimension_semantics<parallel>, #tpu.dimension_semantics<arbitrary>], iteration_bounds = array<i64: 1, 8>, scalar_prefetch = 0 : i64, scratch_operands = 1 : i64, tpu.core_type = #tpu.core_type<tc>, window_params = [{transform_indices = @transform_0, window_bounds = array<i64: 32, 1536>}, {transform_indices = @transform_1, window_bounds = array<i64: 1536, 768>}, {pipeline_mode = #tpu.pipeline_mode<synchronous>, transform_indices = @transform_2, window_bounds = array<i64: 1, 768>}, {transform_indices = @transform_3, window_bounds = array<i64: 32, 768>}]} {
    %c0_i32 = arith.constant 0 : i32
    %0 = arith.cmpi eq, %arg1, %c0_i32 : i32
    %1 = arith.extui %0 : i1 to i32
    %c0_i32_0 = arith.constant 0 : i32
    %2 = arith.cmpi ne, %1, %c0_i32_0 : i32
    scf.if %2 {
      %cst_9 = arith.constant 0.000000e+00 : f32
      %12 = vector.broadcast %cst_9 : f32 to vector<32x768xf32>
      %c0_10 = arith.constant 0 : index
      %c0_11 = arith.constant 0 : index
      %13 = vector.load %arg6[%c0_10, %c0_11] : memref<32x768xf32, #tpu.memory_space<vmem>>, vector<32x768xf32>
      tpu.vector_store %arg6[%c0_10, %c0_11], %12 {strides = array<i32>} : memref<32x768xf32, #tpu.memory_space<vmem>>, vector<32x768xf32>,
    } else {
    }
    %c0 = arith.constant 0 : index
    %c0_1 = arith.constant 0 : index
    %3 = vector.load %arg6[%c0, %c0_1] : memref<32x768xf32, #tpu.memory_space<vmem>>, vector<32x768xf32>
    %c0_2 = arith.constant 0 : index
    %c0_3 = arith.constant 0 : index
    %4 = vector.load %arg2[%c0_2, %c0_3] : memref<32x1536xbf16, #tpu.memory_space<vmem>>, vector<32x1536xbf16>
    %c0_4 = arith.constant 0 : index
    %c0_5 = arith.constant 0 : index
    %5 = vector.load %arg3[%c0_4, %c0_5] : memref<1536x768xbf16, #tpu.memory_space<vmem>>, vector<1536x768xbf16>
    %cst = arith.constant dense<0.000000e+00> : vector<32x768xf32>
    %6 = tpu.matmul %4, %5, %cst {dimension_numbers = #tpu.dot_dimension_numbers<[1], [0], [0], [1], [0, 0, 1, 1], [], []>} : vector<32x1536xbf16>, vector<1536x768xbf16>, vector<32x768xf32> -> vector<32x768xf32>
    %7 = arith.addf %3, %6 : vector<32x768xf32>
    %c0_6 = arith.constant 0 : index
    %c0_7 = arith.constant 0 : index
    %8 = vector.load %arg6[%c0_6, %c0_7] : memref<32x768xf32, #tpu.memory_space<vmem>>, vector<32x768xf32>
    tpu.vector_store %arg6[%c0_6, %c0_7], %7 {strides = array<i32>} : memref<32x768xf32, #tpu.memory_space<vmem>>, vector<32x768xf32>,
    %c7_i32 = arith.constant 7 : i32
    %9 = arith.cmpi eq, %arg1, %c7_i32 : i32
    %10 = arith.extui %9 : i1 to i32
    %c0_i32_8 = arith.constant 0 : i32
    %11 = arith.cmpi ne, %10, %c0_i32_8 : i32
    scf.if %11 {
      %c0_9 = arith.constant 0 : index
      %c0_10 = arith.constant 0 : index
      %12 = vector.load %arg6[%c0_9, %c0_10] : memref<32x768xf32, #tpu.memory_space<vmem>>, vector<32x768xf32>
      %c0_11 = arith.constant 0 : index
      %c0_12 = arith.constant 0 : index
      %13 = vector.load %arg4[%c0_11, %c0_12] : memref<1x768xf32, #tpu.memory_space<vmem>>, vector<1x768xf32>
      %14 = vector.broadcast %13 : vector<1x768xf32> to vector<32x768xf32>
      %15 = arith.addf %12, %14 : vector<32x768xf32>
      %cst_13 = arith.constant 0.000000e+00 : f32
      %16 = vector.broadcast %cst_13 : f32 to vector<32x768xf32>
      %17 = arith.maximumf %15, %16 : vector<32x768xf32>
      %18 = arith.truncf %17 : vector<32x768xf32> to vector<32x768xbf16>
      %c0_14 = arith.constant 0 : index
      %c0_15 = arith.constant 0 : index
      %19 = vector.load %arg5[%c0_14, %c0_15] : memref<32x768xbf16, #tpu.memory_space<vmem>>, vector<32x768xbf16>
      tpu.vector_store %arg5[%c0_14, %c0_15], %18 {strides = array<i32>} : memref<32x768xbf16, #tpu.memory_space<vmem>>, vector<32x768xbf16>,
    } else {
    }
    return
  }
  func.func @transform_0(%arg0: i32, %arg1: i32) -> (i32, i32) {
    %c0_i32 = arith.constant 0 : i32
    return %arg0, %arg1 : i32, i32
  }
  func.func @transform_1(%arg0: i32, %arg1: i32) -> (i32, i32) {
    %c0_i32 = arith.constant 0 : i32
    %c0_i32_0 = arith.constant 0 : i32
    return %arg1, %c0_i32 : i32, i32
  }
  func.func @transform_2(%arg0: i32, %arg1: i32) -> (i32, i32) {
    %c0_i32 = arith.constant 0 : i32
    %c0_i32_0 = arith.constant 0 : i32
    %c0_i32_1 = arith.constant 0 : i32
    return %c0_i32, %c0_i32_0 : i32, i32
  }
  func.func @transform_3(%arg0: i32, %arg1: i32) -> (i32, i32) {
    %c0_i32 = arith.constant 0 : i32
    %c0_i32_0 = arith.constant 0 : i32
    return %arg0, %c0_i32 : i32, i32
  }
}

module attributes {stable_mosaic.version = 11 : i64} {
  func.func @_matmul_bias_relu_kernel(%arg0: i32, %arg1: i32, %arg2: memref<16x1536xbf16, #tpu.memory_space<vmem>>, %arg3: memref<1536x768xbf16, #tpu.memory_space<vmem>>, %arg4: memref<1x768xf32, #tpu.memory_space<vmem>>, %arg5: memref<16x768xf32, #tpu.memory_space<vmem>>, %arg6: memref<16x768xf32, #tpu.memory_space<vmem>>) attributes {dimension_semantics = [#tpu.dimension_semantics<parallel>, #tpu.dimension_semantics<arbitrary>], iteration_bounds = array<i64: 1, 8>, scalar_prefetch = 0 : i64, scratch_operands = 1 : i64, tpu.core_type = #tpu.core_type<tc>, window_params = [{transform_indices = @transform_0, window_bounds = array<i64: 16, 1536>}, {transform_indices = @transform_1, window_bounds = array<i64: 1536, 768>}, {pipeline_mode = #tpu.pipeline_mode<synchronous>, transform_indices = @transform_2, window_bounds = array<i64: 1, 768>}, {transform_indices = @transform_3, window_bounds = array<i64: 16, 768>}]} {
    %c0_i32 = arith.constant 0 : i32
    %0 = arith.cmpi eq, %arg1, %c0_i32 : i32
    %1 = arith.extui %0 : i1 to i32
    %c0_i32_0 = arith.constant 0 : i32
    %2 = arith.cmpi ne, %1, %c0_i32_0 : i32
    scf.if %2 {
      %cst_9 = arith.constant 0.000000e+00 : f32
      %12 = vector.broadcast %cst_9 : f32 to vector<16x768xf32>
      %c0_10 = arith.constant 0 : index
      %c0_11 = arith.constant 0 : index
      %13 = vector.load %arg6[%c0_10, %c0_11] : memref<16x768xf32, #tpu.memory_space<vmem>>, vector<16x768xf32>
      tpu.vector_store %arg6[%c0_10, %c0_11], %12 {strides = array<i32>} : memref<16x768xf32, #tpu.memory_space<vmem>>, vector<16x768xf32>,
    } else {
    }
    %c0 = arith.constant 0 : index
    %c0_1 = arith.constant 0 : index
    %3 = vector.load %arg6[%c0, %c0_1] : memref<16x768xf32, #tpu.memory_space<vmem>>, vector<16x768xf32>
    %c0_2 = arith.constant 0 : index
    %c0_3 = arith.constant 0 : index
    %4 = vector.load %arg2[%c0_2, %c0_3] : memref<16x1536xbf16, #tpu.memory_space<vmem>>, vector<16x1536xbf16>
    %c0_4 = arith.constant 0 : index
    %c0_5 = arith.constant 0 : index
    %5 = vector.load %arg3[%c0_4, %c0_5] : memref<1536x768xbf16, #tpu.memory_space<vmem>>, vector<1536x768xbf16>
    %cst = arith.constant dense<0.000000e+00> : vector<16x768xf32>
    %6 = tpu.matmul %4, %5, %cst {dimension_numbers = #tpu.dot_dimension_numbers<[1], [0], [0], [1], [0, 0, 1, 1], [], []>} : vector<16x1536xbf16>, vector<1536x768xbf16>, vector<16x768xf32> -> vector<16x768xf32>
    %7 = arith.addf %3, %6 : vector<16x768xf32>
    %c0_6 = arith.constant 0 : index
    %c0_7 = arith.constant 0 : index
    %8 = vector.load %arg6[%c0_6, %c0_7] : memref<16x768xf32, #tpu.memory_space<vmem>>, vector<16x768xf32>
    tpu.vector_store %arg6[%c0_6, %c0_7], %7 {strides = array<i32>} : memref<16x768xf32, #tpu.memory_space<vmem>>, vector<16x768xf32>,
    %c7_i32 = arith.constant 7 : i32
    %9 = arith.cmpi eq, %arg1, %c7_i32 : i32
    %10 = arith.extui %9 : i1 to i32
    %c0_i32_8 = arith.constant 0 : i32
    %11 = arith.cmpi ne, %10, %c0_i32_8 : i32
    scf.if %11 {
      %c0_9 = arith.constant 0 : index
      %c0_10 = arith.constant 0 : index
      %12 = vector.load %arg6[%c0_9, %c0_10] : memref<16x768xf32, #tpu.memory_space<vmem>>, vector<16x768xf32>
      %c0_11 = arith.constant 0 : index
      %c0_12 = arith.constant 0 : index
      %13 = vector.load %arg4[%c0_11, %c0_12] : memref<1x768xf32, #tpu.memory_space<vmem>>, vector<1x768xf32>
      %14 = vector.broadcast %13 : vector<1x768xf32> to vector<16x768xf32>
      %15 = arith.addf %12, %14 : vector<16x768xf32>
      %cst_13 = arith.constant 0.000000e+00 : f32
      %16 = vector.broadcast %cst_13 : f32 to vector<16x768xf32>
      %17 = arith.maximumf %15, %16 : vector<16x768xf32>
      %c0_14 = arith.constant 0 : index
      %c0_15 = arith.constant 0 : index
      %18 = vector.load %arg5[%c0_14, %c0_15] : memref<16x768xf32, #tpu.memory_space<vmem>>, vector<16x768xf32>
      tpu.vector_store %arg5[%c0_14, %c0_15], %17 {strides = array<i32>} : memref<16x768xf32, #tpu.memory_space<vmem>>, vector<16x768xf32>,
    } else {
    }
    return
  }
  func.func @transform_0(%arg0: i32, %arg1: i32) -> (i32, i32) {
    %c0_i32 = arith.constant 0 : i32
    return %arg0, %arg1 : i32, i32
  }
  func.func @transform_1(%arg0: i32, %arg1: i32) -> (i32, i32) {
    %c0_i32 = arith.constant 0 : i32
    %c0_i32_0 = arith.constant 0 : i32
    return %arg1, %c0_i32 : i32, i32
  }
  func.func @transform_2(%arg0: i32, %arg1: i32) -> (i32, i32) {
    %c0_i32 = arith.constant 0 : i32
    %c0_i32_0 = arith.constant 0 : i32
    %c0_i32_1 = arith.constant 0 : i32
    return %c0_i32, %c0_i32_0 : i32, i32
  }
  func.func @transform_3(%arg0: i32, %arg1: i32) -> (i32, i32) {
    %c0_i32 = arith.constant 0 : i32
    %c0_i32_0 = arith.constant 0 : i32
    return %arg0, %c0_i32 : i32, i32
  }
}

</mosaic_0001>

<bundles_post_ra>
// kernel: cnn_encoder_forward.2
= control target key start
LH: loop header
LB: loop body
LE: loop exit
PB: predicated region body
PF: predicated region fallthrough
CT: control target
= control target key end

     0   :  { %8 = vsyncpa [#allocation5], 0  ;;  %s7960_s0 = inlined_call_operand.vmem [shape: bf16[32,12288], index: 0, kind: input, shape index: {}]   ;;  %s7961_s1 = inlined_call_operand.hbm [shape: bf16[12288,768], index: 1, kind: input, shape index: {}]   ;;  %s7962_s2 = inlined_call_operand.vmem [shape: f32[1,768], index: 2, kind: input, shape index: {}]   ;;  %s7963_s3 = inlined_call_operand.vmem [shape: bf16[32,768], index: 3, kind: output, shape index: {}]  }
   0x1   :  { %10 = vsyncpa [#allocation5 + $0x1], 0  ;;  %s7087_s12 = smov 0   ;;  %s7089_s13 = smov 0  }
   0x2   :  { %s7091_s14 = smov 0   ;;  %s7093_s15 = smov 0  }
   0x3   :  { %s7095_s16 = smov 0   ;;  %s7097_s17 = smov 0  }
   0x4 LB: > { %s5243_s18 = sadd.s32 4294967295, %s7061_s17   ;;  %s25_s19 = sadd.s32 1, %s7057_s16  ;;  %s7061_s17 = sphi %s7097_s17, %s16_s17   ;;  %s7057_s16 = sphi %s7095_s16, %s7970_s16   ;;  %s7053_s15 = sphi %s7093_s15, %s7969_s15   ;;  %s7049_s14 = sphi %s7091_s14, %s7968_s14   ;;  %s7045_s13 = sphi %s7089_s13, %s7967_s13   ;;  %s7041_s12 = sphi %s7087_s12, %s7966_s12  }
   0x5   : > { %p26_p0 = scmp.ge.s32.totalorder %s25_s19, 8  ;;  %s37_s20 = sadd.s32 1, %s7049_s14 }
   0x6   : > { %p44_p1 = scmp.ne.s32.totalorder %s7049_s14, %s7045_s13  ;;  %p45_p2 = scmp.eq.s32.totalorder %s7061_s17, 0 }
   0x7   : > { %s7972_s19 = smov (%p26_p0, %s25_s19), 0  ;;  %p76_p4 = scmp.ne.s32.totalorder %s7045_s13, %s7041_s12 }
   0x8   : > { %p7123_p3 = por %p45_p2, %p44_p1  ;;  %s33_s22 = ssub.s32 %s7057_s16, %s7972_s19 }
   0x9   : > { %p77_p5 = scmp.eq.s32.totalorder %s5243_s18, 0  ;;  %p35_p6 = scmp.eq.s32.totalorder %s33_s22, 0 }
   0xa   : > { %p5245_p8 = scmp.ge.s32.totalorder %s7061_s17, 8 }
   0xb   : > { %p7130_p7 = por %p77_p5, %p76_p4 }
   0xc   : > { %s7135_s24 = scalar_select %p35_p6, %s7049_s14, %s37_s20  }
   0xd   : > { %146 = sbr.rel (%p5245_p8) target bundleno = 63 (0x3f), region = 20 }
  0x14   : > { %149 = sbr.rel (!%p7123_p3) target bundleno = 37 (0x25), region = 24  ;;  %s151_s25 = sand.u32 (%p7123_p3), 1, %s7049_s14  }
  0x15   : > { %s5867_s26 = smul.u32 (%p7123_p3), 48, %s7057_s16 }
  0x16   : > { %s6000_s27 = smul.u32 (%p7123_p3), 192, %s151_s25 }
  0x17   : > { %s7145_s30 = scalar_lea.vmem (%p7123_p3), %s7960_s0, %s5867_s26 }
  0x18   : > { %v172_v0 = vld [vmem:[%s7145_s30] sm:$0xff] (%p7123_p3)  ;;  %v174_v1 = vld [vmem:[%s7145_s30 + $0x8] sm:$0xff] (%p7123_p3)  ;;  %v176_v2 = vld [vmem:[%s7145_s30 + $0x10] sm:$0xff] (%p7123_p3)  ;;  %s7150_s4 = scalar_lea.vmem (%p7123_p3), [#allocation3], %s6000_s27 }
  0x19   : > { %173 = vst [vmem:[%s7150_s4] sm:$0xff] (%p7123_p3), %v172_v0  ;;  %175 = vst [vmem:[%s7150_s4 + $0x8] sm:$0xff] (%p7123_p3), %v174_v1  ;;  %v178_v3 = vld [vmem:[%s7145_s30 + $0x18] sm:$0xff] (%p7123_p3)  ;;  %v180_v4 = vld [vmem:[%s7145_s30 + $0x20] sm:$0xff] (%p7123_p3) }
  0x1a   : > { %177 = vst [vmem:[%s7150_s4 + $0x10] sm:$0xff] (%p7123_p3), %v176_v2  ;;  %v182_v5 = vld [vmem:[%s7145_s30 + $0x28] sm:$0xff] (%p7123_p3)  ;;  %179 = vst [vmem:[%s7150_s4 + $0x18] sm:$0xff] (%p7123_p3), %v178_v3  ;;  %v184_v6 = vld [vmem:[%s7145_s30 + $0x180] sm:$0xff] (%p7123_p3) }
  0x1b   : > { %181 = vst [vmem:[%s7150_s4 + $0x20] sm:$0xff] %v180_v4  ;;  %183 = vst [vmem:[%s7150_s4 + $0x28] sm:$0xff] %v182_v5  ;;  %v186_v7 = vld [vmem:[%s7145_s30 + $0x188] sm:$0xff]  ;;  %v188_v8 = vld [vmem:[%s7145_s30 + $0x190] sm:$0xff] }
  0x1c   : > { %185 = vst [vmem:[%s7150_s4 + $0x30] sm:$0xff] %v184_v6  ;;  %187 = vst [vmem:[%s7150_s4 + $0x38] sm:$0xff] %v186_v7  ;;  %v190_v9 = vld [vmem:[%s7145_s30 + $0x198] sm:$0xff]  ;;  %v192_v10 = vld [vmem:[%s7145_s30 + $0x1a0] sm:$0xff] }
  0x1d   : > { %189 = vst [vmem:[%s7150_s4 + $0x40] sm:$0xff] %v188_v8  ;;  %v194_v11 = vld [vmem:[%s7145_s30 + $0x1a8] sm:$0xff]  ;;  %191 = vst [vmem:[%s7150_s4 + $0x48] sm:$0xff] %v190_v9  ;;  %v196_v12 = vld [vmem:[%s7145_s30 + $0x300] sm:$0xff] }
  0x1e   : > { %193 = vst [vmem:[%s7150_s4 + $0x50] sm:$0xff] %v192_v10  ;;  %195 = vst [vmem:[%s7150_s4 + $0x58] sm:$0xff] %v194_v11  ;;  %v198_v13 = vld [vmem:[%s7145_s30 + $0x308] sm:$0xff]  ;;  %v200_v14 = vld [vmem:[%s7145_s30 + $0x310] sm:$0xff] }
  0x1f   : > { %197 = vst [vmem:[%s7150_s4 + $0x60] sm:$0xff] %v196_v12  ;;  %199 = vst [vmem:[%s7150_s4 + $0x68] sm:$0xff] %v198_v13  ;;  %v202_v15 = vld [vmem:[%s7145_s30 + $0x318] sm:$0xff]  ;;  %v204_v16 = vld [vmem:[%s7145_s30 + $0x320] sm:$0xff] }
  0x20   : > { %201 = vst [vmem:[%s7150_s4 + $0x70] sm:$0xff] %v200_v14  ;;  %v206_v17 = vld [vmem:[%s7145_s30 + $0x328] sm:$0xff]  ;;  %203 = vst [vmem:[%s7150_s4 + $0x78] sm:$0xff] %v202_v15  ;;  %v208_v18 = vld [vmem:[%s7145_s30 + $0x480] sm:$0xff] }
  0x21   : > { %205 = vst [vmem:[%s7150_s4 + $0x80] sm:$0xff] %v204_v16  ;;  %207 = vst [vmem:[%s7150_s4 + $0x88] sm:$0xff] %v206_v17  ;;  %v210_v19 = vld [vmem:[%s7145_s30 + $0x488] sm:$0xff]  ;;  %v212_v20 = vld [vmem:[%s7145_s30 + $0x490] sm:$0xff] }
  0x22   : > { %209 = vst [vmem:[%s7150_s4 + $0x90] sm:$0xff] %v208_v18  ;;  %211 = vst [vmem:[%s7150_s4 + $0x98] sm:$0xff] %v210_v19  ;;  %v214_v21 = vld [vmem:[%s7145_s30 + $0x498] sm:$0xff]  ;;  %v216_v22 = vld [vmem:[%s7145_s30 + $0x4a0] sm:$0xff] }
  0x23   : > { %213 = vst [vmem:[%s7150_s4 + $0xa0] sm:$0xff] %v212_v20  ;;  %v218_v23 = vld [vmem:[%s7145_s30 + $0x4a8] sm:$0xff]  ;;  %215 = vst [vmem:[%s7150_s4 + $0xa8] sm:$0xff] %v214_v21 }
  0x24   : > { %217 = vst [vmem:[%s7150_s4 + $0xb0] sm:$0xff] %v216_v22  ;;  %219 = vst [vmem:[%s7150_s4 + $0xb8] sm:$0xff] %v218_v23 }
  0x25 PF: > { %s226_s5 = sand.u32 1, %s7049_s14   ;;  %s6007_s7 = smul.u32 73728, %s7057_s16 }
  0x26   : > { %s6001_s6 = smul.u32 4608, %s226_s5  ;;  %s7206_s18 = scalar_lea.sflag [#allocation5], %s226_s5 }
  0x27   : > { %s7202_s10 = scalar_lea.hbm %s7961_s1, %s6007_s7  ;;  %s6987_s26 = scalar_lea.hbm %s7961_s1, 589824 }
  0x28   : > { %s230_s11 = scalar_lea.vmem [#allocation4], %s6001_s6  ;;  %s6983_s20 = scalar_lea.hbm %s7202_s10, 73728 }
  0x29   : > { %s238_s12 = sshll.u32 %s230_s11, 4  ;;  %p6984_p9 = scmp.ne.s32.totalorder %s7202_s10, %s6983_s20  ;;  %s7204_s12 = int_to_ptr.vmem [resolvable:$true] %s238_s12 }
  0x2a   : > { %p6988_p12 = scmp.lt.u32.totalorder %s7202_s10, %s7961_s1  ;;  %p6989_p13 = scmp.lt.u32.totalorder %s6987_s26, %s6983_s20 }
  0x2b   : > { %p6985_p10 = pnand %p6984_p9, %p7123_p3  ;;  %p6991_p1 = scmp.lt.u32.totalorder %s6983_s20, %s7202_s10 }
  0x2c   : > { %p6990_p0 = por %p6989_p13, %p6988_p12 }
  0x2d   : > { %p6986_p11 = pneg %p6985_p10 }
  0x2e   : > { %p6992_p2 = por %p6991_p1, %p6990_p0 }
  0x30   : > { %p6993_p4 = pnand %p6992_p2, %p6986_p11 }
  0x32   : > { %6996 = shalt.err (!%p6993_p4)
}
  0x33   : > { %s6997_s29 = scalar_lea.vmem %s7204_s12, 73728  ;;  %s7063_s30 = smov [#allocation4]  }
  0x34   : > { %p6998_p5 = scmp.ne.s32.totalorder %s7204_s12, %s6997_s29  ;;  %s7001_s4 = sshll.u32 %s7063_s30, 4  ;;  %s7002_s4 = int_to_ptr.vmem [resolvable:$false] %s7001_s4 }
  0x35   : > { %s7003_s5 = scalar_lea.vmem %s7002_s4, 147456  ;;  %p7004_p9 = scmp.lt.s32.totalorder %s7204_s12, %s7002_s4 }
  0x36   : > { %p6999_p6 = pnand %p6998_p5, %p7123_p3  ;;  %p7005_p10 = scmp.lt.s32.totalorder %s7003_s5, %s6997_s29 }
  0x38   : > { %p7000_p8 = pneg %p6999_p6  ;;  %p7006_p12 = por %p7005_p10, %p7004_p9 }
  0x3a   : > { %p7007_p13 = pnand %p7006_p12, %p7000_p8 }
  0x3c   : > { %7010 = shalt.err (!%p7007_p13)
}
  0x3d   : > { %s7064_s6 = smov 384   ;;  %s7065_s7 = smov 24  }
  0x3e   : > { %6005 = dma.hbm_to_vmem [thread:$0]  (%p7123_p3), %s7202_s10, 73728, %s7204_s12, %s7206_s18, %s7064_s6, %s7064_s6, %s7065_s7  }
  0x3f PF: > { %p5248_p11 = scmp.ge.s32.totalorder %s7061_s17, 1  ;;  %p246_p0 = scmp.lt.s32.totalorder %s7061_s17, 9 }
  0x41   : > { %p247_p1 = pnand %p5248_p11, %p246_p0 }
  0x42   : > { %s253_s8 = sand.u32 (!%p247_p1), 1, %s7045_s13  }
  0x43   : > { %250 = sbr.rel (%p247_p1) target bundleno = 907 (0x38b), region = 51  ;;  %s260_s22 = scalar_lea.sflag (!%p247_p1), [#allocation5], %s253_s8 }
  0x44   : > { %s6003_s9 = smul.u32 (!%p247_p1), 192, %s253_s8 }
  0x45   : > { %s6004_s11 = smul.u32 (!%p247_p1), 4608, %s253_s8 }
  0x46   : > { %s7233_s20 = scalar_lea.vmem (!%p247_p1), [#allocation3], %s6003_s9 }
  0x47   : > { %s7235_s25 = scalar_lea.vmem (!%p247_p1), [#allocation4], %s6004_s11 }
  0x4a   : > { %7036 = dma.done.wait (%p7130_p7), %s260_s22, 73728  }
  0x4b   : > { %7038 = vsyncadd (%p7130_p7), %s260_s22, 4294893568  ;;  %p5249_p3 = scmp.ne.s32.totalorder %s7053_s15, 0 }
  0x4c   : > { %v7066_v24 = vmov (!%p5249_p3), 0.0  }
  0x4d   : > { %304 = sbr.rel (%p5249_p3) target bundleno = 89 (0x59), region = 63  ;;  %305 = vst [vmem:[#allocation2] sm:$0xff] (!%p5249_p3), %v7066_v24  ;;  %306 = vst [vmem:[#allocation2 + $0x8] sm:$0xff] (!%p5249_p3), %v7066_v24 }
  0x4e   : > { %307 = vst [vmem:[#allocation2 + $0x10] sm:$0xff] (!%p5249_p3), %v7066_v24  ;;  %308 = vst [vmem:[#allocation2 + $0x18] sm:$0xff] (!%p5249_p3), %v7066_v24 }
  0x4f   : > { %309 = vst [vmem:[#allocation2 + $0x20] sm:$0xff] (!%p5249_p3), %v7066_v24  ;;  %310 = vst [vmem:[#allocation2 + $0x28] sm:$0xff] (!%p5249_p3), %v7066_v24 }
  0x50   : > { %311 = vst [vmem:[#allocation2 + $0x30] sm:$0xff] (!%p5249_p3), %v7066_v24  ;;  %312 = vst [vmem:[#allocation2 + $0x38] sm:$0xff] (!%p5249_p3), %v7066_v24 }
  0x51   : > { %313 = vst [vmem:[#allocation2 + $0x40] sm:$0xff] (!%p5249_p3), %v7066_v24  ;;  %314 = vst [vmem:[#allocation2 + $0x48] sm:$0xff] (!%p5249_p3), %v7066_v24 }
  0x52   : > { %315 = vst [vmem:[#allocation2 + $0x50] sm:$0xff] (!%p5249_p3), %v7066_v24  ;;  %316 = vst [vmem:[#allocation2 + $0x58] sm:$0xff] (!%p5249_p3), %v7066_v24 }
  0x53   : > { %317 = vst [vmem:[#allocation2 + $0x60] sm:$0xff] (!%p5249_p3), %v7066_v24  ;;  %318 = vst [vmem:[#allocation2 + $0x68] sm:$0xff] (!%p5249_p3), %v7066_v24 }
  0x54   : > { %319 = vst [vmem:[#allocation2 + $0x70] sm:$0xff] %v7066_v24  ;;  %320 = vst [vmem:[#allocation2 + $0x78] sm:$0xff] %v7066_v24 }
  0x55   : > { %321 = vst [vmem:[#allocation2 + $0x80] sm:$0xff] %v7066_v24  ;;  %322 = vst [vmem:[#allocation2 + $0x88] sm:$0xff] %v7066_v24 }
  0x56   : > { %323 = vst [vmem:[#allocation2 + $0x90] sm:$0xff] %v7066_v24  ;;  %324 = vst [vmem:[#allocation2 + $0x98] sm:$0xff] %v7066_v24 }
  0x57   : > { %325 = vst [vmem:[#allocation2 + $0xa0] sm:$0xff] %v7066_v24  ;;  %326 = vst [vmem:[#allocation2 + $0xa8] sm:$0xff] %v7066_v24 }
  0x58   : > { %327 = vst [vmem:[#allocation2 + $0xb0] sm:$0xff] %v7066_v24  ;;  %328 = vst [vmem:[#allocation2 + $0xb8] sm:$0xff] %v7066_v24 }
  0x59 PF: > { %v6059_v25 = vld [vmem:[%s7235_s25 + $0x4] ss:$24 sps:$4 sm:$0xff]   ;;  %v6063_v27 = vld [vmem:[%s7235_s25] ss:$24 sps:$4 sm:$0xff]   ;;  %v6065_v29 = vld [vmem:[%s7235_s25 + $0x34] ss:$24 sps:$4 sm:$0xff]  }
  0x5a   : > { %v6061_v26 = vld [vmem:[%s7235_s25 + $0x904] ss:$24 sps:$4 sm:$0xff]   ;;  %3953 = vmatprep.subr.bf16.mxu1 %v6059_v25  ;;  %v6064_v28 = vld [vmem:[%s7235_s25 + $0x900] ss:$24 sps:$4 sm:$0xff]   ;;  %v6067_v30 = vld [vmem:[%s7235_s25 + $0x934] ss:$24 sps:$4 sm:$0xff]  }
  0x5b   : > { %4112 = vmatprep.subr.bf16.mxu0 %v6061_v26  ;;  %3954 = vmatpush1.bf16.msra.mxu1 %v6063_v27  ;;  %v6069_v31 = vld [vmem:[%s7235_s25 + $0x30] ss:$24 sps:$4 sm:$0xff]   ;;  %v6071_v33 = vld [vmem:[%s7235_s25 + $0x64] ss:$24 sps:$4 sm:$0xff]   ;;  %v6075_v35 = vld [vmem:[%s7235_s25 + $0x60] ss:$24 sps:$4 sm:$0xff]  }
  0x5c   : > { %4113 = vmatpush1.bf16.msra.mxu0 %v6064_v28  ;;  %3955 = vmatprep.subr.bf16.mxu1 %v6065_v29  ;;  %v6070_v32 = vld [vmem:[%s7235_s25 + $0x930] ss:$24 sps:$4 sm:$0xff]   ;;  %v6073_v34 = vld [vmem:[%s7235_s25 + $0x964] ss:$24 sps:$4 sm:$0xff]   ;;  %v6076_v36 = vld [vmem:[%s7235_s25 + $0x960] ss:$24 sps:$4 sm:$0xff]  }
  0x5d   : > { %4114 = vmatprep.subr.bf16.mxu0 %v6067_v30  ;;  %v6077_v37 = vld [vmem:[%s7235_s25 + $0x94] ss:$24 sps:$4 sm:$0xff]   ;;  %v6081_v39 = vld [vmem:[%s7235_s25 + $0x90] ss:$24 sps:$4 sm:$0xff]   ;;  %v6083_v41 = vld [vmem:[%s7235_s25 + $0xc4] ss:$24 sps:$4 sm:$0xff]  }
  0x5e   : > { %v6079_v38 = vld [vmem:[%s7235_s25 + $0x994] ss:$24 sps:$4 sm:$0xff]   ;;  %v6082_v40 = vld [vmem:[%s7235_s25 + $0x990] ss:$24 sps:$4 sm:$0xff]   ;;  %v6085_v42 = vld [vmem:[%s7235_s25 + $0x9c4] ss:$24 sps:$4 sm:$0xff]  }
  0x5f   : > { %3956 = vmatpush1.bf16.msra.mxu1 %v6069_v31  ;;  %v6087_v43 = vld [vmem:[%s7235_s25 + $0xc0] ss:$24 sps:$4 sm:$0xff]   ;;  %v6089_v45 = vld [vmem:[%s7235_s25 + $0xf4] ss:$24 sps:$4 sm:$0xff]   ;;  %v6093_v47 = vld [vmem:[%s7235_s25 + $0xf0] ss:$24 sps:$4 sm:$0xff]  }
  0x60   : > { %4115 = vmatpush1.bf16.msra.mxu0 %v6070_v32  ;;  %3957 = vmatprep.subr.bf16.mxu1 %v6071_v33  ;;  %v6088_v44 = vld [vmem:[%s7235_s25 + $0x9c0] ss:$24 sps:$4 sm:$0xff]   ;;  %v6091_v46 = vld [vmem:[%s7235_s25 + $0x9f4] ss:$24 sps:$4 sm:$0xff]   ;;  %v6094_v48 = vld [vmem:[%s7235_s25 + $0x9f0] ss:$24 sps:$4 sm:$0xff]  }
  0x61   : > { %4116 = vmatprep.subr.bf16.mxu0 %v6073_v34  ;;  %v6095_v49 = vld [vmem:[%s7235_s25 + $0x124] ss:$24 sps:$4 sm:$0xff]   ;;  %v6099_v51 = vld [vmem:[%s7235_s25 + $0x120] ss:$24 sps:$4 sm:$0xff]   ;;  %v6101_v53 = vld [vmem:[%s7235_s25 + $0x154] ss:$24 sps:$4 sm:$0xff]  }
  0x62   : > { %v6097_v50 = vld [vmem:[%s7235_s25 + $0xa24] ss:$24 sps:$4 sm:$0xff]   ;;  %v6100_v52 = vld [vmem:[%s7235_s25 + $0xa20] ss:$24 sps:$4 sm:$0xff]   ;;  %v6103_v54 = vld [vmem:[%s7235_s25 + $0xa54] ss:$24 sps:$4 sm:$0xff]  }
  0x63   : > { %3958 = vmatpush1.bf16.msra.mxu1 %v6075_v35  ;;  %v6105_v55 = vld [vmem:[%s7235_s25 + $0x150] ss:$24 sps:$4 sm:$0xff]   ;;  %v6107_v57 = vld [vmem:[%s7235_s25 + $0x184] ss:$24 sps:$4 sm:$0xff]   ;;  %v6111_v59 = vld [vmem:[%s7235_s25 + $0x180] ss:$24 sps:$4 sm:$0xff]  }
  0x64   : > { %4117 = vmatpush1.bf16.msra.mxu0 %v6076_v36  ;;  %3959 = vmatprep.subr.bf16.mxu1 %v6077_v37  ;;  %v6106_v56 = vld [vmem:[%s7235_s25 + $0xa50] ss:$24 sps:$4 sm:$0xff]   ;;  %v6109_v58 = vld [vmem:[%s7235_s25 + $0xa84] ss:$24 sps:$4 sm:$0xff]   ;;  %v6112_v60 = vld [vmem:[%s7235_s25 + $0xa80] ss:$24 sps:$4 sm:$0xff]  }
  0x65   : > { %4118 = vmatprep.subr.bf16.mxu0 %v6079_v38  ;;  %v6113_v61 = vld [vmem:[%s7235_s25 + $0x1b4] ss:$24 sps:$4 sm:$0xff]   ;;  %v6117_v63 = vld [vmem:[%s7235_s25 + $0x1b0] ss:$24 sps:$4 sm:$0xff]   ;;  %v6119_v1 = vld [vmem:[%s7235_s25 + $0x1e4] ss:$24 sps:$4 sm:$0xff]  }
  0x66   : > { %v6115_v62 = vld [vmem:[%s7235_s25 + $0xab4] ss:$24 sps:$4 sm:$0xff]   ;;  %v6118_v0 = vld [vmem:[%s7235_s25 + $0xab0] ss:$24 sps:$4 sm:$0xff]   ;;  %v6121_v2 = vld [vmem:[%s7235_s25 + $0xae4] ss:$24 sps:$4 sm:$0xff]  }
  0x67   : > { %3960 = vmatpush1.bf16.msra.mxu1 %v6081_v39  ;;  %v6123_v3 = vld [vmem:[%s7235_s25 + $0x1e0] ss:$24 sps:$4 sm:$0xff]   ;;  %v6125_v5 = vld [vmem:[%s7235_s25 + $0x214] ss:$24 sps:$4 sm:$0xff]   ;;  %v6129_v7 = vld [vmem:[%s7235_s25 + $0x210] ss:$24 sps:$4 sm:$0xff]  }
  0x68   : > { %4119 = vmatpush1.bf16.msra.mxu0 %v6082_v40  ;;  %3961 = vmatprep.subr.bf16.mxu1 %v6083_v41  ;;  %v6124_v4 = vld [vmem:[%s7235_s25 + $0xae0] ss:$24 sps:$4 sm:$0xff]   ;;  %v6127_v6 = vld [vmem:[%s7235_s25 + $0xb14] ss:$24 sps:$4 sm:$0xff]   ;;  %v6130_v8 = vld [vmem:[%s7235_s25 + $0xb10] ss:$24 sps:$4 sm:$0xff]  }
  0x69   : > { %4120 = vmatprep.subr.bf16.mxu0 %v6085_v42  ;;  %v6155_v9 = vld [vmem:[%s7233_s20 + $0x4] ss:$48 sps:$4 sm:$0xff]   ;;  %v6160_v12 = vld [vmem:[%s7233_s20 + $0x1c] ss:$48 sps:$4 sm:$0xff]   ;;  %v6135_v13 = vld [vmem:[%s7235_s25 + $0x240] ss:$24 sps:$4 sm:$0xff]  }
  0x6a   : > { %v6131_v10 = vld [vmem:[%s7235_s25 + $0x244] ss:$24 sps:$4 sm:$0xff]   ;;  %3985 = vmatprep.mubr.bf16.mxu1 %v6155_v9  ;;  %v6136_v14 = vld [vmem:[%s7235_s25 + $0xb40] ss:$24 sps:$4 sm:$0xff]   ;;  %4144 = vmatprep.mubr.bf16.mxu0 %v6160_v12  ;;  %v6137_v15 = vld [vmem:[%s7235_s25 + $0x274] ss:$24 sps:$4 sm:$0xff]  }
  0x6b   : > { %3962 = vmatpush1.bf16.msra.mxu1 %v6087_v43  ;;  %v6133_v11 = vld [vmem:[%s7235_s25 + $0xb44] ss:$24 sps:$4 sm:$0xff]   ;;  %v6139_v16 = vld [vmem:[%s7235_s25 + $0xb74] ss:$24 sps:$4 sm:$0xff]   ;;  %v6141_v17 = vld [vmem:[%s7235_s25 + $0x270] ss:$24 sps:$4 sm:$0xff]  }
  0x6c   : > { %4121 = vmatpush1.bf16.msra.mxu0 %v6088_v44  ;;  %3963 = vmatprep.subr.bf16.mxu1 %v6089_v45  ;;  %v6142_v18 = vld [vmem:[%s7235_s25 + $0xb70] ss:$24 sps:$4 sm:$0xff]   ;;  %v6143_v19 = vld [vmem:[%s7235_s25 + $0x2a4] ss:$24 sps:$4 sm:$0xff]   ;;  %v6147_v21 = vld [vmem:[%s7235_s25 + $0x2a0] ss:$24 sps:$4 sm:$0xff]  }
  0x6d   : > { %4122 = vmatprep.subr.bf16.mxu0 %v6091_v46  ;;  %v6145_v20 = vld [vmem:[%s7235_s25 + $0xba4] ss:$24 sps:$4 sm:$0xff]   ;;  %v6148_v22 = vld [vmem:[%s7235_s25 + $0xba0] ss:$24 sps:$4 sm:$0xff]   ;;  %v6149_v23 = vld [vmem:[%s7235_s25 + $0x2d4] ss:$24 sps:$4 sm:$0xff]  }
  0x6e   : > { %v6151_v24 = vld [vmem:[%s7235_s25 + $0xbd4] ss:$24 sps:$4 sm:$0xff]   ;;  %v6153_v25 = vld [vmem:[%s7235_s25 + $0x2d0] ss:$24 sps:$4 sm:$0xff]   ;;  %v6159_v27 = vld [vmem:[%s7235_s25 + $0x304] ss:$24 sps:$4 sm:$0xff]  }
  0x6f   : > { %3964 = vmatpush1.bf16.msra.mxu1 %v6093_v47  ;;  %v6154_v26 = vld [vmem:[%s7235_s25 + $0xbd0] ss:$24 sps:$4 sm:$0xff]   ;;  %v6164_v28 = vld [vmem:[%s7235_s25 + $0xc04] ss:$24 sps:$4 sm:$0xff]   ;;  %v6157_v29 = vld [vmem:[%s7235_s25 + $0x300] ss:$24 sps:$4 sm:$0xff]  }
  0x70   : > { %4123 = vmatpush1.bf16.msra.mxu0 %v6094_v48  ;;  %3965 = vmatprep.subr.bf16.mxu1 %v6095_v49  ;;  %v6162_v30 = vld [vmem:[%s7235_s25 + $0xc00] ss:$24 sps:$4 sm:$0xff]   ;;  %v6169_v33 = vld [vmem:[%s7235_s25 + $0x334] ss:$24 sps:$4 sm:$0xff]   ;;  %v6167_v35 = vld [vmem:[%s7235_s25 + $0x330] ss:$24 sps:$4 sm:$0xff]  }
  0x71   : > { %4124 = vmatprep.subr.bf16.mxu0 %v6097_v50  ;;  %v6165_v31 = vld [vmem:[%s7233_s20] ss:$48 sps:$4 sm:$0xff]   ;;  %v6166_v32 = vld [vmem:[%s7233_s20 + $0x18] ss:$48 sps:$4 sm:$0xff]   ;;  %v6172_v34 = vld [vmem:[%s7235_s25 + $0xc34] ss:$24 sps:$4 sm:$0xff]  }
  0x72   : > { %v6170_v36 = vld [vmem:[%s7235_s25 + $0xc30] ss:$24 sps:$4 sm:$0xff]   ;;  %v6175_v37 = vld [vmem:[%s7235_s25 + $0x364] ss:$24 sps:$4 sm:$0xff]   ;;  %v6173_v39 = vld [vmem:[%s7235_s25 + $0x360] ss:$24 sps:$4 sm:$0xff]  }
  0x73   : > { %3966 = vmatpush1.bf16.msra.mxu1 %v6099_v51  ;;  %v6178_v38 = vld [vmem:[%s7235_s25 + $0xc64] ss:$24 sps:$4 sm:$0xff]   ;;  %v6176_v40 = vld [vmem:[%s7235_s25 + $0xc60] ss:$24 sps:$4 sm:$0xff]   ;;  %v6181_v41 = vld [vmem:[%s7235_s25 + $0x394] ss:$24 sps:$4 sm:$0xff]  }
  0x74   : > { %4125 = vmatpush1.bf16.msra.mxu0 %v6100_v52  ;;  %3967 = vmatprep.subr.bf16.mxu1 %v6101_v53  ;;  %v6184_v42 = vld [vmem:[%s7235_s25 + $0xc94] ss:$24 sps:$4 sm:$0xff]   ;;  %v6179_v43 = vld [vmem:[%s7235_s25 + $0x390] ss:$24 sps:$4 sm:$0xff]   ;;  %v6187_v45 = vld [vmem:[%s7235_s25 + $0x3c4] ss:$24 sps:$4 sm:$0xff]  }
  0x75   : > { %4126 = vmatprep.subr.bf16.mxu0 %v6103_v54  ;;  %v6182_v44 = vld [vmem:[%s7235_s25 + $0xc90] ss:$24 sps:$4 sm:$0xff]   ;;  %v6190_v46 = vld [vmem:[%s7235_s25 + $0xcc4] ss:$24 sps:$4 sm:$0xff]   ;;  %v6185_v47 = vld [vmem:[%s7235_s25 + $0x3c0] ss:$24 sps:$4 sm:$0xff]  }
  0x76   : > { %v6188_v48 = vld [vmem:[%s7235_s25 + $0xcc0] ss:$24 sps:$4 sm:$0xff]   ;;  %v6193_v49 = vld [vmem:[%s7235_s25 + $0x3f4] ss:$24 sps:$4 sm:$0xff]   ;;  %v6191_v51 = vld [vmem:[%s7235_s25 + $0x3f0] ss:$24 sps:$4 sm:$0xff]  }
  0x77   : > { %3968 = vmatpush1.bf16.msra.mxu1 %v6105_v55  ;;  %v6196_v50 = vld [vmem:[%s7235_s25 + $0xcf4] ss:$24 sps:$4 sm:$0xff]   ;;  %v6194_v52 = vld [vmem:[%s7235_s25 + $0xcf0] ss:$24 sps:$4 sm:$0xff]   ;;  %v6199_v54 = vld [vmem:[%s7235_s25 + $0x424] ss:$24 sps:$4 sm:$0xff]  }
  0x78   : > { %4127 = vmatpush1.bf16.msra.mxu0 %v6106_v56  ;;  %3969 = vmatprep.subr.bf16.mxu1 %v6107_v57  ;;  %v6245_v53 = vld [vmem:[%s7233_s20 + $0x64] ss:$48 sps:$4 sm:$0xff]   ;;  %v6250_v56 = vld [vmem:[%s7233_s20 + $0x7c] ss:$48 sps:$4 sm:$0xff]   ;;  %v6197_v57 = vld [vmem:[%s7235_s25 + $0x420] ss:$24 sps:$4 sm:$0xff]  }
  0x79   : > { %4128 = vmatprep.subr.bf16.mxu0 %v6109_v58  ;;  %v6202_v55 = vld [vmem:[%s7235_s25 + $0xd24] ss:$24 sps:$4 sm:$0xff]   ;;  %v6200_v58 = vld [vmem:[%s7235_s25 + $0xd20] ss:$24 sps:$4 sm:$0xff]   ;;  %v6215_v9 = vld [vmem:[%s7235_s25 + $0x4b0] ss:$24 sps:$4 sm:$0xff]  }
  0x7a   : > { %v6226_v12 = vld [vmem:[%s7235_s25 + $0xde4] ss:$24 sps:$4 sm:$0xff]   ;;  %p5850_p7 = scmp.ne.s32.totalorder %s7053_s15, 7 }
  0x7b   : > { %3970 = vmatpush1.bf16.msra.mxu1 %v6111_v59  ;;  %v6255_v59 = vld [vmem:[%s7233_s20 + $0x60] ss:$48 sps:$4 sm:$0xff]  }
  0x7c   : > { %4129 = vmatpush1.bf16.msra.mxu0 %v6112_v60  ;;  %3971 = vmatprep.subr.bf16.mxu1 %v6113_v61  ;;  %v6256_v60 = vld [vmem:[%s7233_s20 + $0x78] ss:$48 sps:$4 sm:$0xff]   ;;  %v6205_v61 = vld [vmem:[%s7235_s25 + $0x454] ss:$24 sps:$4 sm:$0xff]  }
  0x7d   : > { %4130 = vmatprep.subr.bf16.mxu0 %v6115_v62  ;;  %v6208_v62 = vld [vmem:[%s7235_s25 + $0xd54] ss:$24 sps:$4 sm:$0xff]  }
  0x7f   : > { %3972 = vmatpush1.bf16.msra.mxu1 %v6117_v63  ;;  %v6203_v63 = vld [vmem:[%s7235_s25 + $0x450] ss:$24 sps:$4 sm:$0xff]  }
  0x80   : > { %4131 = vmatpush1.bf16.msra.mxu0 %v6118_v0  ;;  %3973 = vmatprep.subr.bf16.mxu1 %v6119_v1  ;;  %v6206_v0 = vld [vmem:[%s7235_s25 + $0xd50] ss:$24 sps:$4 sm:$0xff]   ;;  %v6265_v1 = vld [vmem:[%s7233_s20 + $0xc] ss:$48 sps:$4 sm:$0xff]  }
  0x81   : > { %4132 = vmatprep.subr.bf16.mxu0 %v6121_v2  ;;  %v6211_v2 = vld [vmem:[%s7235_s25 + $0x484] ss:$24 sps:$4 sm:$0xff]  }
  0x83   : > { %3974 = vmatpush1.bf16.msra.mxu1 %v6123_v3  ;;  %v6214_v3 = vld [vmem:[%s7235_s25 + $0xd84] ss:$24 sps:$4 sm:$0xff]  }
  0x84   : > { %4133 = vmatpush1.bf16.msra.mxu0 %v6124_v4  ;;  %3975 = vmatprep.subr.bf16.mxu1 %v6125_v5  ;;  %v6271_v4 = vld [vmem:[%s7233_s20 + $0x24] ss:$48 sps:$4 sm:$0xff]   ;;  %v6209_v5 = vld [vmem:[%s7235_s25 + $0x480] ss:$24 sps:$4 sm:$0xff]  }
  0x85   : > { %4134 = vmatprep.subr.bf16.mxu0 %v6127_v6  ;;  %v6212_v6 = vld [vmem:[%s7235_s25 + $0xd80] ss:$24 sps:$4 sm:$0xff]  }
  0x87   : > { %3976 = vmatpush1.bf16.msra.mxu1 %v6129_v7  ;;  %v6217_v7 = vld [vmem:[%s7235_s25 + $0x4b4] ss:$24 sps:$4 sm:$0xff]  }
  0x88   : > { %4135 = vmatpush1.bf16.msra.mxu0 %v6130_v8  ;;  %3977 = vmatprep.subr.bf16.mxu1 %v6131_v10  ;;  %v6220_v8 = vld [vmem:[%s7235_s25 + $0xdb4] ss:$24 sps:$4 sm:$0xff]   ;;  %v6218_v10 = vld [vmem:[%s7235_s25 + $0xdb0] ss:$24 sps:$4 sm:$0xff]  }
  0x89   : > { %4136 = vmatprep.subr.bf16.mxu0 %v6133_v11  ;;  %v6223_v11 = vld [vmem:[%s7235_s25 + $0x4e4] ss:$24 sps:$4 sm:$0xff]  }
  0x8b   : > { %3978 = vmatpush1.bf16.msra.mxu1 %v6135_v13  ;;  %v6221_v13 = vld [vmem:[%s7235_s25 + $0x4e0] ss:$24 sps:$4 sm:$0xff]  }
  0x8c   : > { %4137 = vmatpush1.bf16.msra.mxu0 %v6136_v14  ;;  %3979 = vmatprep.subr.bf16.mxu1 %v6137_v15  ;;  %v6224_v14 = vld [vmem:[%s7235_s25 + $0xde0] ss:$24 sps:$4 sm:$0xff]   ;;  %v6229_v15 = vld [vmem:[%s7235_s25 + $0x514] ss:$24 sps:$4 sm:$0xff]  }
  0x8d   : > { %4138 = vmatprep.subr.bf16.mxu0 %v6139_v16  ;;  %v6232_v16 = vld [vmem:[%s7235_s25 + $0xe14] ss:$24 sps:$4 sm:$0xff]  }
  0x8f   : > { %3980 = vmatpush1.bf16.msra.mxu1 %v6141_v17  ;;  %v6227_v17 = vld [vmem:[%s7235_s25 + $0x510] ss:$24 sps:$4 sm:$0xff]  }
  0x90   : > { %4139 = vmatpush1.bf16.msra.mxu0 %v6142_v18  ;;  %3981 = vmatprep.subr.bf16.mxu1 %v6143_v19  ;;  %v6230_v18 = vld [vmem:[%s7235_s25 + $0xe10] ss:$24 sps:$4 sm:$0xff]   ;;  %v6235_v19 = vld [vmem:[%s7235_s25 + $0x544] ss:$24 sps:$4 sm:$0xff]  }
  0x91   : > { %4140 = vmatprep.subr.bf16.mxu0 %v6145_v20  ;;  %v6238_v20 = vld [vmem:[%s7235_s25 + $0xe44] ss:$24 sps:$4 sm:$0xff]  }
  0x93   : > { %3982 = vmatpush1.bf16.msra.mxu1 %v6147_v21  ;;  %v6233_v21 = vld [vmem:[%s7235_s25 + $0x540] ss:$24 sps:$4 sm:$0xff]  }
  0x94   : > { %4141 = vmatpush1.bf16.msra.mxu0 %v6148_v22  ;;  %3983 = vmatprep.subr.bf16.mxu1 %v6149_v23  ;;  %v6236_v22 = vld [vmem:[%s7235_s25 + $0xe40] ss:$24 sps:$4 sm:$0xff]   ;;  %v6241_v23 = vld [vmem:[%s7235_s25 + $0x574] ss:$24 sps:$4 sm:$0xff]  }
  0x95   : > { %4142 = vmatprep.subr.bf16.mxu0 %v6151_v24  ;;  %v6244_v24 = vld [vmem:[%s7235_s25 + $0xe74] ss:$24 sps:$4 sm:$0xff]  }
  0x97   : > { %3984 = vmatpush1.bf16.msra.mxu1 %v6153_v25  ;;  %v6239_v25 = vld [vmem:[%s7235_s25 + $0x570] ss:$24 sps:$4 sm:$0xff]  }
  0x98   : > { %4143 = vmatpush1.bf16.msra.mxu0 %v6154_v26  ;;  %4006 = vmatprep.subr.bf16.mxu1 %v6159_v27  ;;  %v6242_v26 = vld [vmem:[%s7235_s25 + $0xe70] ss:$24 sps:$4 sm:$0xff]   ;;  %v6249_v27 = vld [vmem:[%s7235_s25 + $0x5a4] ss:$24 sps:$4 sm:$0xff]  }
  0x99   : > { %4165 = vmatprep.subr.bf16.mxu0 %v6164_v28  ;;  %v6254_v28 = vld [vmem:[%s7235_s25 + $0xea4] ss:$24 sps:$4 sm:$0xff]  }
  0x9a   : > { %3986 = vmatmul.mubr.bf16.vlgmr.msra.gmra.mrb[0].mxu1 %v6165_v31  ;;  %v6259_v31 = vld [vmem:[%s7235_s25 + $0x5d4] ss:$24 sps:$4 sm:$0xff]  }
  0x9b   : > { %4145 = vmatmul.mubr.bf16.vlgmr.msra.gmra.mrb[0].mxu0 %v6166_v32  ;;  %4007 = vmatpush1.bf16.msra.mxu1 %v6157_v29  ;;  %v6247_v29 = vld [vmem:[%s7235_s25 + $0x5a0] ss:$24 sps:$4 sm:$0xff]   ;;  %v6262_v32 = vld [vmem:[%s7235_s25 + $0xed4] ss:$24 sps:$4 sm:$0xff]  }
  0x9c   : > { %4166 = vmatpush1.bf16.msra.mxu0 %v6162_v30  ;;  %4008 = vmatprep.subr.bf16.mxu1 %v6169_v33  ;;  %v6252_v30 = vld [vmem:[%s7235_s25 + $0xea0] ss:$24 sps:$4 sm:$0xff]   ;;  %v6257_v33 = vld [vmem:[%s7235_s25 + $0x5d0] ss:$24 sps:$4 sm:$0xff]  }
  0x9d   : > { %4167 = vmatprep.subr.bf16.mxu0 %v6172_v34  ;;  %3995 = vmatprep.mubr.bf16.mxu1 %v6245_v53  ;;  %v6260_v34 = vld [vmem:[%s7235_s25 + $0xed0] ss:$24 sps:$4 sm:$0xff]   ;;  %v6289_v53 = vld [vmem:[%s7235_s25 + $0x694] ss:$24 sps:$4 sm:$0xff]  }
  0x9e   : > { %4154 = vmatprep.mubr.bf16.mxu0 %v6250_v56  ;;  %v6290_v56 = vld [vmem:[%s7235_s25 + $0xf90] ss:$24 sps:$4 sm:$0xff]  }
  0x9f   : > { %4009 = vmatpush1.bf16.msra.mxu1 %v6167_v35  ;;  %v6268_v35 = vld [vmem:[%s7235_s25 + $0x604] ss:$24 sps:$4 sm:$0xff]  }
  0xa0   : > { %4168 = vmatpush1.bf16.msra.mxu0 %v6170_v36  ;;  %4010 = vmatprep.subr.bf16.mxu1 %v6175_v37  ;;  %v6274_v36 = vld [vmem:[%s7235_s25 + $0xf04] ss:$24 sps:$4 sm:$0xff]   ;;  %v6263_v37 = vld [vmem:[%s7233_s20 + $0x8] ss:$48 sps:$4 sm:$0xff]  }
  0xa1   : > { %4169 = vmatprep.subr.bf16.mxu0 %v6178_v38  ;;  %v6266_v38 = vld [vmem:[%s7235_s25 + $0x600] ss:$24 sps:$4 sm:$0xff]  }
  0xa2   : > { %3996 = vmatmul.mubr.bf16.gmra.mrb[4].mxu1 %v6255_v59  ;;  %v6298_v59 = vld [vmem:[%s7235_s25 + $0xfc4] ss:$24 sps:$4 sm:$0xff]  }
  0xa3   : > { %4011 = vmatpush1.bf16.msra.mxu1 %v6173_v39  ;;  %4155 = vmatmul.mubr.bf16.gmra.mrb[4].mxu0 %v6256_v60  ;;  %v6269_v39 = vld [vmem:[%s7233_s20 + $0x20] ss:$48 sps:$4 sm:$0xff]   ;;  %v6376_v60 = vld [vmem:[%s7233_s20 + $0x2c] ss:$48 sps:$4 sm:$0xff]  }
  0xa4   : > { %4170 = vmatpush1.bf16.msra.mxu0 %v6176_v40  ;;  %4012 = vmatprep.subr.bf16.mxu1 %v6181_v41  ;;  %v6272_v40 = vld [vmem:[%s7235_s25 + $0xf00] ss:$24 sps:$4 sm:$0xff]   ;;  %v6277_v41 = vld [vmem:[%s7235_s25 + $0x634] ss:$24 sps:$4 sm:$0xff]  }
  0xa5   : > { %4171 = vmatprep.subr.bf16.mxu0 %v6184_v42  ;;  %4038 = vmatprep.mubr.bf16.mxu1 %v6265_v1  ;;  %v6280_v42 = vld [vmem:[%s7235_s25 + $0xf34] ss:$24 sps:$4 sm:$0xff]   ;;  %v6299_v1 = vld [vmem:[%s7235_s25 + $0x6f0] ss:$24 sps:$4 sm:$0xff]  }
  0xa6   : > { %4197 = vmatprep.mubr.bf16.mxu0 %v6271_v4  ;;  %v6310_v4 = vld [vmem:[%s7235_s25 + $0x1024] ss:$24 sps:$4 sm:$0xff]  }
  0xa7   : > { %4013 = vmatpush1.bf16.msra.mxu1 %v6179_v43  ;;  %v6275_v43 = vld [vmem:[%s7235_s25 + $0x630] ss:$24 sps:$4 sm:$0xff]  }
  0xa8   : > { %4172 = vmatpush1.bf16.msra.mxu0 %v6182_v44  ;;  %4014 = vmatprep.subr.bf16.mxu1 %v6187_v45  ;;  %v6278_v44 = vld [vmem:[%s7235_s25 + $0xf30] ss:$24 sps:$4 sm:$0xff]   ;;  %v6353_v45 = vld [vmem:[%s7233_s20 + $0x6c] ss:$48 sps:$4 sm:$0xff]  }
  0xa9   : > { %4173 = vmatprep.subr.bf16.mxu0 %v6190_v46  ;;  %v6283_v46 = vld [vmem:[%s7235_s25 + $0x664] ss:$24 sps:$4 sm:$0xff]  }
  0xab   : > { %4015 = vmatpush1.bf16.msra.mxu1 %v6185_v47  ;;  %v6355_v47 = vld [vmem:[%s7233_s20 + $0x84] ss:$48 sps:$4 sm:$0xff]  }
  0xac   : > { %4174 = vmatpush1.bf16.msra.mxu0 %v6188_v48  ;;  %4016 = vmatprep.subr.bf16.mxu1 %v6193_v49  ;;  %v6286_v48 = vld [vmem:[%s7235_s25 + $0xf64] ss:$24 sps:$4 sm:$0xff]   ;;  %v6281_v49 = vld [vmem:[%s7235_s25 + $0x660] ss:$24 sps:$4 sm:$0xff]  }
  0xad   : > { %4175 = vmatprep.subr.bf16.mxu0 %v6196_v50  ;;  %v6284_v50 = vld [vmem:[%s7235_s25 + $0xf60] ss:$24 sps:$4 sm:$0xff]  }
  0xaf   : > { %4017 = vmatpush1.bf16.msra.mxu1 %v6191_v51  ;;  %v6357_v51 = vld [vmem:[%s7233_s20 + $0x68] ss:$48 sps:$4 sm:$0xff]  }
  0xb0   : > { %4176 = vmatpush1.bf16.msra.mxu0 %v6194_v52  ;;  %4018 = vmatprep.subr.bf16.mxu1 %v6199_v54  ;;  %v6361_v52 = vld [vmem:[%s7233_s20 + $0x80] ss:$48 sps:$4 sm:$0xff]   ;;  %v6292_v54 = vld [vmem:[%s7235_s25 + $0xf94] ss:$24 sps:$4 sm:$0xff]  }
  0xb1   : > { %4177 = vmatprep.subr.bf16.mxu0 %v6202_v55  ;;  %v6287_v55 = vld [vmem:[%s7235_s25 + $0x690] ss:$24 sps:$4 sm:$0xff]  }
  0xb3   : > { %4019 = vmatpush1.bf16.msra.mxu1 %v6197_v57  ;;  %v6295_v57 = vld [vmem:[%s7235_s25 + $0x6c4] ss:$24 sps:$4 sm:$0xff]  }
  0xb4   : > { %4178 = vmatpush1.bf16.msra.mxu0 %v6200_v58  ;;  %4020 = vmatprep.subr.bf16.mxu1 %v6205_v61  ;;  %v6373_v58 = vld [vmem:[%s7233_s20 + $0x14] ss:$48 sps:$4 sm:$0xff]   ;;  %v6293_v61 = vld [vmem:[%s7235_s25 + $0x6c0] ss:$24 sps:$4 sm:$0xff]  }
  0xb5   : > { %4179 = vmatprep.subr.bf16.mxu0 %v6208_v62  ;;  %v6296_v62 = vld [vmem:[%s7235_s25 + $0xfc0] ss:$24 sps:$4 sm:$0xff]  }
  0xb7   : > { %4021 = vmatpush1.bf16.msra.mxu1 %v6203_v63  ;;  %v6301_v63 = vld [vmem:[%s7235_s25 + $0x6f4] ss:$24 sps:$4 sm:$0xff]  }
  0xb8   : > { %4180 = vmatpush1.bf16.msra.mxu0 %v6206_v0  ;;  %4022 = vmatprep.subr.bf16.mxu1 %v6211_v2  ;;  %v6304_v0 = vld [vmem:[%s7235_s25 + $0xff4] ss:$24 sps:$4 sm:$0xff]   ;;  %v6302_v2 = vld [vmem:[%s7235_s25 + $0xff0] ss:$24 sps:$4 sm:$0xff]  }
  0xb9   : > { %4181 = vmatprep.subr.bf16.mxu0 %v6214_v3  ;;  %v6307_v3 = vld [vmem:[%s7235_s25 + $0x724] ss:$24 sps:$4 sm:$0xff]  }
  0xbb   : > { %4023 = vmatpush1.bf16.msra.mxu1 %v6209_v5  ;;  %v6305_v5 = vld [vmem:[%s7235_s25 + $0x720] ss:$24 sps:$4 sm:$0xff]  }
  0xbc   : > { %4182 = vmatpush1.bf16.msra.mxu0 %v6212_v6  ;;  %4024 = vmatprep.subr.bf16.mxu1 %v6217_v7  ;;  %v6308_v6 = vld [vmem:[%s7235_s25 + $0x1020] ss:$24 sps:$4 sm:$0xff]   ;;  %v6313_v7 = vld [vmem:[%s7235_s25 + $0x754] ss:$24 sps:$4 sm:$0xff]  }
  0xbd   : > { %4183 = vmatprep.subr.bf16.mxu0 %v6220_v8  ;;  %v6316_v8 = vld [vmem:[%s7235_s25 + $0x1054] ss:$24 sps:$4 sm:$0xff]  }
  0xbf   : > { %4025 = vmatpush1.bf16.msra.mxu1 %v6215_v9  ;;  %v6311_v9 = vld [vmem:[%s7235_s25 + $0x750] ss:$24 sps:$4 sm:$0xff]  }
  0xc0   : > { %4184 = vmatpush1.bf16.msra.mxu0 %v6218_v10  ;;  %4026 = vmatprep.subr.bf16.mxu1 %v6223_v11  ;;  %v6314_v10 = vld [vmem:[%s7235_s25 + $0x1050] ss:$24 sps:$4 sm:$0xff]   ;;  %v6319_v11 = vld [vmem:[%s7235_s25 + $0x784] ss:$24 sps:$4 sm:$0xff]  }
  0xc1   : > { %4185 = vmatprep.subr.bf16.mxu0 %v6226_v12  ;;  %v6322_v12 = vld [vmem:[%s7235_s25 + $0x1084] ss:$24 sps:$4 sm:$0xff]  }
  0xc3   : > { %4027 = vmatpush1.bf16.msra.mxu1 %v6221_v13  ;;  %v6317_v13 = vld [vmem:[%s7235_s25 + $0x780] ss:$24 sps:$4 sm:$0xff]  }
  0xc4   : > { %4186 = vmatpush1.bf16.msra.mxu0 %v6224_v14  ;;  %4028 = vmatprep.subr.bf16.mxu1 %v6229_v15  ;;  %v6320_v14 = vld [vmem:[%s7235_s25 + $0x1080] ss:$24 sps:$4 sm:$0xff]   ;;  %v6325_v15 = vld [vmem:[%s7235_s25 + $0x7b4] ss:$24 sps:$4 sm:$0xff]  }
  0xc5   : > { %4187 = vmatprep.subr.bf16.mxu0 %v6232_v16  ;;  %v6328_v16 = vld [vmem:[%s7235_s25 + $0x10b4] ss:$24 sps:$4 sm:$0xff]  }
  0xc7   : > { %4029 = vmatpush1.bf16.msra.mxu1 %v6227_v17  ;;  %v6323_v17 = vld [vmem:[%s7235_s25 + $0x7b0] ss:$24 sps:$4 sm:$0xff]  }
  0xc8   : > { %4188 = vmatpush1.bf16.msra.mxu0 %v6230_v18  ;;  %4030 = vmatprep.subr.bf16.mxu1 %v6235_v19  ;;  %v6326_v18 = vld [vmem:[%s7235_s25 + $0x10b0] ss:$24 sps:$4 sm:$0xff]   ;;  %v6331_v19 = vld [vmem:[%s7235_s25 + $0x7e4] ss:$24 sps:$4 sm:$0xff]  }
  0xc9   : > { %4189 = vmatprep.subr.bf16.mxu0 %v6238_v20  ;;  %v6334_v20 = vld [vmem:[%s7235_s25 + $0x10e4] ss:$24 sps:$4 sm:$0xff]  }
  0xcb   : > { %4031 = vmatpush1.bf16.msra.mxu1 %v6233_v21  ;;  %v6329_v21 = vld [vmem:[%s7235_s25 + $0x7e0] ss:$24 sps:$4 sm:$0xff]  }
  0xcc   : > { %4190 = vmatpush1.bf16.msra.mxu0 %v6236_v22  ;;  %4032 = vmatprep.subr.bf16.mxu1 %v6241_v23  ;;  %v6332_v22 = vld [vmem:[%s7235_s25 + $0x10e0] ss:$24 sps:$4 sm:$0xff]   ;;  %v6337_v23 = vld [vmem:[%s7235_s25 + $0x814] ss:$24 sps:$4 sm:$0xff]  }
  0xcd   : > { %4191 = vmatprep.subr.bf16.mxu0 %v6244_v24  ;;  %v6340_v24 = vld [vmem:[%s7235_s25 + $0x1114] ss:$24 sps:$4 sm:$0xff]  }
  0xcf   : > { %4033 = vmatpush1.bf16.msra.mxu1 %v6239_v25  ;;  %v6335_v25 = vld [vmem:[%s7235_s25 + $0x810] ss:$24 sps:$4 sm:$0xff]  }
  0xd0   : > { %4192 = vmatpush1.bf16.msra.mxu0 %v6242_v26  ;;  %4034 = vmatprep.subr.bf16.mxu1 %v6249_v27  ;;  %v6338_v26 = vld [vmem:[%s7235_s25 + $0x1110] ss:$24 sps:$4 sm:$0xff]   ;;  %v6343_v27 = vld [vmem:[%s7235_s25 + $0x844] ss:$24 sps:$4 sm:$0xff]  }
  0xd1   : > { %4193 = vmatprep.subr.bf16.mxu0 %v6254_v28  ;;  %v6346_v28 = vld [vmem:[%s7235_s25 + $0x1144] ss:$24 sps:$4 sm:$0xff]  }
  0xd3   : > { %4035 = vmatpush1.bf16.msra.mxu1 %v6247_v29  ;;  %v6341_v29 = vld [vmem:[%s7235_s25 + $0x840] ss:$24 sps:$4 sm:$0xff]  }
  0xd4   : > { %4194 = vmatpush1.bf16.msra.mxu0 %v6252_v30  ;;  %4036 = vmatprep.subr.bf16.mxu1 %v6259_v31  ;;  %v6344_v30 = vld [vmem:[%s7235_s25 + $0x1140] ss:$24 sps:$4 sm:$0xff]   ;;  %v6349_v31 = vld [vmem:[%s7235_s25 + $0x874] ss:$24 sps:$4 sm:$0xff]  }
  0xd5   : > { %4195 = vmatprep.subr.bf16.mxu0 %v6262_v32  ;;  %v6352_v32 = vld [vmem:[%s7235_s25 + $0x1174] ss:$24 sps:$4 sm:$0xff]  }
  0xd7   : > { %4037 = vmatpush1.bf16.msra.mxu1 %v6257_v33  ;;  %v6347_v33 = vld [vmem:[%s7235_s25 + $0x870] ss:$24 sps:$4 sm:$0xff]  }
  0xd8   : > { %4196 = vmatpush1.bf16.msra.mxu0 %v6260_v34  ;;  %4059 = vmatprep.subr.bf16.mxu1 %v6268_v35  ;;  %v6350_v34 = vld [vmem:[%s7235_s25 + $0x1170] ss:$24 sps:$4 sm:$0xff]   ;;  %v6360_v35 = vld [vmem:[%s7235_s25 + $0x8a4] ss:$24 sps:$4 sm:$0xff]  }
  0xd9   : > { %4218 = vmatprep.subr.bf16.mxu0 %v6274_v36  ;;  %v6364_v36 = vld [vmem:[%s7235_s25 + $0x11a4] ss:$24 sps:$4 sm:$0xff]  }
  0xda   : > { %4039 = vmatmul.mubr.bf16.vlgmr.msra.gmra.mrb[0].mxu1 %v6263_v37  ;;  %v6358_v37 = vld [vmem:[%s7235_s25 + $0x8a0] ss:$24 sps:$4 sm:$0xff]  }
  0xdb   : > { %4198 = vmatmul.mubr.bf16.vlgmr.msra.gmra.mrb[0].mxu0 %v6269_v39  ;;  %4060 = vmatpush1.bf16.msra.mxu1 %v6266_v38  ;;  %v6362_v38 = vld [vmem:[%s7235_s25 + $0x11a0] ss:$24 sps:$4 sm:$0xff]   ;;  %v6367_v39 = vld [vmem:[%s7235_s25 + $0x8d4] ss:$24 sps:$4 sm:$0xff]  }
  0xdc   : > { %4219 = vmatpush1.bf16.msra.mxu0 %v6272_v40  ;;  %4061 = vmatprep.subr.bf16.mxu1 %v6277_v41  ;;  %v6370_v40 = vld [vmem:[%s7235_s25 + $0x11d4] ss:$24 sps:$4 sm:$0xff]   ;;  %v6365_v41 = vld [vmem:[%s7235_s25 + $0x8d0] ss:$24 sps:$4 sm:$0xff]  }
  0xdd   : > { %4220 = vmatprep.subr.bf16.mxu0 %v6280_v42  ;;  %4048 = vmatprep.mubr.bf16.mxu1 %v6353_v45  ;;  %v6368_v42 = vld [vmem:[%s7235_s25 + $0x11d0] ss:$24 sps:$4 sm:$0xff]  }
  0xde   : > { %4207 = vmatprep.mubr.bf16.mxu0 %v6355_v47  ;;  %v6371_v45 = vld [vmem:[%s7233_s20 + $0x10] ss:$48 sps:$4 sm:$0xff]  }
  0xdf   : > { %4062 = vmatpush1.bf16.msra.mxu1 %v6275_v43  ;;  %v6379_v43 = vld [vmem:[%s7235_s25 + $0xc] ss:$24 sps:$4 sm:$0xff]   ;;  %v6377_v47 = vld [vmem:[%s7235_s25 + $0x8] ss:$24 sps:$4 sm:$0xff]  }
  0xe0   : > { %4221 = vmatpush1.bf16.msra.mxu0 %v6278_v44  ;;  %4063 = vmatprep.subr.bf16.mxu1 %v6283_v46  ;;  %v6382_v44 = vld [vmem:[%s7235_s25 + $0x14] ss:$24 sps:$4 sm:$0xff]   ;;  %v6374_v46 = vld [vmem:[%s7233_s20 + $0x28] ss:$48 sps:$4 sm:$0xff]  }
  0xe1   : > { %4222 = vmatprep.subr.bf16.mxu0 %v6286_v48  ;;  %v6380_v48 = vld [vmem:[%s7235_s25 + $0x10] ss:$24 sps:$4 sm:$0xff]  }
  0xe2   : > { %4049 = vmatmul.mubr.bf16.gmra.mrb[4].mxu1 %v6357_v51  ;;  %v6389_v51 = vld [vmem:[%s7233_s20 + $0x74] ss:$48 sps:$4 sm:$0xff]  }
  0xe3   : > { %4208 = vmatmul.mubr.bf16.gmra.mrb[4].mxu0 %v6361_v52  ;;  %4064 = vmatpush1.bf16.msra.mxu1 %v6281_v49  ;;  %v6385_v49 = vld [vmem:[%s7235_s25 + $0x3c] ss:$24 sps:$4 sm:$0xff]  }
  0xe4   : > { %4223 = vmatpush1.bf16.msra.mxu0 %v6284_v50  ;;  %4065 = vmatprep.subr.bf16.mxu1 %v6289_v53  ;;  %v6388_v50 = vld [vmem:[%s7235_s25 + $0x44] ss:$24 sps:$4 sm:$0xff]   ;;  %v6383_v53 = vld [vmem:[%s7235_s25 + $0x38] ss:$24 sps:$4 sm:$0xff]  }
  0xe5   : > { %4224 = vmatprep.subr.bf16.mxu0 %v6292_v54  ;;  %4091 = vmatprep.mubr.bf16.mxu1 %v6373_v58  ;;  %v6391_v52 = vld [vmem:[%s7233_s20 + $0x8c] ss:$48 sps:$4 sm:$0xff]   ;;  %v6386_v54 = vld [vmem:[%s7235_s25 + $0x40] ss:$24 sps:$4 sm:$0xff]  }
  0xe6   : > { %4250 = vmatprep.mubr.bf16.mxu0 %v6376_v60  ;;  %v6394_v58 = vld [vmem:[%s7233_s20 + $0x88] ss:$48 sps:$4 sm:$0xff]  }
  0xe7   : > { %4066 = vmatpush1.bf16.msra.mxu1 %v6287_v55  ;;  %v6397_v55 = vld [vmem:[%s7235_s25 + $0x6c] ss:$24 sps:$4 sm:$0xff]   ;;  %v6398_v60 = vld [vmem:[%s7235_s25 + $0x70] ss:$24 sps:$4 sm:$0xff]  }
  0xe8   : > { %4225 = vmatpush1.bf16.msra.mxu0 %v6290_v56  ;;  %4067 = vmatprep.subr.bf16.mxu1 %v6295_v57  ;;  %v6400_v56 = vld [vmem:[%s7235_s25 + $0x74] ss:$24 sps:$4 sm:$0xff]   ;;  %v6393_v57 = vld [vmem:[%s7233_s20 + $0x70] ss:$48 sps:$4 sm:$0xff]  }
  0xe9   : > { %4226 = vmatprep.subr.bf16.mxu0 %v6298_v59  ;;  %v6395_v59 = vld [vmem:[%s7235_s25 + $0x68] ss:$24 sps:$4 sm:$0xff]  }
  0xeb   : > { %4068 = vmatpush1.bf16.msra.mxu1 %v6293_v61  ;;  %v6403_v61 = vld [vmem:[%s7235_s25 + $0x9c] ss:$24 sps:$4 sm:$0xff]  }
  0xec   : > { %4227 = vmatpush1.bf16.msra.mxu0 %v6296_v62  ;;  %4069 = vmatprep.subr.bf16.mxu1 %v6301_v63  ;;  %v6406_v62 = vld [vmem:[%s7235_s25 + $0xa4] ss:$24 sps:$4 sm:$0xff]   ;;  %v6401_v63 = vld [vmem:[%s7235_s25 + $0x98] ss:$24 sps:$4 sm:$0xff]  }
  0xed   : > { %4228 = vmatprep.subr.bf16.mxu0 %v6304_v0  ;;  %v6404_v0 = vld [vmem:[%s7235_s25 + $0xa0] ss:$24 sps:$4 sm:$0xff]  }
  0xef   : > { %4070 = vmatpush1.bf16.msra.mxu1 %v6299_v1  ;;  %v6409_v1 = vld [vmem:[%s7235_s25 + $0xcc] ss:$24 sps:$4 sm:$0xff]  }
  0xf0   : > { %4229 = vmatpush1.bf16.msra.mxu0 %v6302_v2  ;;  %4071 = vmatprep.subr.bf16.mxu1 %v6307_v3  ;;  %v6412_v2 = vld [vmem:[%s7235_s25 + $0xd4] ss:$24 sps:$4 sm:$0xff]  }
  0xf1   : > { %4230 = vmatprep.subr.bf16.mxu0 %v6310_v4  ;;  %v6959_v3 = vld [vmem:[%s7233_s20 + $0x4] ss:$48 sps:$4 sm:$0xff]   ;;  %v6407_v4 = vld [vmem:[%s7235_s25 + $0xc8] ss:$24 sps:$4 sm:$0xff]  }
  0xf3   : > { %4072 = vmatpush1.bf16.msra.mxu1 %v6305_v5  ;;  %v6410_v5 = vld [vmem:[%s7235_s25 + $0xd0] ss:$24 sps:$4 sm:$0xff]  }
  0xf4   : > { %4231 = vmatpush1.bf16.msra.mxu0 %v6308_v6  ;;  %4073 = vmatprep.subr.bf16.mxu1 %v6313_v7  ;;  %v6415_v6 = vld [vmem:[%s7235_s25 + $0xfc] ss:$24 sps:$4 sm:$0xff]  }
  0xf5   : > { %4232 = vmatprep.subr.bf16.mxu0 %v6316_v8  ;;  %v6418_v7 = vld [vmem:[%s7235_s25 + $0x104] ss:$24 sps:$4 sm:$0xff]   ;;  %v6413_v8 = vld [vmem:[%s7235_s25 + $0xf8] ss:$24 sps:$4 sm:$0xff]  }
  0xf7   : > { %4074 = vmatpush1.bf16.msra.mxu1 %v6311_v9  ;;  %v6416_v9 = vld [vmem:[%s7235_s25 + $0x100] ss:$24 sps:$4 sm:$0xff]  }
  0xf8   : > { %4233 = vmatpush1.bf16.msra.mxu0 %v6314_v10  ;;  %4075 = vmatprep.subr.bf16.mxu1 %v6319_v11  ;;  %v6421_v10 = vld [vmem:[%s7235_s25 + $0x12c] ss:$24 sps:$4 sm:$0xff]  }
  0xf9   : > { %4234 = vmatprep.subr.bf16.mxu0 %v6322_v12  ;;  %v6424_v11 = vld [vmem:[%s7235_s25 + $0x134] ss:$24 sps:$4 sm:$0xff]   ;;  %v6419_v12 = vld [vmem:[%s7235_s25 + $0x128] ss:$24 sps:$4 sm:$0xff]  }
  0xfb   : > { %4076 = vmatpush1.bf16.msra.mxu1 %v6317_v13  ;;  %v6422_v13 = vld [vmem:[%s7235_s25 + $0x130] ss:$24 sps:$4 sm:$0xff]  }
  0xfc   : > { %4235 = vmatpush1.bf16.msra.mxu0 %v6320_v14  ;;  %4077 = vmatprep.subr.bf16.mxu1 %v6325_v15  ;;  %v6427_v14 = vld [vmem:[%s7235_s25 + $0x15c] ss:$24 sps:$4 sm:$0xff]  }
  0xfd   : > { %4236 = vmatprep.subr.bf16.mxu0 %v6328_v16  ;;  %v6430_v15 = vld [vmem:[%s7235_s25 + $0x164] ss:$24 sps:$4 sm:$0xff]   ;;  %v6425_v16 = vld [vmem:[%s7235_s25 + $0x158] ss:$24 sps:$4 sm:$0xff]  }
  0xff   : > { %4078 = vmatpush1.bf16.msra.mxu1 %v6323_v17  ;;  %v6428_v17 = vld [vmem:[%s7235_s25 + $0x160] ss:$24 sps:$4 sm:$0xff]  }
 0x100   : > { %4237 = vmatpush1.bf16.msra.mxu0 %v6326_v18  ;;  %4079 = vmatprep.subr.bf16.mxu1 %v6331_v19  ;;  %v6433_v18 = vld [vmem:[%s7235_s25 + $0x18c] ss:$24 sps:$4 sm:$0xff]  }
 0x101   : > { %4238 = vmatprep.subr.bf16.mxu0 %v6334_v20  ;;  %v6436_v19 = vld [vmem:[%s7235_s25 + $0x194] ss:$24 sps:$4 sm:$0xff]   ;;  %v6431_v20 = vld [vmem:[%s7235_s25 + $0x188] ss:$24 sps:$4 sm:$0xff]  }
 0x103   : > { %4080 = vmatpush1.bf16.msra.mxu1 %v6329_v21  ;;  %v6434_v21 = vld [vmem:[%s7235_s25 + $0x190] ss:$24 sps:$4 sm:$0xff]  }
 0x104   : > { %4239 = vmatpush1.bf16.msra.mxu0 %v6332_v22  ;;  %4081 = vmatprep.subr.bf16.mxu1 %v6337_v23  ;;  %v6439_v22 = vld [vmem:[%s7235_s25 + $0x1bc] ss:$24 sps:$4 sm:$0xff]  }
 0x105   : > { %4240 = vmatprep.subr.bf16.mxu0 %v6340_v24  ;;  %v6442_v23 = vld [vmem:[%s7235_s25 + $0x1c4] ss:$24 sps:$4 sm:$0xff]   ;;  %v6437_v24 = vld [vmem:[%s7235_s25 + $0x1b8] ss:$24 sps:$4 sm:$0xff]  }
 0x107   : > { %4082 = vmatpush1.bf16.msra.mxu1 %v6335_v25  ;;  %v6440_v25 = vld [vmem:[%s7235_s25 + $0x1c0] ss:$24 sps:$4 sm:$0xff]  }
 0x108   : > { %4241 = vmatpush1.bf16.msra.mxu0 %v6338_v26  ;;  %4083 = vmatprep.subr.bf16.mxu1 %v6343_v27  ;;  %v6445_v26 = vld [vmem:[%s7235_s25 + $0x1ec] ss:$24 sps:$4 sm:$0xff]  }
 0x109   : > { %4242 = vmatprep.subr.bf16.mxu0 %v6346_v28  ;;  %v6448_v27 = vld [vmem:[%s7235_s25 + $0x1f4] ss:$24 sps:$4 sm:$0xff]   ;;  %v6443_v28 = vld [vmem:[%s7235_s25 + $0x1e8] ss:$24 sps:$4 sm:$0xff]  }
 0x10b   : > { %4084 = vmatpush1.bf16.msra.mxu1 %v6341_v29  ;;  %v6446_v29 = vld [vmem:[%s7235_s25 + $0x1f0] ss:$24 sps:$4 sm:$0xff]  }
 0x10c   : > { %4243 = vmatpush1.bf16.msra.mxu0 %v6344_v30  ;;  %4085 = vmatprep.subr.bf16.mxu1 %v6349_v31  ;;  %v6451_v30 = vld [vmem:[%s7235_s25 + $0x21c] ss:$24 sps:$4 sm:$0xff]  }
 0x10d   : > { %4244 = vmatprep.subr.bf16.mxu0 %v6352_v32  ;;  %v6454_v31 = vld [vmem:[%s7235_s25 + $0x224] ss:$24 sps:$4 sm:$0xff]   ;;  %v6449_v32 = vld [vmem:[%s7235_s25 + $0x218] ss:$24 sps:$4 sm:$0xff]  }
 0x10f   : > { %4086 = vmatpush1.bf16.msra.mxu1 %v6347_v33  ;;  %v6452_v33 = vld [vmem:[%s7235_s25 + $0x220] ss:$24 sps:$4 sm:$0xff]  }
 0x110   : > { %4245 = vmatpush1.bf16.msra.mxu0 %v6350_v34  ;;  %4087 = vmatprep.subr.bf16.mxu1 %v6360_v35  ;;  %v6457_v34 = vld [vmem:[%s7235_s25 + $0x24c] ss:$24 sps:$4 sm:$0xff]  }
 0x111   : > { %4246 = vmatprep.subr.bf16.mxu0 %v6364_v36  ;;  %v6460_v35 = vld [vmem:[%s7235_s25 + $0x254] ss:$24 sps:$4 sm:$0xff]   ;;  %v6455_v36 = vld [vmem:[%s7235_s25 + $0x248] ss:$24 sps:$4 sm:$0xff]  }
 0x113   : > { %4088 = vmatpush1.bf16.msra.mxu1 %v6358_v37  ;;  %v6458_v37 = vld [vmem:[%s7235_s25 + $0x250] ss:$24 sps:$4 sm:$0xff]  }
 0x114   : > { %4247 = vmatpush1.bf16.msra.mxu0 %v6362_v38  ;;  %4089 = vmatprep.subr.bf16.mxu1 %v6367_v39  ;;  %v6463_v38 = vld [vmem:[%s7235_s25 + $0x27c] ss:$24 sps:$4 sm:$0xff]  }
 0x115   : > { %4248 = vmatprep.subr.bf16.mxu0 %v6370_v40  ;;  %v6466_v39 = vld [vmem:[%s7235_s25 + $0x284] ss:$24 sps:$4 sm:$0xff]   ;;  %v6461_v40 = vld [vmem:[%s7235_s25 + $0x278] ss:$24 sps:$4 sm:$0xff]  }
 0x117   : > { %4090 = vmatpush1.bf16.msra.mxu1 %v6365_v41  ;;  %v6464_v41 = vld [vmem:[%s7235_s25 + $0x280] ss:$24 sps:$4 sm:$0xff]  }
 0x118   : > { %4249 = vmatpush1.bf16.msra.mxu0 %v6368_v42  ;;  %4271 = vmatprep.subr.bf16.mxu1 %v6379_v43  ;;  %v6469_v42 = vld [vmem:[%s7235_s25 + $0x2ac] ss:$24 sps:$4 sm:$0xff]  }
 0x119   : > { %4589 = vmatprep.subr.bf16.mxu0 %v6382_v44  ;;  %v6472_v43 = vld [vmem:[%s7235_s25 + $0x2b4] ss:$24 sps:$4 sm:$0xff]   ;;  %v6467_v44 = vld [vmem:[%s7235_s25 + $0x2a8] ss:$24 sps:$4 sm:$0xff]  }
 0x11a   : > { %4092 = vmatmul.mubr.bf16.vlgmr.msra.gmra.mrb[0].mxu1 %v6371_v45  ;;  %v6470_v45 = vld [vmem:[%s7235_s25 + $0x2b0] ss:$24 sps:$4 sm:$0xff]  }
 0x11b   : > { %4251 = vmatmul.mubr.bf16.vlgmr.msra.gmra.mrb[0].mxu0 %v6374_v46  ;;  %4272 = vmatpush1.bf16.msra.mxu1 %v6377_v47  ;;  %v6475_v46 = vld [vmem:[%s7235_s25 + $0x2dc] ss:$24 sps:$4 sm:$0xff]  }
 0x11c   : > { %4590 = vmatpush1.bf16.msra.mxu0 %v6380_v48  ;;  %4273 = vmatprep.subr.bf16.mxu1 %v6385_v49  ;;  %v6478_v47 = vld [vmem:[%s7235_s25 + $0x2e4] ss:$24 sps:$4 sm:$0xff]   ;;  %v6473_v48 = vld [vmem:[%s7235_s25 + $0x2d8] ss:$24 sps:$4 sm:$0xff]  }
 0x11d   : > { %4591 = vmatprep.subr.bf16.mxu0 %v6388_v50  ;;  %4101 = vmatprep.mubr.bf16.mxu1 %v6389_v51  ;;  %v6476_v49 = vld [vmem:[%s7235_s25 + $0x2e0] ss:$24 sps:$4 sm:$0xff]   ;;  %v6481_v50 = vld [vmem:[%s7235_s25 + $0x30c] ss:$24 sps:$4 sm:$0xff]  }
 0x11e   : > { %4260 = vmatprep.mubr.bf16.mxu0 %v6391_v52  ;;  %v6484_v51 = vld [vmem:[%s7235_s25 + $0x314] ss:$24 sps:$4 sm:$0xff]   ;;  %v6479_v52 = vld [vmem:[%s7235_s25 + $0x308] ss:$24 sps:$4 sm:$0xff]  }
 0x11f   : > { %4274 = vmatpush1.bf16.msra.mxu1 %v6383_v53  ;;  %v6482_v53 = vld [vmem:[%s7235_s25 + $0x310] ss:$24 sps:$4 sm:$0xff]  }
 0x120   : > { %4592 = vmatpush1.bf16.msra.mxu0 %v6386_v54  ;;  %4275 = vmatprep.subr.bf16.mxu1 %v6397_v55  ;;  %v6487_v54 = vld [vmem:[%s7235_s25 + $0x33c] ss:$24 sps:$4 sm:$0xff]  }
 0x121   : > { %4593 = vmatprep.subr.bf16.mxu0 %v6400_v56  ;;  %v6490_v55 = vld [vmem:[%s7235_s25 + $0x344] ss:$24 sps:$4 sm:$0xff]   ;;  %v6960_v56 = vld [vmem:[%s7233_s20] ss:$48 sps:$4 sm:$0xff]  }
 0x122   : > { %4102 = vmatmul.mubr.bf16.gmra.mrb[4].mxu1 %v6393_v57  ;;  %v6485_v57 = vld [vmem:[%s7235_s25 + $0x338] ss:$24 sps:$4 sm:$0xff]  }
 0x123   : > { %4261 = vmatmul.mubr.bf16.gmra.mrb[4].mxu0 %v6394_v58  ;;  %4276 = vmatpush1.bf16.msra.mxu1 %v6395_v59  ;;  %v6488_v58 = vld [vmem:[%s7235_s25 + $0x340] ss:$24 sps:$4 sm:$0xff]   ;;  %v6493_v59 = vld [vmem:[%s7235_s25 + $0x36c] ss:$24 sps:$4 sm:$0xff]  }
 0x124   : > { %4594 = vmatpush1.bf16.msra.mxu0 %v6398_v60  ;;  %4277 = vmatprep.subr.bf16.mxu1 %v6403_v61  ;;  %v6496_v60 = vld [vmem:[%s7235_s25 + $0x374] ss:$24 sps:$4 sm:$0xff]  }
 0x125   : > { %4595 = vmatprep.subr.bf16.mxu0 %v6406_v62  ;;  %4303 = vmatprep.mubr.bf16.mxu1 %v6959_v3  ;;  %v6961_v61 = vld [vmem:[%s7233_s20 + $0x64] ss:$48 sps:$4 sm:$0xff]   ;;  %v6491_v62 = vld [vmem:[%s7235_s25 + $0x368] ss:$24 sps:$4 sm:$0xff]  }
 0x126   : > { %4621 = vmatprep.mubr.bf16.mxu0 %v6959_v3  ;;  %v6500_v3 = vld [vmem:[%s7235_s25 + $0x3a0] ss:$24 sps:$4 sm:$0xff]  }
 0x127   : > { %4278 = vmatpush1.bf16.msra.mxu1 %v6401_v63  ;;  %v6494_v63 = vld [vmem:[%s7235_s25 + $0x370] ss:$24 sps:$4 sm:$0xff]  }
 0x128   : > { %4596 = vmatpush1.bf16.msra.mxu0 %v6404_v0  ;;  %4279 = vmatprep.subr.bf16.mxu1 %v6409_v1  ;;  %v6499_v0 = vld [vmem:[%s7235_s25 + $0x39c] ss:$24 sps:$4 sm:$0xff]  }
 0x129   : > { %4597 = vmatprep.subr.bf16.mxu0 %v6412_v2  ;;  %v6502_v1 = vld [vmem:[%s7235_s25 + $0x3a4] ss:$24 sps:$4 sm:$0xff]   ;;  %v6497_v2 = vld [vmem:[%s7235_s25 + $0x398] ss:$24 sps:$4 sm:$0xff]  }
 0x12b   : > { %4280 = vmatpush1.bf16.msra.mxu1 %v6407_v4  ;;  %v6962_v4 = vld [vmem:[%s7233_s20 + $0x60] ss:$48 sps:$4 sm:$0xff]  }
 0x12c   : > { %4598 = vmatpush1.bf16.msra.mxu0 %v6410_v5  ;;  %4281 = vmatprep.subr.bf16.mxu1 %v6415_v6  ;;  %v6505_v5 = vld [vmem:[%s7235_s25 + $0x3cc] ss:$24 sps:$4 sm:$0xff]  }
 0x12d   : > { %4599 = vmatprep.subr.bf16.mxu0 %v6418_v7  ;;  %v6508_v6 = vld [vmem:[%s7235_s25 + $0x3d4] ss:$24 sps:$4 sm:$0xff]  }
 0x12e   : > { %v6963_v7 = vld [vmem:[%s7233_s20 + $0xc] ss:$48 sps:$4 sm:$0xff]  }
 0x12f   : > { %4282 = vmatpush1.bf16.msra.mxu1 %v6413_v8  ;;  %v6503_v8 = vld [vmem:[%s7235_s25 + $0x3c8] ss:$24 sps:$4 sm:$0xff]  }
 0x130   : > { %4600 = vmatpush1.bf16.msra.mxu0 %v6416_v9  ;;  %4283 = vmatprep.subr.bf16.mxu1 %v6421_v10  ;;  %v6506_v9 = vld [vmem:[%s7235_s25 + $0x3d0] ss:$24 sps:$4 sm:$0xff]   ;;  %v6511_v10 = vld [vmem:[%s7235_s25 + $0x3fc] ss:$24 sps:$4 sm:$0xff]  }
 0x131   : > { %4601 = vmatprep.subr.bf16.mxu0 %v6424_v11  ;;  %v6514_v11 = vld [vmem:[%s7235_s25 + $0x404] ss:$24 sps:$4 sm:$0xff]  }
 0x133   : > { %4284 = vmatpush1.bf16.msra.mxu1 %v6419_v12  ;;  %v6509_v12 = vld [vmem:[%s7235_s25 + $0x3f8] ss:$24 sps:$4 sm:$0xff]  }
 0x134   : > { %4602 = vmatpush1.bf16.msra.mxu0 %v6422_v13  ;;  %4285 = vmatprep.subr.bf16.mxu1 %v6427_v14  ;;  %v6512_v13 = vld [vmem:[%s7235_s25 + $0x400] ss:$24 sps:$4 sm:$0xff]   ;;  %v6517_v14 = vld [vmem:[%s7235_s25 + $0x42c] ss:$24 sps:$4 sm:$0xff]  }
 0x135   : > { %4603 = vmatprep.subr.bf16.mxu0 %v6430_v15  ;;  %v6520_v15 = vld [vmem:[%s7235_s25 + $0x434] ss:$24 sps:$4 sm:$0xff]  }
 0x137   : > { %4286 = vmatpush1.bf16.msra.mxu1 %v6425_v16  ;;  %v6515_v16 = vld [vmem:[%s7235_s25 + $0x428] ss:$24 sps:$4 sm:$0xff]  }
 0x138   : > { %4604 = vmatpush1.bf16.msra.mxu0 %v6428_v17  ;;  %4287 = vmatprep.subr.bf16.mxu1 %v6433_v18  ;;  %v6518_v17 = vld [vmem:[%s7235_s25 + $0x430] ss:$24 sps:$4 sm:$0xff]   ;;  %v6523_v18 = vld [vmem:[%s7235_s25 + $0x45c] ss:$24 sps:$4 sm:$0xff]  }
 0x139   : > { %4605 = vmatprep.subr.bf16.mxu0 %v6436_v19  ;;  %v6526_v19 = vld [vmem:[%s7235_s25 + $0x464] ss:$24 sps:$4 sm:$0xff]  }
 0x13b   : > { %4288 = vmatpush1.bf16.msra.mxu1 %v6431_v20  ;;  %v6521_v20 = vld [vmem:[%s7235_s25 + $0x458] ss:$24 sps:$4 sm:$0xff]  }
 0x13c   : > { %4606 = vmatpush1.bf16.msra.mxu0 %v6434_v21  ;;  %4289 = vmatprep.subr.bf16.mxu1 %v6439_v22  ;;  %v6524_v21 = vld [vmem:[%s7235_s25 + $0x460] ss:$24 sps:$4 sm:$0xff]   ;;  %v6529_v22 = vld [vmem:[%s7235_s25 + $0x48c] ss:$24 sps:$4 sm:$0xff]  }
 0x13d   : > { %4607 = vmatprep.subr.bf16.mxu0 %v6442_v23  ;;  %v6532_v23 = vld [vmem:[%s7235_s25 + $0x494] ss:$24 sps:$4 sm:$0xff]  }
 0x13f   : > { %4290 = vmatpush1.bf16.msra.mxu1 %v6437_v24  ;;  %v6527_v24 = vld [vmem:[%s7235_s25 + $0x488] ss:$24 sps:$4 sm:$0xff]  }
 0x140   : > { %4608 = vmatpush1.bf16.msra.mxu0 %v6440_v25  ;;  %4291 = vmatprep.subr.bf16.mxu1 %v6445_v26  ;;  %v6530_v25 = vld [vmem:[%s7235_s25 + $0x490] ss:$24 sps:$4 sm:$0xff]   ;;  %v6535_v26 = vld [vmem:[%s7235_s25 + $0x4bc] ss:$24 sps:$4 sm:$0xff]  }
 0x141   : > { %4609 = vmatprep.subr.bf16.mxu0 %v6448_v27  ;;  %v6538_v27 = vld [vmem:[%s7235_s25 + $0x4c4] ss:$24 sps:$4 sm:$0xff]  }
 0x143   : > { %4292 = vmatpush1.bf16.msra.mxu1 %v6443_v28  ;;  %v6533_v28 = vld [vmem:[%s7235_s25 + $0x4b8] ss:$24 sps:$4 sm:$0xff]  }
 0x144   : > { %4610 = vmatpush1.bf16.msra.mxu0 %v6446_v29  ;;  %4293 = vmatprep.subr.bf16.mxu1 %v6451_v30  ;;  %v6536_v29 = vld [vmem:[%s7235_s25 + $0x4c0] ss:$24 sps:$4 sm:$0xff]   ;;  %v6541_v30 = vld [vmem:[%s7235_s25 + $0x4ec] ss:$24 sps:$4 sm:$0xff]  }
 0x145   : > { %4611 = vmatprep.subr.bf16.mxu0 %v6454_v31  ;;  %v6544_v31 = vld [vmem:[%s7235_s25 + $0x4f4] ss:$24 sps:$4 sm:$0xff]  }
 0x147   : > { %4294 = vmatpush1.bf16.msra.mxu1 %v6449_v32  ;;  %v6539_v32 = vld [vmem:[%s7235_s25 + $0x4e8] ss:$24 sps:$4 sm:$0xff]  }
 0x148   : > { %4612 = vmatpush1.bf16.msra.mxu0 %v6452_v33  ;;  %4295 = vmatprep.subr.bf16.mxu1 %v6457_v34  ;;  %v6542_v33 = vld [vmem:[%s7235_s25 + $0x4f0] ss:$24 sps:$4 sm:$0xff]   ;;  %v6547_v34 = vld [vmem:[%s7235_s25 + $0x51c] ss:$24 sps:$4 sm:$0xff]  }
 0x149   : > { %4613 = vmatprep.subr.bf16.mxu0 %v6460_v35  ;;  %v6550_v35 = vld [vmem:[%s7235_s25 + $0x524] ss:$24 sps:$4 sm:$0xff]  }
 0x14b   : > { %4296 = vmatpush1.bf16.msra.mxu1 %v6455_v36  ;;  %v6545_v36 = vld [vmem:[%s7235_s25 + $0x518] ss:$24 sps:$4 sm:$0xff]  }
 0x14c   : > { %4614 = vmatpush1.bf16.msra.mxu0 %v6458_v37  ;;  %4297 = vmatprep.subr.bf16.mxu1 %v6463_v38  ;;  %v6548_v37 = vld [vmem:[%s7235_s25 + $0x520] ss:$24 sps:$4 sm:$0xff]   ;;  %v6553_v38 = vld [vmem:[%s7235_s25 + $0x54c] ss:$24 sps:$4 sm:$0xff]  }
 0x14d   : > { %4615 = vmatprep.subr.bf16.mxu0 %v6466_v39  ;;  %v6556_v39 = vld [vmem:[%s7235_s25 + $0x554] ss:$24 sps:$4 sm:$0xff]  }
 0x14f   : > { %4298 = vmatpush1.bf16.msra.mxu1 %v6461_v40  ;;  %v6551_v40 = vld [vmem:[%s7235_s25 + $0x548] ss:$24 sps:$4 sm:$0xff]  }
 0x150   : > { %4616 = vmatpush1.bf16.msra.mxu0 %v6464_v41  ;;  %4299 = vmatprep.subr.bf16.mxu1 %v6469_v42  ;;  %v6554_v41 = vld [vmem:[%s7235_s25 + $0x550] ss:$24 sps:$4 sm:$0xff]   ;;  %v6559_v42 = vld [vmem:[%s7235_s25 + $0x57c] ss:$24 sps:$4 sm:$0xff]  }
 0x151   : > { %4617 = vmatprep.subr.bf16.mxu0 %v6472_v43  ;;  %v6562_v43 = vld [vmem:[%s7235_s25 + $0x584] ss:$24 sps:$4 sm:$0xff]  }
 0x153   : > { %4300 = vmatpush1.bf16.msra.mxu1 %v6467_v44  ;;  %v6557_v44 = vld [vmem:[%s7235_s25 + $0x578] ss:$24 sps:$4 sm:$0xff]  }
 0x154   : > { %4618 = vmatpush1.bf16.msra.mxu0 %v6470_v45  ;;  %4301 = vmatprep.subr.bf16.mxu1 %v6475_v46  ;;  %v6560_v45 = vld [vmem:[%s7235_s25 + $0x580] ss:$24 sps:$4 sm:$0xff]   ;;  %v6565_v46 = vld [vmem:[%s7235_s25 + $0x5ac] ss:$24 sps:$4 sm:$0xff]  }
 0x155   : > { %4619 = vmatprep.subr.bf16.mxu0 %v6478_v47  ;;  %v6568_v47 = vld [vmem:[%s7235_s25 + $0x5b4] ss:$24 sps:$4 sm:$0xff]  }
 0x157   : > { %4302 = vmatpush1.bf16.msra.mxu1 %v6473_v48  ;;  %v6563_v48 = vld [vmem:[%s7235_s25 + $0x5a8] ss:$24 sps:$4 sm:$0xff]  }
 0x158   : > { %4620 = vmatpush1.bf16.msra.mxu0 %v6476_v49  ;;  %4324 = vmatprep.subr.bf16.mxu1 %v6481_v50  ;;  %v6566_v49 = vld [vmem:[%s7235_s25 + $0x5b0] ss:$24 sps:$4 sm:$0xff]   ;;  %v6571_v50 = vld [vmem:[%s7235_s25 + $0x5dc] ss:$24 sps:$4 sm:$0xff]  }
 0x159   : > { %4642 = vmatprep.subr.bf16.mxu0 %v6484_v51  ;;  %v6574_v51 = vld [vmem:[%s7235_s25 + $0x5e4] ss:$24 sps:$4 sm:$0xff]  }
 0x15a   : > { %4304 = vmatmul.mubr.bf16.vlgmr.msra.gmra.mrb[8].mxu1 %v6960_v56 }
 0x15b   : > { %4622 = vmatmul.mubr.bf16.vlgmr.msra.gmra.mrb[8].mxu0 %v6960_v56  ;;  %4325 = vmatpush1.bf16.msra.mxu1 %v6479_v52  ;;  %v6569_v52 = vld [vmem:[%s7235_s25 + $0x5d8] ss:$24 sps:$4 sm:$0xff]   ;;  %v6575_v56 = vld [vmem:[%s7235_s25 + $0x608] ss:$24 sps:$4 sm:$0xff]  }
 0x15c   : > { %4643 = vmatpush1.bf16.msra.mxu0 %v6482_v53  ;;  %4326 = vmatprep.subr.bf16.mxu1 %v6487_v54  ;;  %v6572_v53 = vld [vmem:[%s7235_s25 + $0x5e0] ss:$24 sps:$4 sm:$0xff]   ;;  %v6577_v54 = vld [vmem:[%s7235_s25 + $0x60c] ss:$24 sps:$4 sm:$0xff]  }
 0x15d   : > { %4644 = vmatprep.subr.bf16.mxu0 %v6490_v55  ;;  %4313 = vmatprep.mubr.bf16.mxu1 %v6961_v61  ;;  %v6580_v55 = vld [vmem:[%s7235_s25 + $0x614] ss:$24 sps:$4 sm:$0xff]  }
 0x15e   : > { %4631 = vmatprep.mubr.bf16.mxu0 %v6961_v61  ;;  %v6581_v61 = vld [vmem:[%s7235_s25 + $0x638] ss:$24 sps:$4 sm:$0xff]  }
 0x15f   : > { %4327 = vmatpush1.bf16.msra.mxu1 %v6485_v57  ;;  %v6578_v57 = vld [vmem:[%s7235_s25 + $0x610] ss:$24 sps:$4 sm:$0xff]  }
 0x160   : > { %4645 = vmatpush1.bf16.msra.mxu0 %v6488_v58  ;;  %4328 = vmatprep.subr.bf16.mxu1 %v6493_v59  ;;  %v6583_v58 = vld [vmem:[%s7235_s25 + $0x63c] ss:$24 sps:$4 sm:$0xff]  }
 0x161   : > { %4646 = vmatprep.subr.bf16.mxu0 %v6496_v60  ;;  %v6586_v59 = vld [vmem:[%s7235_s25 + $0x644] ss:$24 sps:$4 sm:$0xff]   ;;  %v6964_v60 = vld [vmem:[%s7233_s20 + $0x8] ss:$48 sps:$4 sm:$0xff]  }
 0x162   : > { %4314 = vmatmul.mubr.bf16.gmra.mrb[12].mxu1 %v6962_v4 }
 0x163   : > { %4632 = vmatmul.mubr.bf16.gmra.mrb[12].mxu0 %v6962_v4  ;;  %4329 = vmatpush1.bf16.msra.mxu1 %v6491_v62  ;;  %v6584_v62 = vld [vmem:[%s7235_s25 + $0x640] ss:$24 sps:$4 sm:$0xff]   ;;  %v6595_v4 = vld [vmem:[%s7235_s25 + $0x69c] ss:$24 sps:$4 sm:$0xff]  }
 0x164   : > { %4647 = vmatpush1.bf16.msra.mxu0 %v6494_v63  ;;  %4330 = vmatprep.subr.bf16.mxu1 %v6499_v0  ;;  %v6589_v63 = vld [vmem:[%s7235_s25 + $0x66c] ss:$24 sps:$4 sm:$0xff]  }
 0x165   : > { %4648 = vmatprep.subr.bf16.mxu0 %v6502_v1  ;;  %4356 = vmatprep.mubr.bf16.mxu1 %v6963_v7  ;;  %v6592_v0 = vld [vmem:[%s7235_s25 + $0x674] ss:$24 sps:$4 sm:$0xff]  }
 0x166   : > { %4674 = vmatprep.mubr.bf16.mxu0 %v6963_v7  ;;  %v6965_v1 = vld [vmem:[%s7233_s20 + $0x6c] ss:$48 sps:$4 sm:$0xff]   ;;  %v6593_v7 = vld [vmem:[%s7235_s25 + $0x698] ss:$24 sps:$4 sm:$0xff]  }
 0x167   : > { %4331 = vmatpush1.bf16.msra.mxu1 %v6497_v2  ;;  %v6587_v2 = vld [vmem:[%s7235_s25 + $0x668] ss:$24 sps:$4 sm:$0xff]  }
 0x168   : > { %4649 = vmatpush1.bf16.msra.mxu0 %v6500_v3  ;;  %4332 = vmatprep.subr.bf16.mxu1 %v6505_v5  ;;  %v6590_v3 = vld [vmem:[%s7235_s25 + $0x670] ss:$24 sps:$4 sm:$0xff]   ;;  %v6598_v5 = vld [vmem:[%s7235_s25 + $0x6a4] ss:$24 sps:$4 sm:$0xff]  }
 0x169   : > { %4650 = vmatprep.subr.bf16.mxu0 %v6508_v6  ;;  %v6966_v6 = vld [vmem:[%s7233_s20 + $0x68] ss:$48 sps:$4 sm:$0xff]  }
 0x16b   : > { %4333 = vmatpush1.bf16.msra.mxu1 %v6503_v8  ;;  %v6596_v8 = vld [vmem:[%s7235_s25 + $0x6a0] ss:$24 sps:$4 sm:$0xff]  }
 0x16c   : > { %4651 = vmatpush1.bf16.msra.mxu0 %v6506_v9  ;;  %4334 = vmatprep.subr.bf16.mxu1 %v6511_v10  ;;  %v6601_v9 = vld [vmem:[%s7235_s25 + $0x6cc] ss:$24 sps:$4 sm:$0xff]  }
 0x16d   : > { %4652 = vmatprep.subr.bf16.mxu0 %v6514_v11  ;;  %v6604_v10 = vld [vmem:[%s7235_s25 + $0x6d4] ss:$24 sps:$4 sm:$0xff]  }
 0x16e   : > { %v6967_v11 = vld [vmem:[%s7233_s20 + $0x14] ss:$48 sps:$4 sm:$0xff]  }
 0x16f   : > { %4335 = vmatpush1.bf16.msra.mxu1 %v6509_v12  ;;  %v6599_v12 = vld [vmem:[%s7235_s25 + $0x6c8] ss:$24 sps:$4 sm:$0xff]  }
 0x170   : > { %4653 = vmatpush1.bf16.msra.mxu0 %v6512_v13  ;;  %4336 = vmatprep.subr.bf16.mxu1 %v6517_v14  ;;  %v6602_v13 = vld [vmem:[%s7235_s25 + $0x6d0] ss:$24 sps:$4 sm:$0xff]   ;;  %v6607_v14 = vld [vmem:[%s7235_s25 + $0x6fc] ss:$24 sps:$4 sm:$0xff]  }
 0x171   : > { %4654 = vmatprep.subr.bf16.mxu0 %v6520_v15  ;;  %v6610_v15 = vld [vmem:[%s7235_s25 + $0x704] ss:$24 sps:$4 sm:$0xff]  }
 0x173   : > { %4337 = vmatpush1.bf16.msra.mxu1 %v6515_v16  ;;  %v6605_v16 = vld [vmem:[%s7235_s25 + $0x6f8] ss:$24 sps:$4 sm:$0xff]  }
 0x174   : > { %4655 = vmatpush1.bf16.msra.mxu0 %v6518_v17  ;;  %4338 = vmatprep.subr.bf16.mxu1 %v6523_v18  ;;  %v6608_v17 = vld [vmem:[%s7235_s25 + $0x700] ss:$24 sps:$4 sm:$0xff]   ;;  %v6613_v18 = vld [vmem:[%s7235_s25 + $0x72c] ss:$24 sps:$4 sm:$0xff]  }
 0x175   : > { %4656 = vmatprep.subr.bf16.mxu0 %v6526_v19  ;;  %v6616_v19 = vld [vmem:[%s7235_s25 + $0x734] ss:$24 sps:$4 sm:$0xff]  }
 0x177   : > { %4339 = vmatpush1.bf16.msra.mxu1 %v6521_v20  ;;  %v6611_v20 = vld [vmem:[%s7235_s25 + $0x728] ss:$24 sps:$4 sm:$0xff]  }
 0x178   : > { %4657 = vmatpush1.bf16.msra.mxu0 %v6524_v21  ;;  %4340 = vmatprep.subr.bf16.mxu1 %v6529_v22  ;;  %v6614_v21 = vld [vmem:[%s7235_s25 + $0x730] ss:$24 sps:$4 sm:$0xff]   ;;  %v6619_v22 = vld [vmem:[%s7235_s25 + $0x75c] ss:$24 sps:$4 sm:$0xff]  }
 0x179   : > { %4658 = vmatprep.subr.bf16.mxu0 %v6532_v23  ;;  %v6622_v23 = vld [vmem:[%s7235_s25 + $0x764] ss:$24 sps:$4 sm:$0xff]  }
 0x17b   : > { %4341 = vmatpush1.bf16.msra.mxu1 %v6527_v24  ;;  %v6617_v24 = vld [vmem:[%s7235_s25 + $0x758] ss:$24 sps:$4 sm:$0xff]  }
 0x17c   : > { %4659 = vmatpush1.bf16.msra.mxu0 %v6530_v25  ;;  %4342 = vmatprep.subr.bf16.mxu1 %v6535_v26  ;;  %v6620_v25 = vld [vmem:[%s7235_s25 + $0x760] ss:$24 sps:$4 sm:$0xff]   ;;  %v6625_v26 = vld [vmem:[%s7235_s25 + $0x78c] ss:$24 sps:$4 sm:$0xff]  }
 0x17d   : > { %4660 = vmatprep.subr.bf16.mxu0 %v6538_v27  ;;  %v6628_v27 = vld [vmem:[%s7235_s25 + $0x794] ss:$24 sps:$4 sm:$0xff]  }
 0x17f   : > { %4343 = vmatpush1.bf16.msra.mxu1 %v6533_v28  ;;  %v6623_v28 = vld [vmem:[%s7235_s25 + $0x788] ss:$24 sps:$4 sm:$0xff]  }
 0x180   : > { %4661 = vmatpush1.bf16.msra.mxu0 %v6536_v29  ;;  %4344 = vmatprep.subr.bf16.mxu1 %v6541_v30  ;;  %v6626_v29 = vld [vmem:[%s7235_s25 + $0x790] ss:$24 sps:$4 sm:$0xff]   ;;  %v6631_v30 = vld [vmem:[%s7235_s25 + $0x7bc] ss:$24 sps:$4 sm:$0xff]  }
 0x181   : > { %4662 = vmatprep.subr.bf16.mxu0 %v6544_v31  ;;  %v6634_v31 = vld [vmem:[%s7235_s25 + $0x7c4] ss:$24 sps:$4 sm:$0xff]  }
 0x183   : > { %4345 = vmatpush1.bf16.msra.mxu1 %v6539_v32  ;;  %v6629_v32 = vld [vmem:[%s7235_s25 + $0x7b8] ss:$24 sps:$4 sm:$0xff]  }
 0x184   : > { %4663 = vmatpush1.bf16.msra.mxu0 %v6542_v33  ;;  %4346 = vmatprep.subr.bf16.mxu1 %v6547_v34  ;;  %v6632_v33 = vld [vmem:[%s7235_s25 + $0x7c0] ss:$24 sps:$4 sm:$0xff]   ;;  %v6637_v34 = vld [vmem:[%s7235_s25 + $0x7ec] ss:$24 sps:$4 sm:$0xff]  }
 0x185   : > { %4664 = vmatprep.subr.bf16.mxu0 %v6550_v35  ;;  %v6640_v35 = vld [vmem:[%s7235_s25 + $0x7f4] ss:$24 sps:$4 sm:$0xff]  }
 0x187   : > { %4347 = vmatpush1.bf16.msra.mxu1 %v6545_v36  ;;  %v6635_v36 = vld [vmem:[%s7235_s25 + $0x7e8] ss:$24 sps:$4 sm:$0xff]  }
 0x188   : > { %4665 = vmatpush1.bf16.msra.mxu0 %v6548_v37  ;;  %4348 = vmatprep.subr.bf16.mxu1 %v6553_v38  ;;  %v6638_v37 = vld [vmem:[%s7235_s25 + $0x7f0] ss:$24 sps:$4 sm:$0xff]   ;;  %v6643_v38 = vld [vmem:[%s7235_s25 + $0x81c] ss:$24 sps:$4 sm:$0xff]  }
 0x189   : > { %4666 = vmatprep.subr.bf16.mxu0 %v6556_v39  ;;  %v6646_v39 = vld [vmem:[%s7235_s25 + $0x824] ss:$24 sps:$4 sm:$0xff]  }
 0x18b   : > { %4349 = vmatpush1.bf16.msra.mxu1 %v6551_v40  ;;  %v6641_v40 = vld [vmem:[%s7235_s25 + $0x818] ss:$24 sps:$4 sm:$0xff]  }
 0x18c   : > { %4667 = vmatpush1.bf16.msra.mxu0 %v6554_v41  ;;  %4350 = vmatprep.subr.bf16.mxu1 %v6559_v42  ;;  %v6644_v41 = vld [vmem:[%s7235_s25 + $0x820] ss:$24 sps:$4 sm:$0xff]   ;;  %v6649_v42 = vld [vmem:[%s7235_s25 + $0x84c] ss:$24 sps:$4 sm:$0xff]  }
 0x18d   : > { %4668 = vmatprep.subr.bf16.mxu0 %v6562_v43  ;;  %v6652_v43 = vld [vmem:[%s7235_s25 + $0x854] ss:$24 sps:$4 sm:$0xff]  }
 0x18f   : > { %4351 = vmatpush1.bf16.msra.mxu1 %v6557_v44  ;;  %v6647_v44 = vld [vmem:[%s7235_s25 + $0x848] ss:$24 sps:$4 sm:$0xff]  }
 0x190   : > { %4669 = vmatpush1.bf16.msra.mxu0 %v6560_v45  ;;  %4352 = vmatprep.subr.bf16.mxu1 %v6565_v46  ;;  %v6650_v45 = vld [vmem:[%s7235_s25 + $0x850] ss:$24 sps:$4 sm:$0xff]   ;;  %v6655_v46 = vld [vmem:[%s7235_s25 + $0x87c] ss:$24 sps:$4 sm:$0xff]  }
 0x191   : > { %4670 = vmatprep.subr.bf16.mxu0 %v6568_v47  ;;  %v6658_v47 = vld [vmem:[%s7235_s25 + $0x884] ss:$24 sps:$4 sm:$0xff]  }
 0x193   : > { %4353 = vmatpush1.bf16.msra.mxu1 %v6563_v48  ;;  %v6653_v48 = vld [vmem:[%s7235_s25 + $0x878] ss:$24 sps:$4 sm:$0xff]  }
 0x194   : > { %4671 = vmatpush1.bf16.msra.mxu0 %v6566_v49  ;;  %4354 = vmatprep.subr.bf16.mxu1 %v6571_v50  ;;  %v6656_v49 = vld [vmem:[%s7235_s25 + $0x880] ss:$24 sps:$4 sm:$0xff]   ;;  %v6661_v50 = vld [vmem:[%s7235_s25 + $0x8ac] ss:$24 sps:$4 sm:$0xff]  }
 0x195   : > { %4672 = vmatprep.subr.bf16.mxu0 %v6574_v51  ;;  %v6664_v51 = vld [vmem:[%s7235_s25 + $0x8b4] ss:$24 sps:$4 sm:$0xff]  }
 0x197   : > { %4355 = vmatpush1.bf16.msra.mxu1 %v6569_v52  ;;  %v6659_v52 = vld [vmem:[%s7235_s25 + $0x8a8] ss:$24 sps:$4 sm:$0xff]  }
 0x198   : > { %4673 = vmatpush1.bf16.msra.mxu0 %v6572_v53  ;;  %4377 = vmatprep.subr.bf16.mxu1 %v6577_v54  ;;  %v6662_v53 = vld [vmem:[%s7235_s25 + $0x8b0] ss:$24 sps:$4 sm:$0xff]   ;;  %v6667_v54 = vld [vmem:[%s7235_s25 + $0x8dc] ss:$24 sps:$4 sm:$0xff]  }
 0x199   : > { %4695 = vmatprep.subr.bf16.mxu0 %v6580_v55  ;;  %v6670_v55 = vld [vmem:[%s7235_s25 + $0x8e4] ss:$24 sps:$4 sm:$0xff]  }
 0x19a   : > { %4357 = vmatmul.mubr.bf16.vlgmr.msra.gmra.mrb[8].mxu1 %v6964_v60 }
 0x19b   : > { %4675 = vmatmul.mubr.bf16.vlgmr.msra.gmra.mrb[8].mxu0 %v6964_v60  ;;  %4378 = vmatpush1.bf16.msra.mxu1 %v6575_v56  ;;  %v6665_v56 = vld [vmem:[%s7235_s25 + $0x8d8] ss:$24 sps:$4 sm:$0xff]   ;;  %v6671_v60 = vld [vmem:[%s7235_s25 + $0x908] ss:$24 sps:$4 sm:$0xff]  }
 0x19c   : > { %4696 = vmatpush1.bf16.msra.mxu0 %v6578_v57  ;;  %4379 = vmatprep.subr.bf16.mxu1 %v6583_v58  ;;  %v6668_v57 = vld [vmem:[%s7235_s25 + $0x8e0] ss:$24 sps:$4 sm:$0xff]   ;;  %v6673_v58 = vld [vmem:[%s7235_s25 + $0x90c] ss:$24 sps:$4 sm:$0xff]  }
 0x19d   : > { %4697 = vmatprep.subr.bf16.mxu0 %v6586_v59  ;;  %4366 = vmatprep.mubr.bf16.mxu1 %v6965_v1  ;;  %v6676_v59 = vld [vmem:[%s7235_s25 + $0x914] ss:$24 sps:$4 sm:$0xff]  }
 0x19e   : > { %4684 = vmatprep.mubr.bf16.mxu0 %v6965_v1  ;;  %v6677_v1 = vld [vmem:[%s7235_s25 + $0x938] ss:$24 sps:$4 sm:$0xff]  }
 0x19f   : > { %4380 = vmatpush1.bf16.msra.mxu1 %v6581_v61  ;;  %v6674_v61 = vld [vmem:[%s7235_s25 + $0x910] ss:$24 sps:$4 sm:$0xff]  }
 0x1a0   : > { %4698 = vmatpush1.bf16.msra.mxu0 %v6584_v62  ;;  %4381 = vmatprep.subr.bf16.mxu1 %v6589_v63  ;;  %v6679_v62 = vld [vmem:[%s7235_s25 + $0x93c] ss:$24 sps:$4 sm:$0xff]  }
 0x1a1   : > { %4699 = vmatprep.subr.bf16.mxu0 %v6592_v0  ;;  %v6682_v63 = vld [vmem:[%s7235_s25 + $0x944] ss:$24 sps:$4 sm:$0xff]   ;;  %v6968_v0 = vld [vmem:[%s7233_s20 + $0x10] ss:$48 sps:$4 sm:$0xff]  }
 0x1a2   : > { %4367 = vmatmul.mubr.bf16.gmra.mrb[12].mxu1 %v6966_v6 }
 0x1a3   : > { %4685 = vmatmul.mubr.bf16.gmra.mrb[12].mxu0 %v6966_v6  ;;  %4382 = vmatpush1.bf16.msra.mxu1 %v6587_v2  ;;  %v6680_v2 = vld [vmem:[%s7235_s25 + $0x940] ss:$24 sps:$4 sm:$0xff]  }
 0x1a4   : > { %4700 = vmatpush1.bf16.msra.mxu0 %v6590_v3  ;;  %4383 = vmatprep.subr.bf16.mxu1 %v6595_v4  ;;  %v6685_v3 = vld [vmem:[%s7235_s25 + $0x96c] ss:$24 sps:$4 sm:$0xff]   ;;  %v6683_v6 = vld [vmem:[%s7235_s25 + $0x968] ss:$24 sps:$4 sm:$0xff]  }
 0x1a5   : > { %4701 = vmatprep.subr.bf16.mxu0 %v6598_v5  ;;  %4409 = vmatprep.mubr.bf16.mxu1 %v6967_v11  ;;  %v6688_v4 = vld [vmem:[%s7235_s25 + $0x974] ss:$24 sps:$4 sm:$0xff]  }
 0x1a6   : > { %4727 = vmatprep.mubr.bf16.mxu0 %v6967_v11  ;;  %v6969_v5 = vld [vmem:[%s7233_s20 + $0x74] ss:$48 sps:$4 sm:$0xff]   ;;  %v6689_v11 = vld [vmem:[%s7235_s25 + $0x998] ss:$24 sps:$4 sm:$0xff]  }
 0x1a7   : > { %4384 = vmatpush1.bf16.msra.mxu1 %v6593_v7  ;;  %v6686_v7 = vld [vmem:[%s7235_s25 + $0x970] ss:$24 sps:$4 sm:$0xff]  }
 0x1a8   : > { %4702 = vmatpush1.bf16.msra.mxu0 %v6596_v8  ;;  %4385 = vmatprep.subr.bf16.mxu1 %v6601_v9  ;;  %v6691_v8 = vld [vmem:[%s7235_s25 + $0x99c] ss:$24 sps:$4 sm:$0xff]  }
 0x1a9   : > { %4703 = vmatprep.subr.bf16.mxu0 %v6604_v10  ;;  %v6694_v9 = vld [vmem:[%s7235_s25 + $0x9a4] ss:$24 sps:$4 sm:$0xff]   ;;  %v6970_v10 = vld [vmem:[%s7233_s20 + $0x70] ss:$48 sps:$4 sm:$0xff]  }
 0x1ab   : > { %4386 = vmatpush1.bf16.msra.mxu1 %v6599_v12  ;;  %v6692_v12 = vld [vmem:[%s7235_s25 + $0x9a0] ss:$24 sps:$4 sm:$0xff]  }
 0x1ac   : > { %4704 = vmatpush1.bf16.msra.mxu0 %v6602_v13  ;;  %4387 = vmatprep.subr.bf16.mxu1 %v6607_v14  ;;  %v6697_v13 = vld [vmem:[%s7235_s25 + $0x9cc] ss:$24 sps:$4 sm:$0xff]  }
 0x1ad   : > { %4705 = vmatprep.subr.bf16.mxu0 %v6610_v15  ;;  %v6700_v14 = vld [vmem:[%s7235_s25 + $0x9d4] ss:$24 sps:$4 sm:$0xff]  }
 0x1ae   : > { %v6971_v15 = vld [vmem:[%s7233_s20 + $0x1c] ss:$48 sps:$4 sm:$0xff]  }
 0x1af   : > { %4388 = vmatpush1.bf16.msra.mxu1 %v6605_v16  ;;  %v6695_v16 = vld [vmem:[%s7235_s25 + $0x9c8] ss:$24 sps:$4 sm:$0xff]  }
 0x1b0   : > { %4706 = vmatpush1.bf16.msra.mxu0 %v6608_v17  ;;  %4389 = vmatprep.subr.bf16.mxu1 %v6613_v18  ;;  %v6698_v17 = vld [vmem:[%s7235_s25 + $0x9d0] ss:$24 sps:$4 sm:$0xff]   ;;  %v6703_v18 = vld [vmem:[%s7235_s25 + $0x9fc] ss:$24 sps:$4 sm:$0xff]  }
 0x1b1   : > { %4707 = vmatprep.subr.bf16.mxu0 %v6616_v19  ;;  %v6706_v19 = vld [vmem:[%s7235_s25 + $0xa04] ss:$24 sps:$4 sm:$0xff]  }
 0x1b3   : > { %4390 = vmatpush1.bf16.msra.mxu1 %v6611_v20  ;;  %v6701_v20 = vld [vmem:[%s7235_s25 + $0x9f8] ss:$24 sps:$4 sm:$0xff]  }
 0x1b4   : > { %4708 = vmatpush1.bf16.msra.mxu0 %v6614_v21  ;;  %4391 = vmatprep.subr.bf16.mxu1 %v6619_v22  ;;  %v6704_v21 = vld [vmem:[%s7235_s25 + $0xa00] ss:$24 sps:$4 sm:$0xff]   ;;  %v6709_v22 = vld [vmem:[%s7235_s25 + $0xa2c] ss:$24 sps:$4 sm:$0xff]  }
 0x1b5   : > { %4709 = vmatprep.subr.bf16.mxu0 %v6622_v23  ;;  %v6712_v23 = vld [vmem:[%s7235_s25 + $0xa34] ss:$24 sps:$4 sm:$0xff]  }
 0x1b7   : > { %4392 = vmatpush1.bf16.msra.mxu1 %v6617_v24 }
 0x1b8   : > { %4710 = vmatpush1.bf16.msra.mxu0 %v6620_v25  ;;  %4393 = vmatprep.subr.bf16.mxu1 %v6625_v26  ;;  %v329_v25 = vld [vmem:[#allocation2] sm:$0xff] }
 0x1b9   : > { %4711 = vmatprep.subr.bf16.mxu0 %v6628_v27 }
 0x1bb   : > { %4394 = vmatpush1.bf16.msra.mxu1 %v6623_v28 }
 0x1bc   : > { %4712 = vmatpush1.bf16.msra.mxu0 %v6626_v29  ;;  %4395 = vmatprep.subr.bf16.mxu1 %v6631_v30  ;;  %v330_v29 = vld [vmem:[#allocation2 + $0x8] sm:$0xff] }
 0x1bd   : > { %4713 = vmatprep.subr.bf16.mxu0 %v6634_v31  ;;  %v335_v31 = vld [vmem:[#allocation2 + $0x30] sm:$0xff] }
 0x1bf   : > { %4396 = vmatpush1.bf16.msra.mxu1 %v6629_v32  ;;  %v336_v32 = vld [vmem:[#allocation2 + $0x38] sm:$0xff] }
 0x1c0   : > { %4714 = vmatpush1.bf16.msra.mxu0 %v6632_v33  ;;  %4397 = vmatprep.subr.bf16.mxu1 %v6637_v34 }
 0x1c1   : > { %4715 = vmatprep.subr.bf16.mxu0 %v6640_v35 }
 0x1c3   : > { %4398 = vmatpush1.bf16.msra.mxu1 %v6635_v36  ;;  %v6707_v36 = vld [vmem:[%s7235_s25 + $0xa28] ss:$24 sps:$4 sm:$0xff]  }
 0x1c4   : > { %4716 = vmatpush1.bf16.msra.mxu0 %v6638_v37  ;;  %4399 = vmatprep.subr.bf16.mxu1 %v6643_v38  ;;  %v6710_v37 = vld [vmem:[%s7235_s25 + $0xa30] ss:$24 sps:$4 sm:$0xff]  }
 0x1c5   : > { %4717 = vmatprep.subr.bf16.mxu0 %v6646_v39 }
 0x1c7   : > { %4400 = vmatpush1.bf16.msra.mxu1 %v6641_v40 }
 0x1c8   : > { %4718 = vmatpush1.bf16.msra.mxu0 %v6644_v41  ;;  %4401 = vmatprep.subr.bf16.mxu1 %v6649_v42  ;;  %v6715_v42 = vld [vmem:[%s7235_s25 + $0xa5c] ss:$24 sps:$4 sm:$0xff]  }
 0x1c9   : > { %4719 = vmatprep.subr.bf16.mxu0 %v6652_v43  ;;  %v6718_v43 = vld [vmem:[%s7235_s25 + $0xa64] ss:$24 sps:$4 sm:$0xff]  }
 0x1cb   : > { %4402 = vmatpush1.bf16.msra.mxu1 %v6647_v44 }
 0x1cc   : > { %4720 = vmatpush1.bf16.msra.mxu0 %v6650_v45  ;;  %4403 = vmatprep.subr.bf16.mxu1 %v6655_v46 }
 0x1cd   : > { %4721 = vmatprep.subr.bf16.mxu0 %v6658_v47 }
 0x1cf   : > { %4404 = vmatpush1.bf16.msra.mxu1 %v6653_v48  ;;  %v6713_v48 = vld [vmem:[%s7235_s25 + $0xa58] ss:$24 sps:$4 sm:$0xff]  }
 0x1d0   : > { %4722 = vmatpush1.bf16.msra.mxu0 %v6656_v49  ;;  %4405 = vmatprep.subr.bf16.mxu1 %v6661_v50  ;;  %v6716_v49 = vld [vmem:[%s7235_s25 + $0xa60] ss:$24 sps:$4 sm:$0xff]   ;;  %v6721_v50 = vld [vmem:[%s7235_s25 + $0xa8c] ss:$24 sps:$4 sm:$0xff]  }
 0x1d1   : > { %4723 = vmatprep.subr.bf16.mxu0 %v6664_v51  ;;  %v6724_v51 = vld [vmem:[%s7235_s25 + $0xa94] ss:$24 sps:$4 sm:$0xff]  }
 0x1d3   : > { %4406 = vmatpush1.bf16.msra.mxu1 %v6659_v52 }
 0x1d4   : > { %4724 = vmatpush1.bf16.msra.mxu0 %v6662_v53  ;;  %4407 = vmatprep.subr.bf16.mxu1 %v6667_v54  ;;  %v341_v53 = vld [vmem:[#allocation2 + $0x60] sm:$0xff] }
 0x1d5   : > { %4725 = vmatprep.subr.bf16.mxu0 %v6670_v55 }
 0x1d7   : > { %4408 = vmatpush1.bf16.msra.mxu1 %v6665_v56 }
 0x1d8   : > { %4726 = vmatpush1.bf16.msra.mxu0 %v6668_v57  ;;  %4430 = vmatprep.subr.bf16.mxu1 %v6673_v58  ;;  %v342_v57 = vld [vmem:[#allocation2 + $0x68] sm:$0xff] }
 0x1d9   : > { %4748 = vmatprep.subr.bf16.mxu0 %v6676_v59  ;;  %v347_v59 = vld [vmem:[#allocation2 + $0x90] sm:$0xff] }
 0x1da   : > { %4410 = vmatmul.mubr.bf16.vlgmr.msra.gmra.mrb[8].mxu1 %v6968_v0 }
 0x1db   : > { %4728 = vmatmul.mubr.bf16.vlgmr.msra.gmra.mrb[8].mxu0 %v6968_v0  ;;  %4431 = vmatpush1.bf16.msra.mxu1 %v6671_v60  ;;  %v348_v60 = vld [vmem:[#allocation2 + $0x98] sm:$0xff]  ;;  %v6719_v0 = vld [vmem:[%s7235_s25 + $0xa88] ss:$24 sps:$4 sm:$0xff]  }
 0x1dc   : > { %4749 = vmatpush1.bf16.msra.mxu0 %v6674_v61  ;;  %4432 = vmatprep.subr.bf16.mxu1 %v6679_v62 }
 0x1dd   : > { %4750 = vmatprep.subr.bf16.mxu0 %v6682_v63  ;;  %4419 = vmatprep.mubr.bf16.mxu1 %v6969_v5 }
 0x1de   : > { %4737 = vmatprep.mubr.bf16.mxu0 %v6969_v5 }
 0x1df   : > { %4433 = vmatpush1.bf16.msra.mxu1 %v6677_v1  ;;  %v6722_v1 = vld [vmem:[%s7235_s25 + $0xa90] ss:$24 sps:$4 sm:$0xff]  }
 0x1e0   : > { %4751 = vmatpush1.bf16.msra.mxu0 %v6680_v2  ;;  %4434 = vmatprep.subr.bf16.mxu1 %v6685_v3 }
 0x1e1   : > { %4752 = vmatprep.subr.bf16.mxu0 %v6688_v4 }
 0x1e2   : > { %4420 = vmatmul.mubr.bf16.gmra.mrb[12].mxu1 %v6970_v10 }
 0x1e3   : > { %4738 = vmatmul.mubr.bf16.gmra.mrb[12].mxu0 %v6970_v10  ;;  %4435 = vmatpush1.bf16.msra.mxu1 %v6683_v6  ;;  %v6727_v6 = vld [vmem:[%s7235_s25 + $0xabc] ss:$24 sps:$4 sm:$0xff]  }
 0x1e4   : > { %4753 = vmatpush1.bf16.msra.mxu0 %v6686_v7  ;;  %4436 = vmatprep.subr.bf16.mxu1 %v6691_v8  ;;  %v6730_v7 = vld [vmem:[%s7235_s25 + $0xac4] ss:$24 sps:$4 sm:$0xff]  }
 0x1e5   : > { %4754 = vmatprep.subr.bf16.mxu0 %v6694_v9  ;;  %4462 = vmatprep.mubr.bf16.mxu1 %v6971_v15 }
 0x1e6   : > { %4780 = vmatprep.mubr.bf16.mxu0 %v6971_v15  ;;  %v6736_v15 = vld [vmem:[%s7235_s25 + $0xaf4] ss:$24 sps:$4 sm:$0xff]  }
 0x1e7   : > { %4437 = vmatpush1.bf16.msra.mxu1 %v6689_v11 }
 0x1e8   : > { %4755 = vmatpush1.bf16.msra.mxu0 %v6692_v12  ;;  %4438 = vmatprep.subr.bf16.mxu1 %v6697_v13  ;;  %v6725_v12 = vld [vmem:[%s7235_s25 + $0xab8] ss:$24 sps:$4 sm:$0xff]  }
 0x1e9   : > { %4756 = vmatprep.subr.bf16.mxu0 %v6700_v14  ;;  %v6728_v13 = vld [vmem:[%s7235_s25 + $0xac0] ss:$24 sps:$4 sm:$0xff]   ;;  %v6733_v14 = vld [vmem:[%s7235_s25 + $0xaec] ss:$24 sps:$4 sm:$0xff]  }
 0x1eb   : > { %4439 = vmatpush1.bf16.msra.mxu1 %v6695_v16  ;;  %v6731_v16 = vld [vmem:[%s7235_s25 + $0xae8] ss:$24 sps:$4 sm:$0xff]  }
 0x1ec   : > { %4757 = vmatpush1.bf16.msra.mxu0 %v6698_v17  ;;  %4440 = vmatprep.subr.bf16.mxu1 %v6703_v18  ;;  %v6734_v17 = vld [vmem:[%s7235_s25 + $0xaf0] ss:$24 sps:$4 sm:$0xff]   ;;  %v6739_v18 = vld [vmem:[%s7235_s25 + $0xb1c] ss:$24 sps:$4 sm:$0xff]  }
 0x1ed   : > { %4758 = vmatprep.subr.bf16.mxu0 %v6706_v19  ;;  %v4093_v24 = vpop.f32.mrb[0].mxu1  ;;  %v6742_v19 = vld [vmem:[%s7235_s25 + $0xb24] ss:$24 sps:$4 sm:$0xff]  }
 0x1ee   : > { %v4252_v26 = vpop.f32.mrb[0].mxu0  ;;  %v4095_v28 = vpop.f32.mrb[1].mxu1 }
 0x1ef   : > { %v5880_v27 = vadd.f32 %v4252_v26, %v4093_v24  ;;  %v4254_v30 = vpop.f32.mrb[1].mxu0  ;;  %v4097_v34 = vpop.f32.mrb[2].mxu1  ;;  %4441 = vmatpush1.bf16.msra.mxu1 %v6701_v20  ;;  %v6737_v20 = vld [vmem:[%s7235_s25 + $0xb18] ss:$24 sps:$4 sm:$0xff]   ;;  %v6743_v24 = vld [vmem:[%s7235_s25 + $0xb48] ss:$24 sps:$4 sm:$0xff]  }
 0x1f0   : > { %v5881_v33 = vadd.f32 %v4254_v30, %v4095_v28  ;;  %v4256_v35 = vpop.f32.mrb[2].mxu0  ;;  %4759 = vmatpush1.bf16.msra.mxu0 %v6704_v21  ;;  %v4099_v40 = vpop.f32.mrb[3].mxu1  ;;  %4442 = vmatprep.subr.bf16.mxu1 %v6709_v22  ;;  %v6740_v21 = vld [vmem:[%s7235_s25 + $0xb20] ss:$24 sps:$4 sm:$0xff]   ;;  %v6745_v22 = vld [vmem:[%s7235_s25 + $0xb4c] ss:$24 sps:$4 sm:$0xff]  }
 0x1f1   : > { %v4907_v38 = vadd.f32 %v5880_v27, %v329_v25  ;;  %v5882_v39 = vadd.f32 %v4256_v35, %v4097_v34  ;;  %v4258_v41 = vpop.f32.mrb[3].mxu0  ;;  %4760 = vmatprep.subr.bf16.mxu0 %v6712_v23  ;;  %v6748_v23 = vld [vmem:[%s7235_s25 + $0xb54] ss:$24 sps:$4 sm:$0xff]   ;;  %v6746_v25 = vld [vmem:[%s7235_s25 + $0xb50] ss:$24 sps:$4 sm:$0xff]  }
 0x1f2   : > { %v4908_v44 = vadd.f32 %v5881_v33, %v330_v29  ;;  %v5883_v45 = vadd.f32 %v4258_v41, %v4099_v40  ;;  %v6751_v26 = vld [vmem:[%s7235_s25 + $0xb7c] ss:$24 sps:$4 sm:$0xff]   ;;  %v6749_v28 = vld [vmem:[%s7235_s25 + $0xb78] ss:$24 sps:$4 sm:$0xff]   ;;  %v6757_v30 = vld [vmem:[%s7235_s25 + $0xbac] ss:$24 sps:$4 sm:$0xff]  }
 0x1f3   : > { %4931 = vst [vmem:[#allocation2] sm:$0xff] %v4907_v38  ;;  %v4913_v46 = vadd.f32 %v5882_v39, %v335_v31  ;;  %4443 = vmatpush1.bf16.msra.mxu1 %v6707_v36  ;;  %v6754_v27 = vld [vmem:[%s7235_s25 + $0xb84] ss:$24 sps:$4 sm:$0xff]   ;;  %v6752_v29 = vld [vmem:[%s7235_s25 + $0xb80] ss:$24 sps:$4 sm:$0xff]  }
 0x1f4   : > { %4932 = vst [vmem:[#allocation2 + $0x8] sm:$0xff] %v4908_v44  ;;  %v4914_v47 = vadd.f32 %v5883_v45, %v336_v32  ;;  %4761 = vmatpush1.bf16.msra.mxu0 %v6710_v37  ;;  %4444 = vmatprep.subr.bf16.mxu1 %v6715_v42  ;;  %v6760_v31 = vld [vmem:[%s7235_s25 + $0xbb4] ss:$24 sps:$4 sm:$0xff]   ;;  %v6755_v32 = vld [vmem:[%s7235_s25 + $0xba8] ss:$24 sps:$4 sm:$0xff]  }
 0x1f5   : > { %4937 = vst [vmem:[#allocation2 + $0x30] sm:$0xff] %v4913_v46  ;;  %4762 = vmatprep.subr.bf16.mxu0 %v6718_v43  ;;  %v4103_v52 = vpop.f32.mrb[4].mxu1  ;;  %v6758_v33 = vld [vmem:[%s7235_s25 + $0xbb0] ss:$24 sps:$4 sm:$0xff]   ;;  %v6763_v34 = vld [vmem:[%s7235_s25 + $0xbdc] ss:$24 sps:$4 sm:$0xff]  }
 0x1f6   : > { %4938 = vst [vmem:[#allocation2 + $0x38] sm:$0xff] %v4914_v47  ;;  %v4262_v54 = vpop.f32.mrb[4].mxu0  ;;  %v4105_v56 = vpop.f32.mrb[5].mxu1  ;;  %v6766_v35 = vld [vmem:[%s7235_s25 + $0xbe4] ss:$24 sps:$4 sm:$0xff]  }
 0x1f7   : > { %v5884_v55 = vadd.f32 %v4262_v54, %v4103_v52  ;;  %v4264_v58 = vpop.f32.mrb[5].mxu0  ;;  %v4107_v62 = vpop.f32.mrb[6].mxu1  ;;  %4445 = vmatpush1.bf16.msra.mxu1 %v6713_v48  ;;  %v6761_v36 = vld [vmem:[%s7235_s25 + $0xbd8] ss:$24 sps:$4 sm:$0xff]   ;;  %v6769_v38 = vld [vmem:[%s7235_s25 + $0xc0c] ss:$24 sps:$4 sm:$0xff]  }
 0x1f8   : > { %v5885_v61 = vadd.f32 %v4264_v58, %v4105_v56  ;;  %v4266_v63 = vpop.f32.mrb[6].mxu0  ;;  %4763 = vmatpush1.bf16.msra.mxu0 %v6716_v49  ;;  %v4109_v4 = vpop.f32.mrb[7].mxu1  ;;  %4446 = vmatprep.subr.bf16.mxu1 %v6721_v50  ;;  %v6764_v37 = vld [vmem:[%s7235_s25 + $0xbe0] ss:$24 sps:$4 sm:$0xff]   ;;  %v6772_v39 = vld [vmem:[%s7235_s25 + $0xc14] ss:$24 sps:$4 sm:$0xff]  }
 0x1f9   : > { %v4919_v2 = vadd.f32 %v5884_v55, %v341_v53  ;;  %v5886_v3 = vadd.f32 %v4266_v63, %v4107_v62  ;;  %v4268_v5 = vpop.f32.mrb[7].mxu0  ;;  %4764 = vmatprep.subr.bf16.mxu0 %v6724_v51  ;;  %v6767_v40 = vld [vmem:[%s7235_s25 + $0xc08] ss:$24 sps:$4 sm:$0xff]   ;;  %v6775_v42 = vld [vmem:[%s7235_s25 + $0xc3c] ss:$24 sps:$4 sm:$0xff]  }
 0x1fa   : > { %v4920_v8 = vadd.f32 %v5885_v61, %v342_v57  ;;  %v5887_v9 = vadd.f32 %v4268_v5, %v4109_v4  ;;  %v6770_v41 = vld [vmem:[%s7235_s25 + $0xc10] ss:$24 sps:$4 sm:$0xff]   ;;  %v6778_v43 = vld [vmem:[%s7235_s25 + $0xc44] ss:$24 sps:$4 sm:$0xff]   ;;  %v6776_v46 = vld [vmem:[%s7235_s25 + $0xc40] ss:$24 sps:$4 sm:$0xff]  }
 0x1fb   : > { %4943 = vst [vmem:[#allocation2 + $0x60] sm:$0xff] %v4919_v2  ;;  %v4925_v10 = vadd.f32 %v5886_v3, %v347_v59  ;;  %4447 = vmatpush1.bf16.msra.mxu1 %v6719_v0  ;;  %v6972_v44 = vld [vmem:[%s7233_s20 + $0x18] ss:$48 sps:$4 sm:$0xff]   ;;  %v6781_v47 = vld [vmem:[%s7235_s25 + $0xc6c] ss:$24 sps:$4 sm:$0xff]  }
 0x1fc   : > { %4944 = vst [vmem:[#allocation2 + $0x68] sm:$0xff] %v4920_v8  ;;  %v4926_v11 = vadd.f32 %v5887_v9, %v348_v60  ;;  %4765 = vmatpush1.bf16.msra.mxu0 %v6722_v1  ;;  %4448 = vmatprep.subr.bf16.mxu1 %v6727_v6  ;;  %v6773_v45 = vld [vmem:[%s7235_s25 + $0xc38] ss:$24 sps:$4 sm:$0xff]   ;;  %v6784_v48 = vld [vmem:[%s7235_s25 + $0xc74] ss:$24 sps:$4 sm:$0xff]  }
 0x1fd   : > { %4949 = vst [vmem:[#allocation2 + $0x90] sm:$0xff] %v4925_v10  ;;  %4766 = vmatprep.subr.bf16.mxu0 %v6730_v7  ;;  %v6973_v49 = vld [vmem:[%s7233_s20 + $0x7c] ss:$48 sps:$4 sm:$0xff]   ;;  %v6779_v50 = vld [vmem:[%s7235_s25 + $0xc68] ss:$24 sps:$4 sm:$0xff]  }
 0x1fe   : > { %4950 = vst [vmem:[#allocation2 + $0x98] sm:$0xff] %v4926_v11  ;;  %v6782_v51 = vld [vmem:[%s7235_s25 + $0xc70] ss:$24 sps:$4 sm:$0xff]   ;;  %v6787_v52 = vld [vmem:[%s7235_s25 + $0xc9c] ss:$24 sps:$4 sm:$0xff]  }
 0x1ff   : > { %4449 = vmatpush1.bf16.msra.mxu1 %v6725_v12  ;;  %v6790_v53 = vld [vmem:[%s7235_s25 + $0xca4] ss:$24 sps:$4 sm:$0xff]   ;;  %v6974_v54 = vld [vmem:[%s7233_s20 + $0x78] ss:$48 sps:$4 sm:$0xff]   ;;  %v6796_v58 = vld [vmem:[%s7235_s25 + $0xcd4] ss:$24 sps:$4 sm:$0xff]  }
 0x200   : > { %4767 = vmatpush1.bf16.msra.mxu0 %v6728_v13  ;;  %4450 = vmatprep.subr.bf16.mxu1 %v6733_v14  ;;  %v6785_v55 = vld [vmem:[%s7235_s25 + $0xc98] ss:$24 sps:$4 sm:$0xff]   ;;  %v6793_v57 = vld [vmem:[%s7235_s25 + $0xccc] ss:$24 sps:$4 sm:$0xff]   ;;  %v6791_v60 = vld [vmem:[%s7235_s25 + $0xcc8] ss:$24 sps:$4 sm:$0xff]  }
 0x201   : > { %4768 = vmatprep.subr.bf16.mxu0 %v6736_v15  ;;  %v6788_v56 = vld [vmem:[%s7235_s25 + $0xca0] ss:$24 sps:$4 sm:$0xff]   ;;  %v6975_v59 = vld [vmem:[%s7233_s20 + $0x24] ss:$48 sps:$4 sm:$0xff]   ;;  %v6794_v61 = vld [vmem:[%s7235_s25 + $0xcd0] ss:$24 sps:$4 sm:$0xff]  }
 0x202   : > { %v6799_v62 = vld [vmem:[%s7235_s25 + $0xcfc] ss:$24 sps:$4 sm:$0xff]   ;;  %v6797_v0 = vld [vmem:[%s7235_s25 + $0xcf8] ss:$24 sps:$4 sm:$0xff]   ;;  %v6805_v2 = vld [vmem:[%s7235_s25 + $0xd2c] ss:$24 sps:$4 sm:$0xff]  }
 0x203   : > { %4451 = vmatpush1.bf16.msra.mxu1 %v6731_v16  ;;  %v6802_v63 = vld [vmem:[%s7235_s25 + $0xd04] ss:$24 sps:$4 sm:$0xff]   ;;  %v6800_v1 = vld [vmem:[%s7235_s25 + $0xd00] ss:$24 sps:$4 sm:$0xff]   ;;  %v6808_v3 = vld [vmem:[%s7235_s25 + $0xd34] ss:$24 sps:$4 sm:$0xff]  }
 0x204   : > { %4769 = vmatpush1.bf16.msra.mxu0 %v6734_v17  ;;  %4452 = vmatprep.subr.bf16.mxu1 %v6739_v18  ;;  %v6803_v4 = vld [vmem:[%s7235_s25 + $0xd28] ss:$24 sps:$4 sm:$0xff]   ;;  %v6811_v6 = vld [vmem:[%s7235_s25 + $0xd5c] ss:$24 sps:$4 sm:$0xff]   ;;  %v6809_v8 = vld [vmem:[%s7235_s25 + $0xd58] ss:$24 sps:$4 sm:$0xff]  }
 0x205   : > { %4770 = vmatprep.subr.bf16.mxu0 %v6742_v19  ;;  %v6806_v5 = vld [vmem:[%s7235_s25 + $0xd30] ss:$24 sps:$4 sm:$0xff]   ;;  %v6814_v7 = vld [vmem:[%s7235_s25 + $0xd64] ss:$24 sps:$4 sm:$0xff]   ;;  %v6812_v9 = vld [vmem:[%s7235_s25 + $0xd60] ss:$24 sps:$4 sm:$0xff]  }
 0x206   : > { %v6817_v10 = vld [vmem:[%s7235_s25 + $0xd8c] ss:$24 sps:$4 sm:$0xff]   ;;  %v6815_v12 = vld [vmem:[%s7235_s25 + $0xd88] ss:$24 sps:$4 sm:$0xff]   ;;  %v6823_v14 = vld [vmem:[%s7235_s25 + $0xdbc] ss:$24 sps:$4 sm:$0xff]  }
 0x207   : > { %4453 = vmatpush1.bf16.msra.mxu1 %v6737_v20  ;;  %v6820_v11 = vld [vmem:[%s7235_s25 + $0xd94] ss:$24 sps:$4 sm:$0xff]   ;;  %v6818_v13 = vld [vmem:[%s7235_s25 + $0xd90] ss:$24 sps:$4 sm:$0xff]   ;;  %v6826_v15 = vld [vmem:[%s7235_s25 + $0xdc4] ss:$24 sps:$4 sm:$0xff]  }
 0x208   : > { %4771 = vmatpush1.bf16.msra.mxu0 %v6740_v21  ;;  %4454 = vmatprep.subr.bf16.mxu1 %v6745_v22  ;;  %v6821_v16 = vld [vmem:[%s7235_s25 + $0xdb8] ss:$24 sps:$4 sm:$0xff]   ;;  %v6829_v18 = vld [vmem:[%s7235_s25 + $0xdec] ss:$24 sps:$4 sm:$0xff]   ;;  %v6827_v20 = vld [vmem:[%s7235_s25 + $0xde8] ss:$24 sps:$4 sm:$0xff]  }
 0x209   : > { %4772 = vmatprep.subr.bf16.mxu0 %v6748_v23  ;;  %v6824_v17 = vld [vmem:[%s7235_s25 + $0xdc0] ss:$24 sps:$4 sm:$0xff]   ;;  %v6832_v19 = vld [vmem:[%s7235_s25 + $0xdf4] ss:$24 sps:$4 sm:$0xff]   ;;  %v6830_v21 = vld [vmem:[%s7235_s25 + $0xdf0] ss:$24 sps:$4 sm:$0xff]  }
 0x20a   : > { %v6835_v22 = vld [vmem:[%s7235_s25 + $0xe1c] ss:$24 sps:$4 sm:$0xff]  }
 0x20b   : > { %4455 = vmatpush1.bf16.msra.mxu1 %v6743_v24  ;;  %v6838_v23 = vld [vmem:[%s7235_s25 + $0xe24] ss:$24 sps:$4 sm:$0xff]   ;;  %v6833_v24 = vld [vmem:[%s7235_s25 + $0xe18] ss:$24 sps:$4 sm:$0xff]  }
 0x20c   : > { %4773 = vmatpush1.bf16.msra.mxu0 %v6746_v25  ;;  %4456 = vmatprep.subr.bf16.mxu1 %v6751_v26  ;;  %v6836_v25 = vld [vmem:[%s7235_s25 + $0xe20] ss:$24 sps:$4 sm:$0xff]   ;;  %v6841_v26 = vld [vmem:[%s7235_s25 + $0xe4c] ss:$24 sps:$4 sm:$0xff]  }
 0x20d   : > { %4774 = vmatprep.subr.bf16.mxu0 %v6754_v27  ;;  %v6844_v27 = vld [vmem:[%s7235_s25 + $0xe54] ss:$24 sps:$4 sm:$0xff]  }
 0x20f   : > { %4457 = vmatpush1.bf16.msra.mxu1 %v6749_v28  ;;  %v6839_v28 = vld [vmem:[%s7235_s25 + $0xe48] ss:$24 sps:$4 sm:$0xff]  }
 0x210   : > { %4775 = vmatpush1.bf16.msra.mxu0 %v6752_v29  ;;  %4458 = vmatprep.subr.bf16.mxu1 %v6757_v30  ;;  %v6842_v29 = vld [vmem:[%s7235_s25 + $0xe50] ss:$24 sps:$4 sm:$0xff]   ;;  %v6847_v30 = vld [vmem:[%s7235_s25 + $0xe7c] ss:$24 sps:$4 sm:$0xff]  }
 0x211   : > { %4776 = vmatprep.subr.bf16.mxu0 %v6760_v31  ;;  %v6850_v31 = vld [vmem:[%s7235_s25 + $0xe84] ss:$24 sps:$4 sm:$0xff]  }
 0x213   : > { %4459 = vmatpush1.bf16.msra.mxu1 %v6755_v32  ;;  %v6845_v32 = vld [vmem:[%s7235_s25 + $0xe78] ss:$24 sps:$4 sm:$0xff]  }
 0x214   : > { %4777 = vmatpush1.bf16.msra.mxu0 %v6758_v33  ;;  %4460 = vmatprep.subr.bf16.mxu1 %v6763_v34  ;;  %v6848_v33 = vld [vmem:[%s7235_s25 + $0xe80] ss:$24 sps:$4 sm:$0xff]   ;;  %v6853_v34 = vld [vmem:[%s7235_s25 + $0xeac] ss:$24 sps:$4 sm:$0xff]  }
 0x215   : > { %4778 = vmatprep.subr.bf16.mxu0 %v6766_v35  ;;  %v6856_v35 = vld [vmem:[%s7235_s25 + $0xeb4] ss:$24 sps:$4 sm:$0xff]  }
 0x217   : > { %4461 = vmatpush1.bf16.msra.mxu1 %v6761_v36  ;;  %v6851_v36 = vld [vmem:[%s7235_s25 + $0xea8] ss:$24 sps:$4 sm:$0xff]  }
 0x218   : > { %4779 = vmatpush1.bf16.msra.mxu0 %v6764_v37  ;;  %4483 = vmatprep.subr.bf16.mxu1 %v6769_v38  ;;  %v6854_v37 = vld [vmem:[%s7235_s25 + $0xeb0] ss:$24 sps:$4 sm:$0xff]   ;;  %v6859_v38 = vld [vmem:[%s7235_s25 + $0xedc] ss:$24 sps:$4 sm:$0xff]  }
 0x219   : > { %4801 = vmatprep.subr.bf16.mxu0 %v6772_v39  ;;  %v6862_v39 = vld [vmem:[%s7235_s25 + $0xee4] ss:$24 sps:$4 sm:$0xff]  }
 0x21a   : > { %4463 = vmatmul.mubr.bf16.vlgmr.msra.gmra.mrb[8].mxu1 %v6972_v44 }
 0x21b   : > { %4781 = vmatmul.mubr.bf16.vlgmr.msra.gmra.mrb[8].mxu0 %v6972_v44  ;;  %4484 = vmatpush1.bf16.msra.mxu1 %v6767_v40  ;;  %v6857_v40 = vld [vmem:[%s7235_s25 + $0xed8] ss:$24 sps:$4 sm:$0xff]   ;;  %v6863_v44 = vld [vmem:[%s7235_s25 + $0xf08] ss:$24 sps:$4 sm:$0xff]  }
 0x21c   : > { %4802 = vmatpush1.bf16.msra.mxu0 %v6770_v41  ;;  %4485 = vmatprep.subr.bf16.mxu1 %v6775_v42  ;;  %v6860_v41 = vld [vmem:[%s7235_s25 + $0xee0] ss:$24 sps:$4 sm:$0xff]   ;;  %v6865_v42 = vld [vmem:[%s7235_s25 + $0xf0c] ss:$24 sps:$4 sm:$0xff]  }
 0x21d   : > { %4803 = vmatprep.subr.bf16.mxu0 %v6778_v43  ;;  %4472 = vmatprep.mubr.bf16.mxu1 %v6973_v49  ;;  %v6868_v43 = vld [vmem:[%s7235_s25 + $0xf14] ss:$24 sps:$4 sm:$0xff]  }
 0x21e   : > { %4790 = vmatprep.mubr.bf16.mxu0 %v6973_v49  ;;  %v6869_v49 = vld [vmem:[%s7235_s25 + $0xf38] ss:$24 sps:$4 sm:$0xff]  }
 0x21f   : > { %4486 = vmatpush1.bf16.msra.mxu1 %v6773_v45  ;;  %v6866_v45 = vld [vmem:[%s7235_s25 + $0xf10] ss:$24 sps:$4 sm:$0xff]  }
 0x220   : > { %4804 = vmatpush1.bf16.msra.mxu0 %v6776_v46  ;;  %4487 = vmatprep.subr.bf16.mxu1 %v6781_v47  ;;  %v6871_v46 = vld [vmem:[%s7235_s25 + $0xf3c] ss:$24 sps:$4 sm:$0xff]  }
 0x221   : > { %4805 = vmatprep.subr.bf16.mxu0 %v6784_v48  ;;  %v6874_v47 = vld [vmem:[%s7235_s25 + $0xf44] ss:$24 sps:$4 sm:$0xff]   ;;  %v6976_v48 = vld [vmem:[%s7233_s20 + $0x20] ss:$48 sps:$4 sm:$0xff]  }
 0x222   : > { %4473 = vmatmul.mubr.bf16.gmra.mrb[12].mxu1 %v6974_v54 }
 0x223   : > { %4791 = vmatmul.mubr.bf16.gmra.mrb[12].mxu0 %v6974_v54  ;;  %4488 = vmatpush1.bf16.msra.mxu1 %v6779_v50  ;;  %v6872_v50 = vld [vmem:[%s7235_s25 + $0xf40] ss:$24 sps:$4 sm:$0xff]  }
 0x224   : > { %4806 = vmatpush1.bf16.msra.mxu0 %v6782_v51  ;;  %4489 = vmatprep.subr.bf16.mxu1 %v6787_v52  ;;  %v6877_v51 = vld [vmem:[%s7235_s25 + $0xf6c] ss:$24 sps:$4 sm:$0xff]   ;;  %v6875_v54 = vld [vmem:[%s7235_s25 + $0xf68] ss:$24 sps:$4 sm:$0xff]  }
 0x225   : > { %4807 = vmatprep.subr.bf16.mxu0 %v6790_v53  ;;  %4515 = vmatprep.mubr.bf16.mxu1 %v6975_v59  ;;  %v6880_v52 = vld [vmem:[%s7235_s25 + $0xf74] ss:$24 sps:$4 sm:$0xff]  }
 0x226   : > { %4833 = vmatprep.mubr.bf16.mxu0 %v6975_v59  ;;  %v6977_v53 = vld [vmem:[%s7233_s20 + $0x84] ss:$48 sps:$4 sm:$0xff]   ;;  %v6881_v59 = vld [vmem:[%s7235_s25 + $0xf98] ss:$24 sps:$4 sm:$0xff]  }
 0x227   : > { %4490 = vmatpush1.bf16.msra.mxu1 %v6785_v55  ;;  %v6878_v55 = vld [vmem:[%s7235_s25 + $0xf70] ss:$24 sps:$4 sm:$0xff]  }
 0x228   : > { %4808 = vmatpush1.bf16.msra.mxu0 %v6788_v56  ;;  %4491 = vmatprep.subr.bf16.mxu1 %v6793_v57  ;;  %v6883_v56 = vld [vmem:[%s7235_s25 + $0xf9c] ss:$24 sps:$4 sm:$0xff]  }
 0x229   : > { %4809 = vmatprep.subr.bf16.mxu0 %v6796_v58  ;;  %v6886_v57 = vld [vmem:[%s7235_s25 + $0xfa4] ss:$24 sps:$4 sm:$0xff]   ;;  %v6978_v58 = vld [vmem:[%s7233_s20 + $0x80] ss:$48 sps:$4 sm:$0xff]  }
 0x22b   : > { %4492 = vmatpush1.bf16.msra.mxu1 %v6791_v60  ;;  %v6884_v60 = vld [vmem:[%s7235_s25 + $0xfa0] ss:$24 sps:$4 sm:$0xff]  }
 0x22c   : > { %4810 = vmatpush1.bf16.msra.mxu0 %v6794_v61  ;;  %4493 = vmatprep.subr.bf16.mxu1 %v6799_v62  ;;  %v6889_v61 = vld [vmem:[%s7235_s25 + $0xfcc] ss:$24 sps:$4 sm:$0xff]  }
 0x22d   : > { %4811 = vmatprep.subr.bf16.mxu0 %v6802_v63  ;;  %v6892_v62 = vld [vmem:[%s7235_s25 + $0xfd4] ss:$24 sps:$4 sm:$0xff]  }
 0x22e   : > { %v6979_v63 = vld [vmem:[%s7233_s20 + $0x2c] ss:$48 sps:$4 sm:$0xff]  }
 0x22f   : > { %4494 = vmatpush1.bf16.msra.mxu1 %v6797_v0  ;;  %v6887_v0 = vld [vmem:[%s7235_s25 + $0xfc8] ss:$24 sps:$4 sm:$0xff]  }
 0x230   : > { %4812 = vmatpush1.bf16.msra.mxu0 %v6800_v1  ;;  %4495 = vmatprep.subr.bf16.mxu1 %v6805_v2  ;;  %v6890_v1 = vld [vmem:[%s7235_s25 + $0xfd0] ss:$24 sps:$4 sm:$0xff]   ;;  %v6895_v2 = vld [vmem:[%s7235_s25 + $0xffc] ss:$24 sps:$4 sm:$0xff]  }
 0x231   : > { %4813 = vmatprep.subr.bf16.mxu0 %v6808_v3  ;;  %v6898_v3 = vld [vmem:[%s7235_s25 + $0x1004] ss:$24 sps:$4 sm:$0xff]  }
 0x233   : > { %4496 = vmatpush1.bf16.msra.mxu1 %v6803_v4  ;;  %v6893_v4 = vld [vmem:[%s7235_s25 + $0xff8] ss:$24 sps:$4 sm:$0xff]  }
 0x234   : > { %4814 = vmatpush1.bf16.msra.mxu0 %v6806_v5  ;;  %4497 = vmatprep.subr.bf16.mxu1 %v6811_v6  ;;  %v6896_v5 = vld [vmem:[%s7235_s25 + $0x1000] ss:$24 sps:$4 sm:$0xff]   ;;  %v6901_v6 = vld [vmem:[%s7235_s25 + $0x102c] ss:$24 sps:$4 sm:$0xff]  }
 0x235   : > { %4815 = vmatprep.subr.bf16.mxu0 %v6814_v7  ;;  %v6904_v7 = vld [vmem:[%s7235_s25 + $0x1034] ss:$24 sps:$4 sm:$0xff]  }
 0x237   : > { %4498 = vmatpush1.bf16.msra.mxu1 %v6809_v8  ;;  %v6899_v8 = vld [vmem:[%s7235_s25 + $0x1028] ss:$24 sps:$4 sm:$0xff]  }
 0x238   : > { %4816 = vmatpush1.bf16.msra.mxu0 %v6812_v9  ;;  %4499 = vmatprep.subr.bf16.mxu1 %v6817_v10  ;;  %v6902_v9 = vld [vmem:[%s7235_s25 + $0x1030] ss:$24 sps:$4 sm:$0xff]   ;;  %v6907_v10 = vld [vmem:[%s7235_s25 + $0x105c] ss:$24 sps:$4 sm:$0xff]  }
 0x239   : > { %4817 = vmatprep.subr.bf16.mxu0 %v6820_v11  ;;  %v6910_v11 = vld [vmem:[%s7235_s25 + $0x1064] ss:$24 sps:$4 sm:$0xff]  }
 0x23b   : > { %4500 = vmatpush1.bf16.msra.mxu1 %v6815_v12  ;;  %v6905_v12 = vld [vmem:[%s7235_s25 + $0x1058] ss:$24 sps:$4 sm:$0xff]  }
 0x23c   : > { %4818 = vmatpush1.bf16.msra.mxu0 %v6818_v13  ;;  %4501 = vmatprep.subr.bf16.mxu1 %v6823_v14  ;;  %v6908_v13 = vld [vmem:[%s7235_s25 + $0x1060] ss:$24 sps:$4 sm:$0xff]   ;;  %v6913_v14 = vld [vmem:[%s7235_s25 + $0x108c] ss:$24 sps:$4 sm:$0xff]  }
 0x23d   : > { %4819 = vmatprep.subr.bf16.mxu0 %v6826_v15  ;;  %v6916_v15 = vld [vmem:[%s7235_s25 + $0x1094] ss:$24 sps:$4 sm:$0xff]  }
 0x23f   : > { %4502 = vmatpush1.bf16.msra.mxu1 %v6821_v16  ;;  %v6911_v16 = vld [vmem:[%s7235_s25 + $0x1088] ss:$24 sps:$4 sm:$0xff]  }
 0x240   : > { %4820 = vmatpush1.bf16.msra.mxu0 %v6824_v17  ;;  %4503 = vmatprep.subr.bf16.mxu1 %v6829_v18  ;;  %v6914_v17 = vld [vmem:[%s7235_s25 + $0x1090] ss:$24 sps:$4 sm:$0xff]   ;;  %v6919_v18 = vld [vmem:[%s7235_s25 + $0x10bc] ss:$24 sps:$4 sm:$0xff]  }
 0x241   : > { %4821 = vmatprep.subr.bf16.mxu0 %v6832_v19  ;;  %v6922_v19 = vld [vmem:[%s7235_s25 + $0x10c4] ss:$24 sps:$4 sm:$0xff]  }
 0x243   : > { %4504 = vmatpush1.bf16.msra.mxu1 %v6827_v20  ;;  %v6917_v20 = vld [vmem:[%s7235_s25 + $0x10b8] ss:$24 sps:$4 sm:$0xff]  }
 0x244   : > { %4822 = vmatpush1.bf16.msra.mxu0 %v6830_v21  ;;  %4505 = vmatprep.subr.bf16.mxu1 %v6835_v22  ;;  %v6920_v21 = vld [vmem:[%s7235_s25 + $0x10c0] ss:$24 sps:$4 sm:$0xff]   ;;  %v6925_v22 = vld [vmem:[%s7235_s25 + $0x10ec] ss:$24 sps:$4 sm:$0xff]  }
 0x245   : > { %4823 = vmatprep.subr.bf16.mxu0 %v6838_v23  ;;  %v6928_v23 = vld [vmem:[%s7235_s25 + $0x10f4] ss:$24 sps:$4 sm:$0xff]  }
 0x247   : > { %4506 = vmatpush1.bf16.msra.mxu1 %v6833_v24  ;;  %v6923_v24 = vld [vmem:[%s7235_s25 + $0x10e8] ss:$24 sps:$4 sm:$0xff]  }
 0x248   : > { %4824 = vmatpush1.bf16.msra.mxu0 %v6836_v25  ;;  %4507 = vmatprep.subr.bf16.mxu1 %v6841_v26  ;;  %v6926_v25 = vld [vmem:[%s7235_s25 + $0x10f0] ss:$24 sps:$4 sm:$0xff]   ;;  %v6931_v26 = vld [vmem:[%s7235_s25 + $0x111c] ss:$24 sps:$4 sm:$0xff]  }
 0x249   : > { %4825 = vmatprep.subr.bf16.mxu0 %v6844_v27  ;;  %v6934_v27 = vld [vmem:[%s7235_s25 + $0x1124] ss:$24 sps:$4 sm:$0xff]  }
 0x24b   : > { %4508 = vmatpush1.bf16.msra.mxu1 %v6839_v28  ;;  %v6929_v28 = vld [vmem:[%s7235_s25 + $0x1118] ss:$24 sps:$4 sm:$0xff]  }
 0x24c   : > { %4826 = vmatpush1.bf16.msra.mxu0 %v6842_v29  ;;  %4509 = vmatprep.subr.bf16.mxu1 %v6847_v30  ;;  %v6932_v29 = vld [vmem:[%s7235_s25 + $0x1120] ss:$24 sps:$4 sm:$0xff]   ;;  %v6937_v30 = vld [vmem:[%s7235_s25 + $0x114c] ss:$24 sps:$4 sm:$0xff]  }
 0x24d   : > { %4827 = vmatprep.subr.bf16.mxu0 %v6850_v31  ;;  %v6940_v31 = vld [vmem:[%s7235_s25 + $0x1154] ss:$24 sps:$4 sm:$0xff]  }
 0x24f   : > { %4510 = vmatpush1.bf16.msra.mxu1 %v6845_v32  ;;  %v6935_v32 = vld [vmem:[%s7235_s25 + $0x1148] ss:$24 sps:$4 sm:$0xff]  }
 0x250   : > { %4828 = vmatpush1.bf16.msra.mxu0 %v6848_v33  ;;  %4511 = vmatprep.subr.bf16.mxu1 %v6853_v34  ;;  %v6938_v33 = vld [vmem:[%s7235_s25 + $0x1150] ss:$24 sps:$4 sm:$0xff]   ;;  %v6943_v34 = vld [vmem:[%s7235_s25 + $0x117c] ss:$24 sps:$4 sm:$0xff]  }
 0x251   : > { %4829 = vmatprep.subr.bf16.mxu0 %v6856_v35  ;;  %v6946_v35 = vld [vmem:[%s7235_s25 + $0x1184] ss:$24 sps:$4 sm:$0xff]  }
 0x253   : > { %4512 = vmatpush1.bf16.msra.mxu1 %v6851_v36  ;;  %v6941_v36 = vld [vmem:[%s7235_s25 + $0x1178] ss:$24 sps:$4 sm:$0xff]  }
 0x254   : > { %4830 = vmatpush1.bf16.msra.mxu0 %v6854_v37  ;;  %4513 = vmatprep.subr.bf16.mxu1 %v6859_v38  ;;  %v6944_v37 = vld [vmem:[%s7235_s25 + $0x1180] ss:$24 sps:$4 sm:$0xff]   ;;  %v6949_v38 = vld [vmem:[%s7235_s25 + $0x11ac] ss:$24 sps:$4 sm:$0xff]  }
 0x255   : > { %4831 = vmatprep.subr.bf16.mxu0 %v6862_v39  ;;  %v6952_v39 = vld [vmem:[%s7235_s25 + $0x11b4] ss:$24 sps:$4 sm:$0xff]  }
 0x257   : > { %4514 = vmatpush1.bf16.msra.mxu1 %v6857_v40  ;;  %v6947_v40 = vld [vmem:[%s7235_s25 + $0x11a8] ss:$24 sps:$4 sm:$0xff]  }
 0x258   : > { %4832 = vmatpush1.bf16.msra.mxu0 %v6860_v41  ;;  %4536 = vmatprep.subr.bf16.mxu1 %v6865_v42  ;;  %v6950_v41 = vld [vmem:[%s7235_s25 + $0x11b0] ss:$24 sps:$4 sm:$0xff]   ;;  %v6955_v42 = vld [vmem:[%s7235_s25 + $0x11dc] ss:$24 sps:$4 sm:$0xff]  }
 0x259   : > { %4854 = vmatprep.subr.bf16.mxu0 %v6868_v43  ;;  %v6958_v43 = vld [vmem:[%s7235_s25 + $0x11e4] ss:$24 sps:$4 sm:$0xff]  }
 0x25a   : > { %4516 = vmatmul.mubr.bf16.vlgmr.msra.gmra.mrb[8].mxu1 %v6976_v48 }
 0x25b   : > { %4834 = vmatmul.mubr.bf16.vlgmr.msra.gmra.mrb[8].mxu0 %v6976_v48  ;;  %4537 = vmatpush1.bf16.msra.mxu1 %v6863_v44  ;;  %v6953_v44 = vld [vmem:[%s7235_s25 + $0x11d8] ss:$24 sps:$4 sm:$0xff]  }
 0x25c   : > { %4855 = vmatpush1.bf16.msra.mxu0 %v6866_v45  ;;  %4538 = vmatprep.subr.bf16.mxu1 %v6871_v46  ;;  %v6956_v45 = vld [vmem:[%s7235_s25 + $0x11e0] ss:$24 sps:$4 sm:$0xff]  }
 0x25d   : > { %4856 = vmatprep.subr.bf16.mxu0 %v6874_v47  ;;  %4525 = vmatprep.mubr.bf16.mxu1 %v6977_v53  ;;  %v6980_v46 = vld [vmem:[%s7233_s20 + $0x28] ss:$48 sps:$4 sm:$0xff]   ;;  %v6981_v47 = vld [vmem:[%s7233_s20 + $0x8c] ss:$48 sps:$4 sm:$0xff]  }
 0x25e   : > { %4843 = vmatprep.mubr.bf16.mxu0 %v6977_v53  ;;  %v6982_v48 = vld [vmem:[%s7233_s20 + $0x88] ss:$48 sps:$4 sm:$0xff]  }
 0x25f   : > { %4539 = vmatpush1.bf16.msra.mxu1 %v6869_v49  ;;  %v331_v49 = vld [vmem:[#allocation2 + $0x10] sm:$0xff] }
 0x260   : > { %4857 = vmatpush1.bf16.msra.mxu0 %v6872_v50  ;;  %4540 = vmatprep.subr.bf16.mxu1 %v6877_v51  ;;  %v333_v50 = vld [vmem:[#allocation2 + $0x20] sm:$0xff]  ;;  %v332_v51 = vld [vmem:[#allocation2 + $0x18] sm:$0xff] }
 0x261   : > { %4858 = vmatprep.subr.bf16.mxu0 %v6880_v52  ;;  %v334_v52 = vld [vmem:[#allocation2 + $0x28] sm:$0xff] }
 0x262   : > { %4526 = vmatmul.mubr.bf16.gmra.mrb[12].mxu1 %v6978_v58 }
 0x263   : > { %4844 = vmatmul.mubr.bf16.gmra.mrb[12].mxu0 %v6978_v58  ;;  %4541 = vmatpush1.bf16.msra.mxu1 %v6875_v54 }
 0x264   : > { %4859 = vmatpush1.bf16.msra.mxu0 %v6878_v55  ;;  %4542 = vmatprep.subr.bf16.mxu1 %v6883_v56  ;;  %v337_v55 = vld [vmem:[#allocation2 + $0x40] sm:$0xff]  ;;  %v339_v56 = vld [vmem:[#allocation2 + $0x50] sm:$0xff] }
 0x265   : > { %4860 = vmatprep.subr.bf16.mxu0 %v6886_v57  ;;  %4568 = vmatprep.mubr.bf16.mxu1 %v6979_v63 }
 0x266   : > { %4886 = vmatprep.mubr.bf16.mxu0 %v6979_v63 }
 0x267   : > { %4543 = vmatpush1.bf16.msra.mxu1 %v6881_v59 }
 0x268   : > { %4861 = vmatpush1.bf16.msra.mxu0 %v6884_v60  ;;  %4544 = vmatprep.subr.bf16.mxu1 %v6889_v61  ;;  %v338_v61 = vld [vmem:[#allocation2 + $0x48] sm:$0xff] }
 0x269   : > { %4862 = vmatprep.subr.bf16.mxu0 %v6892_v62  ;;  %v340_v62 = vld [vmem:[#allocation2 + $0x58] sm:$0xff] }
 0x26b   : > { %4545 = vmatpush1.bf16.msra.mxu1 %v6887_v0 }
 0x26c   : > { %4863 = vmatpush1.bf16.msra.mxu0 %v6890_v1  ;;  %4546 = vmatprep.subr.bf16.mxu1 %v6895_v2 }
 0x26d   : > { %4864 = vmatprep.subr.bf16.mxu0 %v6898_v3 }
 0x26f   : > { %4547 = vmatpush1.bf16.msra.mxu1 %v6893_v4 }
 0x270   : > { %4865 = vmatpush1.bf16.msra.mxu0 %v6896_v5  ;;  %4548 = vmatprep.subr.bf16.mxu1 %v6901_v6 }
 0x271   : > { %4866 = vmatprep.subr.bf16.mxu0 %v6904_v7 }
 0x273   : > { %4549 = vmatpush1.bf16.msra.mxu1 %v6899_v8 }
 0x274   : > { %4867 = vmatpush1.bf16.msra.mxu0 %v6902_v9  ;;  %4550 = vmatprep.subr.bf16.mxu1 %v6907_v10  ;;  %v343_v9 = vld [vmem:[#allocation2 + $0x70] sm:$0xff]  ;;  %v345_v10 = vld [vmem:[#allocation2 + $0x80] sm:$0xff] }
 0x275   : > { %4868 = vmatprep.subr.bf16.mxu0 %v6910_v11  ;;  %v344_v11 = vld [vmem:[#allocation2 + $0x78] sm:$0xff] }
 0x277   : > { %4551 = vmatpush1.bf16.msra.mxu1 %v6905_v12  ;;  %v346_v12 = vld [vmem:[#allocation2 + $0x88] sm:$0xff] }
 0x278   : > { %4869 = vmatpush1.bf16.msra.mxu0 %v6908_v13  ;;  %4552 = vmatprep.subr.bf16.mxu1 %v6913_v14 }
 0x279   : > { %4870 = vmatprep.subr.bf16.mxu0 %v6916_v15  ;;  %v349_v15 = vld [vmem:[#allocation2 + $0xa0] sm:$0xff] }
 0x27b   : > { %4553 = vmatpush1.bf16.msra.mxu1 %v6911_v16  ;;  %v351_v16 = vld [vmem:[#allocation2 + $0xb0] sm:$0xff] }
 0x27c   : > { %4871 = vmatpush1.bf16.msra.mxu0 %v6914_v17  ;;  %4554 = vmatprep.subr.bf16.mxu1 %v6919_v18 }
 0x27d   : > { %4872 = vmatprep.subr.bf16.mxu0 %v6922_v19 }
 0x27f   : > { %4555 = vmatpush1.bf16.msra.mxu1 %v6917_v20 }
 0x280   : > { %4873 = vmatpush1.bf16.msra.mxu0 %v6920_v21  ;;  %4556 = vmatprep.subr.bf16.mxu1 %v6925_v22  ;;  %v350_v21 = vld [vmem:[#allocation2 + $0xa8] sm:$0xff]  ;;  %v352_v22 = vld [vmem:[#allocation2 + $0xb8] sm:$0xff] }
 0x281   : > { %4874 = vmatprep.subr.bf16.mxu0 %v6928_v23 }
 0x283   : > { %4557 = vmatpush1.bf16.msra.mxu1 %v6923_v24 }
 0x284   : > { %4875 = vmatpush1.bf16.msra.mxu0 %v6926_v25  ;;  %4558 = vmatprep.subr.bf16.mxu1 %v6931_v26 }
 0x285   : > { %4876 = vmatprep.subr.bf16.mxu0 %v6934_v27 }
 0x287   : > { %4559 = vmatpush1.bf16.msra.mxu1 %v6929_v28 }
 0x288   : > { %4877 = vmatpush1.bf16.msra.mxu0 %v6932_v29  ;;  %4560 = vmatprep.subr.bf16.mxu1 %v6937_v30 }
 0x289   : > { %4878 = vmatprep.subr.bf16.mxu0 %v6940_v31 }
 0x28b   : > { %4561 = vmatpush1.bf16.msra.mxu1 %v6935_v32 }
 0x28c   : > { %4879 = vmatpush1.bf16.msra.mxu0 %v6938_v33  ;;  %4562 = vmatprep.subr.bf16.mxu1 %v6943_v34  ;;  %v4985_v33 = vlaneseq (!%p5850_p7) }
 0x28d   : > { %4880 = vmatprep.subr.bf16.mxu0 %v6946_v35  ;;  %v4983_v35 = vld [vmem:[%s7962_s2] sm:$0x3f] (!%p5850_p7) }
 0x28e   : > { %v4986_v34 = vshrl.u32 (!%p5850_p7), %v4985_v33, 7 }
 0x28f   : > { %4563 = vmatpush1.bf16.msra.mxu1 %v6941_v36  ;;  %v4959_v36 = vld [vmem:[#allocation2] sm:$0xff] (!%p5850_p7) }
 0x290   : > { %4881 = vmatpush1.bf16.msra.mxu0 %v6944_v37  ;;  %4564 = vmatprep.subr.bf16.mxu1 %v6949_v38  ;;  %v4960_v37 = vld [vmem:[#allocation2 + $0x8] sm:$0xff] (!%p5850_p7)  ;;  %v4987_v38 = vsub.s32 (!%p5850_p7), 0, %v4986_v34 }
 0x291   : > { %4882 = vmatprep.subr.bf16.mxu0 %v6952_v39  ;;  %v4991_v39 = vsub.s32 (!%p5850_p7), 1, %v4986_v34 }
 0x293   : > { %4565 = vmatpush1.bf16.msra.mxu1 %v6947_v40  ;;  %v4995_v40 = vsub.s32 (!%p5850_p7), 2, %v4986_v34 }
 0x294   : > { %4883 = vmatpush1.bf16.msra.mxu0 %v6950_v41  ;;  %4566 = vmatprep.subr.bf16.mxu1 %v6955_v42  ;;  %v4999_v41 = vsub.s32 (!%p5850_p7), 3, %v4986_v34 }
 0x295   : > { %4884 = vmatprep.subr.bf16.mxu0 %v6958_v43 }
 0x297   : > { %4567 = vmatpush1.bf16.msra.mxu1 %v6953_v44 }
 0x298   : > { %4885 = vmatpush1.bf16.msra.mxu0 %v6956_v45  ;;  %v5003_v45 = vsub.s32 (!%p5850_p7), 4, %v4986_v34 }
 0x29a   : > { %4569 = vmatmul.mubr.bf16.vlgmr.msra.gmra.mrb[8].mxu1 %v6980_v46 }
 0x29b   : > { %4887 = vmatmul.mubr.bf16.vlgmr.msra.gmra.mrb[8].mxu0 %v6980_v46  ;;  %4578 = vmatprep.mubr.bf16.mxu1 %v6981_v47  ;;  %v5007_v46 = vsub.s32 (!%p5850_p7), 5, %v4986_v34  ;;  %v4977_v34 = vld [vmem:[#allocation2 + $0x90] sm:$0xff] (!%p5850_p7) }
 0x29c   : > { %4896 = vmatprep.mubr.bf16.mxu0 %v6981_v47  ;;  %v7870_v47 = vrot.slane (!%p5850_p7), %v4983_v35, %v4987_v38 }
 0x2a2   : > { %4579 = vmatmul.mubr.bf16.gmra.mrb[12].mxu1 %v6982_v48 }
 0x2a3   : > { %4897 = vmatmul.mubr.bf16.gmra.mrb[12].mxu0 %v6982_v48  ;;  %v7872_v48 = vrot.slane (!%p5850_p7), %v4983_v35, %v4991_v39 }
 0x36d   : > { %v4570_v53 = vpop.f32.mrb[8].mxu1 }
 0x36e   : > { %v4888_v54 = vpop.f32.mrb[8].mxu0  ;;  %v4909_v57 = vadd.f32 %v4570_v53, %v331_v49  ;;  %v4572_v59 = vpop.f32.mrb[9].mxu1  ;;  %v7874_v49 = vrot.slane (!%p5850_p7), %v4983_v35, %v4995_v40  ;;  %v4966_v53 = vld [vmem:[#allocation2 + $0x38] sm:$0xff] (!%p5850_p7) }
 0x36f   : > { %v4911_v58 = vadd.f32 %v4888_v54, %v333_v50  ;;  %v4890_v60 = vpop.f32.mrb[9].mxu0  ;;  %v4910_v63 = vadd.f32 %v4572_v59, %v332_v51  ;;  %v4574_v1 = vpop.f32.mrb[10].mxu1  ;;  %v7876_v50 = vrot.slane (!%p5850_p7), %v4983_v35, %v4999_v41  ;;  %v7878_v54 = vrot.slane (!%p5850_p7), %v4983_v35, %v5003_v45 }
 0x370   : > { %v4912_v0 = vadd.f32 %v4890_v60, %v334_v52  ;;  %v4892_v2 = vpop.f32.mrb[10].mxu0  ;;  %4933 = vst [vmem:[#allocation2 + $0x10] sm:$0xff] %v4909_v57  ;;  %v4915_v3 = vadd.f32 %v4574_v1, %v337_v55  ;;  %v4576_v5 = vpop.f32.mrb[11].mxu1  ;;  %v4965_v52 = vld [vmem:[#allocation2 + $0x30] sm:$0xff] (!%p5850_p7)  ;;  %v7880_v55 = vrot.slane (!%p5850_p7), %v4983_v35, %v5007_v46  ;;  %v5016_v57 = vadd.f32 (!%p5850_p7), %v7872_v48, %v4960_v37  ;;  %v4978_v35 = vld [vmem:[#allocation2 + $0x98] sm:$0xff] (!%p5850_p7) }
 0x371   : > { %4935 = vst [vmem:[#allocation2 + $0x20] sm:$0xff] %v4911_v58  ;;  %v4917_v4 = vadd.f32 %v4892_v2, %v339_v56  ;;  %v4894_v6 = vpop.f32.mrb[11].mxu0  ;;  %4934 = vst [vmem:[#allocation2 + $0x18] sm:$0xff] %v4910_v63  ;;  %v4916_v7 = vadd.f32 %v4576_v5, %v338_v61  ;;  %v5015_v56 = vadd.f32 (!%p5850_p7), %v7870_v47, %v4959_v36 }
 0x372   : > { %4936 = vst [vmem:[#allocation2 + $0x28] sm:$0xff] %v4912_v0  ;;  %v4918_v8 = vadd.f32 %v4894_v6, %v340_v62  ;;  %4939 = vst [vmem:[#allocation2 + $0x40] sm:$0xff] %v4915_v3  ;;  %v5021_v62 = vadd.f32 (!%p5850_p7), %v7870_v47, %v4965_v52  ;;  %v5022_v63 = vadd.f32 (!%p5850_p7), %v7872_v48, %v4966_v53  ;;  %v5040_v3 = vmax.f32 (!%p5850_p7), %v5016_v57, 0.0 }
 0x373   : > { %4941 = vst [vmem:[#allocation2 + $0x50] sm:$0xff] %v4917_v4  ;;  %4940 = vst [vmem:[#allocation2 + $0x48] sm:$0xff] %v4916_v7  ;;  %v5039_v2 = vmax.f32 (!%p5850_p7), %v5015_v56, 0.0  ;;  %v5033_v56 = vadd.f32 (!%p5850_p7), %v7870_v47, %v4977_v34  ;;  %v5034_v57 = vadd.f32 (!%p5850_p7), %v7872_v48, %v4978_v35 }
 0x374   : > { %4942 = vst [vmem:[#allocation2 + $0x58] sm:$0xff] %v4918_v8 }
 0x375   : > { %v4580_v13 = vpop.f32.mrb[12].mxu1 }
 0x376   : > { %v4898_v14 = vpop.f32.mrb[12].mxu0  ;;  %v4921_v17 = vadd.f32 %v4580_v13, %v343_v9  ;;  %v4582_v19 = vpop.f32.mrb[13].mxu1  ;;  %4958 = sbr.rel (%p5850_p7) target bundleno = 907 (0x38b), region = 67  ;;  %v4972_v13 = vld [vmem:[#allocation2 + $0x68] sm:$0xff] (!%p5850_p7) }
 0x377   : > { %v4923_v18 = vadd.f32 %v4898_v14, %v345_v10  ;;  %v4900_v20 = vpop.f32.mrb[13].mxu0  ;;  %v4922_v23 = vadd.f32 %v4582_v19, %v344_v11  ;;  %v4584_v25 = vpop.f32.mrb[14].mxu1  ;;  %v4961_v42 = vld [vmem:[#allocation2 + $0x10] sm:$0xff] (!%p5850_p7)  ;;  %v5045_v10 = vmax.f32 (!%p5850_p7), %v5021_v62, 0.0  ;;  %v5046_v11 = vmax.f32 (!%p5850_p7), %v5022_v63, 0.0 }
 0x378   : > { %v4924_v24 = vadd.f32 %v4900_v20, %v346_v12  ;;  %v4902_v26 = vpop.f32.mrb[14].mxu0  ;;  %4945 = vst [vmem:[#allocation2 + $0x70] sm:$0xff] %v4921_v17  ;;  %v4927_v27 = vadd.f32 %v4584_v25, %v349_v15  ;;  %v4586_v29 = vpop.f32.mrb[15].mxu1  ;;  %v4962_v43 = vld [vmem:[#allocation2 + $0x18] sm:$0xff] (!%p5850_p7)  ;;  %v4963_v44 = vld [vmem:[#allocation2 + $0x20] sm:$0xff] (!%p5850_p7)  ;;  %v5017_v58 = vadd.f32 (!%p5850_p7), %v7874_v49, %v4961_v42  ;;  %v5868_v14 = vpack.c.bf16 (!%p5850_p7), %v5040_v3, %v5039_v2 }
 0x379   : > { %4947 = vst [vmem:[#allocation2 + $0x80] sm:$0xff] %v4923_v18  ;;  %v4929_v28 = vadd.f32 %v4902_v26, %v351_v16  ;;  %v4904_v30 = vpop.f32.mrb[15].mxu0  ;;  %4946 = vst [vmem:[#allocation2 + $0x78] sm:$0xff] %v4922_v23  ;;  %v4928_v31 = vadd.f32 %v4586_v29, %v350_v21  ;;  %v4964_v51 = vld [vmem:[#allocation2 + $0x28] sm:$0xff] (!%p5850_p7)  ;;  %v5018_v59 = vadd.f32 (!%p5850_p7), %v7876_v50, %v4962_v43  ;;  %v4967_v0 = vld [vmem:[#allocation2 + $0x40] sm:$0xff] (!%p5850_p7)  ;;  %v5057_v62 = vmax.f32 (!%p5850_p7), %v5033_v56, 0.0 }
 0x37a   : > { %4948 = vst [vmem:[#allocation2 + $0x88] sm:$0xff] %v4924_v24  ;;  %v4930_v32 = vadd.f32 %v4904_v30, %v352_v22  ;;  %4951 = vst [vmem:[#allocation2 + $0xa0] sm:$0xff] %v4927_v27  ;;  %v5019_v60 = vadd.f32 (!%p5850_p7), %v7878_v54, %v4963_v44  ;;  %v5020_v61 = vadd.f32 (!%p5850_p7), %v7880_v55, %v4964_v51  ;;  %v4968_v1 = vld [vmem:[#allocation2 + $0x48] sm:$0xff] (!%p5850_p7)  ;;  %v5041_v4 = vmax.f32 (!%p5850_p7), %v5017_v58, 0.0  ;;  %v4969_v6 = vld [vmem:[#allocation2 + $0x50] sm:$0xff] (!%p5850_p7) }
 0x37b   : > { %4953 = vst [vmem:[#allocation2 + $0xb0] sm:$0xff] %v4929_v28  ;;  %4952 = vst [vmem:[#allocation2 + $0xa8] sm:$0xff] %v4928_v31  ;;  %v5042_v5 = vmax.f32 (!%p5850_p7), %v5018_v59, 0.0  ;;  %v4970_v7 = vld [vmem:[#allocation2 + $0x58] sm:$0xff] (!%p5850_p7)  ;;  %v4971_v12 = vld [vmem:[#allocation2 + $0x60] sm:$0xff] (!%p5850_p7)  ;;  %v5023_v16 = vadd.f32 (!%p5850_p7), %v7874_v49, %v4967_v0  ;;  %v5024_v17 = vadd.f32 (!%p5850_p7), %v7876_v50, %v4968_v1  ;;  %v5871_v21 = vpack.c.bf16 (!%p5850_p7), %v5046_v11, %v5045_v10 }
 0x37c   : > { %4954 = vst [vmem:[#allocation2 + $0xb8] sm:$0xff] %v4930_v32  ;;  %v5043_v8 = vmax.f32 (!%p5850_p7), %v5019_v60, 0.0  ;;  %v5044_v9 = vmax.f32 (!%p5850_p7), %v5020_v61, 0.0  ;;  %v5025_v22 = vadd.f32 (!%p5850_p7), %v7878_v54, %v4969_v6  ;;  %v5026_v23 = vadd.f32 (!%p5850_p7), %v7880_v55, %v4970_v7  ;;  %5135 = vst [vmem:[%s7963_s3] sm:$0xff] (!%p5850_p7), %v5868_v14 }
 0x37d   : > { %v5869_v15 = vpack.c.bf16 %v5042_v5, %v5041_v4  ;;  %v5047_v25 = vmax.f32 %v5023_v16, 0.0  ;;  %v5048_v26 = vmax.f32 %v5024_v17, 0.0  ;;  %v5027_v27 = vadd.f32 %v7870_v47, %v4971_v12  ;;  %5138 = vst [vmem:[%s7963_s3 + $0x18] sm:$0xff] %v5871_v21 }
 0x37e   : > { %v5870_v20 = vpack.c.bf16 %v5044_v9, %v5043_v8  ;;  %v5028_v28 = vadd.f32 %v7872_v48, %v4972_v13  ;;  %v5049_v30 = vmax.f32 %v5025_v22, 0.0  ;;  %v5050_v31 = vmax.f32 %v5026_v23, 0.0 }
 0x37f   : > { %v4973_v18 = vld [vmem:[#allocation2 + $0x70] sm:$0xff]  ;;  %5136 = vst [vmem:[%s7963_s3 + $0x8] sm:$0xff] %v5869_v15  ;;  %v5872_v36 = vpack.c.bf16 %v5048_v26, %v5047_v25  ;;  %v5051_v37 = vmax.f32 %v5027_v27, 0.0  ;;  %v5058_v63 = vmax.f32 %v5034_v57, 0.0 }
 0x380   : > { %v4974_v19 = vld [vmem:[#allocation2 + $0x78] sm:$0xff]  ;;  %v4975_v24 = vld [vmem:[#allocation2 + $0x80] sm:$0xff]  ;;  %5137 = vst [vmem:[%s7963_s3 + $0x10] sm:$0xff] %v5870_v20  ;;  %v5029_v32 = vadd.f32 %v7874_v49, %v4973_v18  ;;  %v5052_v38 = vmax.f32 %v5028_v28, 0.0  ;;  %v5873_v42 = vpack.c.bf16 %v5050_v31, %v5049_v30 }
 0x381   : > { %v4976_v29 = vld [vmem:[#allocation2 + $0x88] sm:$0xff]  ;;  %v5030_v33 = vadd.f32 %v7876_v50, %v4974_v19  ;;  %v5031_v39 = vadd.f32 %v7878_v54, %v4975_v24  ;;  %v4979_v40 = vld [vmem:[#allocation2 + $0xa0] sm:$0xff]  ;;  %5139 = vst [vmem:[%s7963_s3 + $0x20] sm:$0xff] %v5872_v36 }
 0x382   : > { %v4980_v41 = vld [vmem:[#allocation2 + $0xa8] sm:$0xff]  ;;  %v5053_v43 = vmax.f32 %v5029_v32, 0.0  ;;  %v5032_v45 = vadd.f32 %v7880_v55, %v4976_v29  ;;  %v4981_v46 = vld [vmem:[#allocation2 + $0xb0] sm:$0xff]  ;;  %v5874_v52 = vpack.c.bf16 %v5052_v38, %v5051_v37  ;;  %5140 = vst [vmem:[%s7963_s3 + $0x28] sm:$0xff] %v5873_v42  ;;  %v5035_v60 = vadd.f32 %v7874_v49, %v4979_v40 }
 0x383   : > { %v5054_v44 = vmax.f32 %v5030_v33, 0.0  ;;  %v4982_v51 = vld [vmem:[#allocation2 + $0xb8] sm:$0xff]  ;;  %v5055_v53 = vmax.f32 %v5031_v39, 0.0  ;;  %v5036_v61 = vadd.f32 %v7876_v50, %v4980_v41  ;;  %v5037_v47 = vadd.f32 %v7878_v54, %v4981_v46 }
 0x384   : > { %v5056_v59 = vmax.f32 %v5032_v45, 0.0  ;;  %5141 = vst [vmem:[%s7963_s3 + $0x30] sm:$0xff] %v5874_v52  ;;  %v5038_v48 = vadd.f32 %v7880_v55, %v4982_v51  ;;  %v5059_v1 = vmax.f32 %v5035_v60, 0.0  ;;  %v5877_v49 = vpack.c.bf16 %v5058_v63, %v5057_v62 }
 0x385   : > { %v5875_v58 = vpack.c.bf16 %v5054_v44, %v5053_v43  ;;  %v5060_v2 = vmax.f32 %v5036_v61, 0.0  ;;  %v5061_v3 = vmax.f32 %v5037_v47, 0.0 }
 0x386   : > { %v5876_v0 = vpack.c.bf16 %v5056_v59, %v5055_v53  ;;  %v5062_v50 = vmax.f32 %v5038_v48, 0.0  ;;  %5144 = vst [vmem:[%s7963_s3 + $0x48] sm:$0xff] %v5877_v49 }
 0x387   : > { %5142 = vst [vmem:[%s7963_s3 + $0x38] sm:$0xff] %v5875_v58  ;;  %v5878_v4 = vpack.c.bf16 %v5060_v2, %v5059_v1 }
 0x388   : > { %5143 = vst [vmem:[%s7963_s3 + $0x40] sm:$0xff] %v5876_v0  ;;  %v5879_v54 = vpack.c.bf16 %v5062_v50, %v5061_v3 }
 0x389   : > { %5145 = vst [vmem:[%s7963_s3 + $0x50] sm:$0xff] %v5878_v4 }
 0x38a   : > { %5146 = vst [vmem:[%s7963_s3 + $0x58] sm:$0xff] %v5879_v54 }
 0x38b PF: > { %s16_s17 = sadd.s32 1, %s7061_s17   ;;  %s7966_s12 = smov %s7045_s13 }
 0x38c   : > { %p13_p2 = scmp.ge.s32.totalorder %s16_s17, 10   ;;  %s7967_s13 = smov %s7049_s14 }
 0x38d   : > { %s7968_s14 = smov %s7135_s24  ;;  %s7969_s15 = smov %s7057_s16 }
 0x38e   : > { %s7970_s16 = smov %s7972_s19  ;;  %15 = sbr.rel (!%p13_p2) target bundleno = 4 (0x4), region = 111 }
 0x395   :  { %5171 = vsyncpa [#allocation5], 1 }
 0x396   :  { %5173 = vsyncpa [#allocation5 + $0x1], 1 }

// kernel: cnn_encoder_forward.3
= control target key start
LH: loop header
LB: loop body
LE: loop exit
PB: predicated region body
PF: predicated region fallthrough
CT: control target
= control target key end

     0   :  { %8 = vsyncpa [#allocation5], 0  ;;  %s7290_s0 = inlined_call_operand.vmem [shape: bf16[16,12288], index: 0, kind: input, shape index: {}]   ;;  %s7291_s1 = inlined_call_operand.hbm [shape: bf16[12288,768], index: 1, kind: input, shape index: {}]   ;;  %s7292_s2 = inlined_call_operand.vmem [shape: f32[1,768], index: 2, kind: input, shape index: {}]   ;;  %s7293_s3 = inlined_call_operand.vmem [shape: f32[16,768], index: 3, kind: output, shape index: {}]  }
   0x1   :  { %10 = vsyncpa [#allocation5 + $0x1], 0  ;;  %s6529_s12 = smov 0   ;;  %s6531_s13 = smov 0  }
   0x2   :  { %s6533_s14 = smov 0   ;;  %s6535_s15 = smov 0  }
   0x3   :  { %s6537_s16 = smov 0   ;;  %s6539_s17 = smov 0  }
   0x4 LB: > { %s4811_s18 = sadd.s32 4294967295, %s6503_s17   ;;  %s25_s19 = sadd.s32 1, %s6499_s16  ;;  %s6503_s17 = sphi %s6539_s17, %s16_s17   ;;  %s6499_s16 = sphi %s6537_s16, %s7300_s16   ;;  %s6495_s15 = sphi %s6535_s15, %s7299_s15   ;;  %s6491_s14 = sphi %s6533_s14, %s7298_s14   ;;  %s6487_s13 = sphi %s6531_s13, %s7297_s13   ;;  %s6483_s12 = sphi %s6529_s12, %s7296_s12  }
   0x5   : > { %p26_p0 = scmp.ge.s32.totalorder %s25_s19, 8  ;;  %s37_s20 = sadd.s32 1, %s6491_s14 }
   0x6   : > { %p44_p1 = scmp.ne.s32.totalorder %s6491_s14, %s6487_s13  ;;  %p45_p2 = scmp.eq.s32.totalorder %s6503_s17, 0 }
   0x7   : > { %s7302_s19 = smov (%p26_p0, %s25_s19), 0  ;;  %p76_p4 = scmp.ne.s32.totalorder %s6487_s13, %s6483_s12 }
   0x8   : > { %p6565_p3 = por %p45_p2, %p44_p1  ;;  %s33_s22 = ssub.s32 %s6499_s16, %s7302_s19 }
   0x9   : > { %p77_p5 = scmp.eq.s32.totalorder %s4811_s18, 0  ;;  %p35_p6 = scmp.eq.s32.totalorder %s33_s22, 0 }
   0xa   : > { %p4813_p8 = scmp.ge.s32.totalorder %s6503_s17, 8 }
   0xb   : > { %p6572_p7 = por %p77_p5, %p76_p4 }
   0xc   : > { %s6577_s24 = scalar_select %p35_p6, %s6491_s14, %s37_s20  }
   0xd   : > { %146 = sbr.rel (%p4813_p8) target bundleno = 57 (0x39), region = 20 }
  0x14   : > { %149 = sbr.rel (!%p6565_p3) target bundleno = 31 (0x1f), region = 24  ;;  %s151_s25 = sand.u32 (%p6565_p3), 1, %s6491_s14  }
  0x15   : > { %s5411_s26 = smul.u32 (%p6565_p3), 48, %s6499_s16 }
  0x16   : > { %s5472_s27 = smul.u32 (%p6565_p3), 96, %s151_s25 }
  0x17   : > { %s159_s30 = scalar_lea.vmem (%p6565_p3), %s7290_s0, %s5411_s26 }
  0x18   : > { %v172_v0 = vld [vmem:[%s159_s30] sm:$0xff] (%p6565_p3)  ;;  %v174_v1 = vld [vmem:[%s159_s30 + $0x8] sm:$0xff] (%p6565_p3)  ;;  %v176_v2 = vld [vmem:[%s159_s30 + $0x10] sm:$0xff] (%p6565_p3)  ;;  %s153_s4 = scalar_lea.vmem (%p6565_p3), [#allocation3], %s5472_s27 }
  0x19   : > { %173 = vst [vmem:[%s153_s4] sm:$0xff] (%p6565_p3), %v172_v0  ;;  %175 = vst [vmem:[%s153_s4 + $0x8] sm:$0xff] (%p6565_p3), %v174_v1  ;;  %v178_v3 = vld [vmem:[%s159_s30 + $0x18] sm:$0xff] (%p6565_p3)  ;;  %v180_v4 = vld [vmem:[%s159_s30 + $0x20] sm:$0xff] (%p6565_p3) }
  0x1a   : > { %177 = vst [vmem:[%s153_s4 + $0x10] sm:$0xff] (%p6565_p3), %v176_v2  ;;  %v182_v5 = vld [vmem:[%s159_s30 + $0x28] sm:$0xff] (%p6565_p3)  ;;  %179 = vst [vmem:[%s153_s4 + $0x18] sm:$0xff] (%p6565_p3), %v178_v3  ;;  %v184_v6 = vld [vmem:[%s159_s30 + $0x180] sm:$0xff] (%p6565_p3) }
  0x1b   : > { %181 = vst [vmem:[%s153_s4 + $0x20] sm:$0xff] %v180_v4  ;;  %183 = vst [vmem:[%s153_s4 + $0x28] sm:$0xff] %v182_v5  ;;  %v186_v7 = vld [vmem:[%s159_s30 + $0x188] sm:$0xff]  ;;  %v188_v8 = vld [vmem:[%s159_s30 + $0x190] sm:$0xff] }
  0x1c   : > { %185 = vst [vmem:[%s153_s4 + $0x30] sm:$0xff] %v184_v6  ;;  %187 = vst [vmem:[%s153_s4 + $0x38] sm:$0xff] %v186_v7  ;;  %v190_v9 = vld [vmem:[%s159_s30 + $0x198] sm:$0xff]  ;;  %v192_v10 = vld [vmem:[%s159_s30 + $0x1a0] sm:$0xff] }
  0x1d   : > { %189 = vst [vmem:[%s153_s4 + $0x40] sm:$0xff] %v188_v8  ;;  %v194_v11 = vld [vmem:[%s159_s30 + $0x1a8] sm:$0xff]  ;;  %191 = vst [vmem:[%s153_s4 + $0x48] sm:$0xff] %v190_v9 }
  0x1e   : > { %193 = vst [vmem:[%s153_s4 + $0x50] sm:$0xff] %v192_v10  ;;  %195 = vst [vmem:[%s153_s4 + $0x58] sm:$0xff] %v194_v11 }
  0x1f PF: > { %s202_s5 = sand.u32 1, %s6491_s14   ;;  %s5479_s7 = smul.u32 73728, %s6499_s16 }
  0x20   : > { %s5473_s6 = smul.u32 4608, %s202_s5  ;;  %s6596_s18 = scalar_lea.sflag [#allocation5], %s202_s5 }
  0x21   : > { %s6592_s10 = scalar_lea.hbm %s7291_s1, %s5479_s7  ;;  %s6429_s26 = scalar_lea.hbm %s7291_s1, 589824 }
  0x22   : > { %s206_s11 = scalar_lea.vmem [#allocation4], %s5473_s6  ;;  %s6425_s20 = scalar_lea.hbm %s6592_s10, 73728 }
  0x23   : > { %s214_s12 = sshll.u32 %s206_s11, 4  ;;  %p6426_p9 = scmp.ne.s32.totalorder %s6592_s10, %s6425_s20  ;;  %s6594_s12 = int_to_ptr.vmem [resolvable:$true] %s214_s12 }
  0x24   : > { %p6430_p12 = scmp.lt.u32.totalorder %s6592_s10, %s7291_s1  ;;  %p6431_p13 = scmp.lt.u32.totalorder %s6429_s26, %s6425_s20 }
  0x25   : > { %p6427_p10 = pnand %p6426_p9, %p6565_p3  ;;  %p6433_p1 = scmp.lt.u32.totalorder %s6425_s20, %s6592_s10 }
  0x26   : > { %p6432_p0 = por %p6431_p13, %p6430_p12 }
  0x27   : > { %p6428_p11 = pneg %p6427_p10 }
  0x28   : > { %p6434_p2 = por %p6433_p1, %p6432_p0 }
  0x2a   : > { %p6435_p4 = pnand %p6434_p2, %p6428_p11 }
  0x2c   : > { %6438 = shalt.err (!%p6435_p4)
}
  0x2d   : > { %s6439_s29 = scalar_lea.vmem %s6594_s12, 73728  ;;  %s6505_s30 = smov [#allocation4]  }
  0x2e   : > { %p6440_p5 = scmp.ne.s32.totalorder %s6594_s12, %s6439_s29  ;;  %s6443_s4 = sshll.u32 %s6505_s30, 4  ;;  %s6444_s4 = int_to_ptr.vmem [resolvable:$false] %s6443_s4 }
  0x2f   : > { %s6445_s5 = scalar_lea.vmem %s6444_s4, 147456  ;;  %p6446_p9 = scmp.lt.s32.totalorder %s6594_s12, %s6444_s4 }
  0x30   : > { %p6441_p6 = pnand %p6440_p5, %p6565_p3  ;;  %p6447_p10 = scmp.lt.s32.totalorder %s6445_s5, %s6439_s29 }
  0x32   : > { %p6442_p8 = pneg %p6441_p6  ;;  %p6448_p12 = por %p6447_p10, %p6446_p9 }
  0x34   : > { %p6449_p13 = pnand %p6448_p12, %p6442_p8 }
  0x36   : > { %6452 = shalt.err (!%p6449_p13)
}
  0x37   : > { %s6506_s6 = smov 384   ;;  %s6507_s7 = smov 24  }
  0x38   : > { %5477 = dma.hbm_to_vmem [thread:$0]  (%p6565_p3), %s6592_s10, 73728, %s6594_s12, %s6596_s18, %s6506_s6, %s6506_s6, %s6507_s7  }
  0x39 PF: > { %p4816_p11 = scmp.ge.s32.totalorder %s6503_s17, 1  ;;  %p222_p0 = scmp.lt.s32.totalorder %s6503_s17, 9 }
  0x3b   : > { %p223_p1 = pnand %p4816_p11, %p222_p0 }
  0x3c   : > { %s229_s8 = sand.u32 (!%p223_p1), 1, %s6487_s13  }
  0x3d   : > { %226 = sbr.rel (%p223_p1) target bundleno = 886 (0x376), region = 51  ;;  %s236_s22 = scalar_lea.sflag (!%p223_p1), [#allocation5], %s229_s8 }
  0x3e   : > { %s5475_s9 = smul.u32 (!%p223_p1), 96, %s229_s8 }
  0x3f   : > { %s5476_s11 = smul.u32 (!%p223_p1), 4608, %s229_s8 }
  0x40   : > { %s6623_s20 = scalar_lea.vmem (!%p223_p1), [#allocation3], %s5475_s9 }
  0x41   : > { %s6625_s25 = scalar_lea.vmem (!%p223_p1), [#allocation4], %s5476_s11 }
  0x44   : > { %6478 = dma.done.wait (%p6572_p7), %s236_s22, 73728  }
  0x45   : > { %6480 = vsyncadd (%p6572_p7), %s236_s22, 4294893568  ;;  %p4817_p3 = scmp.ne.s32.totalorder %s6495_s15, 0 }
  0x46   : > { %v6508_v12 = vmov (!%p4817_p3), 0.0  }
  0x47   : > { %280 = sbr.rel (%p4817_p3) target bundleno = 78 (0x4e), region = 63  ;;  %281 = vst [vmem:[#allocation2] sm:$0xff] (!%p4817_p3), %v6508_v12  ;;  %282 = vst [vmem:[#allocation2 + $0x8] sm:$0xff] (!%p4817_p3), %v6508_v12 }
  0x48   : > { %283 = vst [vmem:[#allocation2 + $0x10] sm:$0xff] (!%p4817_p3), %v6508_v12  ;;  %284 = vst [vmem:[#allocation2 + $0x18] sm:$0xff] (!%p4817_p3), %v6508_v12 }
  0x49   : > { %285 = vst [vmem:[#allocation2 + $0x20] sm:$0xff] (!%p4817_p3), %v6508_v12  ;;  %286 = vst [vmem:[#allocation2 + $0x28] sm:$0xff] (!%p4817_p3), %v6508_v12 }
  0x4a   : > { %287 = vst [vmem:[#allocation2 + $0x30] sm:$0xff] (!%p4817_p3), %v6508_v12  ;;  %288 = vst [vmem:[#allocation2 + $0x38] sm:$0xff] (!%p4817_p3), %v6508_v12 }
  0x4b   : > { %289 = vst [vmem:[#allocation2 + $0x40] sm:$0xff] (!%p4817_p3), %v6508_v12  ;;  %290 = vst [vmem:[#allocation2 + $0x48] sm:$0xff] (!%p4817_p3), %v6508_v12 }
  0x4c   : > { %291 = vst [vmem:[#allocation2 + $0x50] sm:$0xff] (!%p4817_p3), %v6508_v12  ;;  %292 = vst [vmem:[#allocation2 + $0x58] sm:$0xff] (!%p4817_p3), %v6508_v12 }
  0x4e PF: > { %v5531_v13 = vld [vmem:[%s6625_s25 + $0x4] ss:$24 sps:$4 sm:$0xff]   ;;  %v5535_v15 = vld [vmem:[%s6625_s25] ss:$24 sps:$4 sm:$0xff]   ;;  %v5537_v17 = vld [vmem:[%s6625_s25 + $0x34] ss:$24 sps:$4 sm:$0xff]  }
  0x4f   : > { %v5533_v14 = vld [vmem:[%s6625_s25 + $0x904] ss:$24 sps:$4 sm:$0xff]   ;;  %3833 = vmatprep.subr.bf16.mxu1 %v5531_v13  ;;  %v5536_v16 = vld [vmem:[%s6625_s25 + $0x900] ss:$24 sps:$4 sm:$0xff]   ;;  %v5539_v18 = vld [vmem:[%s6625_s25 + $0x934] ss:$24 sps:$4 sm:$0xff]  }
  0x50   : > { %3962 = vmatprep.subr.bf16.mxu0 %v5533_v14  ;;  %3834 = vmatpush1.bf16.msra.mxu1 %v5535_v15  ;;  %v5541_v19 = vld [vmem:[%s6625_s25 + $0x30] ss:$24 sps:$4 sm:$0xff]   ;;  %v5543_v21 = vld [vmem:[%s6625_s25 + $0x64] ss:$24 sps:$4 sm:$0xff]   ;;  %v5547_v23 = vld [vmem:[%s6625_s25 + $0x60] ss:$24 sps:$4 sm:$0xff]  }
  0x51   : > { %3963 = vmatpush1.bf16.msra.mxu0 %v5536_v16  ;;  %3835 = vmatprep.subr.bf16.mxu1 %v5537_v17  ;;  %v5542_v20 = vld [vmem:[%s6625_s25 + $0x930] ss:$24 sps:$4 sm:$0xff]   ;;  %v5545_v22 = vld [vmem:[%s6625_s25 + $0x964] ss:$24 sps:$4 sm:$0xff]   ;;  %v5548_v24 = vld [vmem:[%s6625_s25 + $0x960] ss:$24 sps:$4 sm:$0xff]  }
  0x52   : > { %3964 = vmatprep.subr.bf16.mxu0 %v5539_v18  ;;  %v5549_v25 = vld [vmem:[%s6625_s25 + $0x94] ss:$24 sps:$4 sm:$0xff]   ;;  %v5553_v27 = vld [vmem:[%s6625_s25 + $0x90] ss:$24 sps:$4 sm:$0xff]   ;;  %v5555_v29 = vld [vmem:[%s6625_s25 + $0xc4] ss:$24 sps:$4 sm:$0xff]  }
  0x53   : > { %v5551_v26 = vld [vmem:[%s6625_s25 + $0x994] ss:$24 sps:$4 sm:$0xff]   ;;  %v5554_v28 = vld [vmem:[%s6625_s25 + $0x990] ss:$24 sps:$4 sm:$0xff]   ;;  %v5557_v30 = vld [vmem:[%s6625_s25 + $0x9c4] ss:$24 sps:$4 sm:$0xff]  }
  0x54   : > { %3836 = vmatpush1.bf16.msra.mxu1 %v5541_v19  ;;  %v5559_v31 = vld [vmem:[%s6625_s25 + $0xc0] ss:$24 sps:$4 sm:$0xff]   ;;  %v5561_v33 = vld [vmem:[%s6625_s25 + $0xf4] ss:$24 sps:$4 sm:$0xff]   ;;  %v5565_v35 = vld [vmem:[%s6625_s25 + $0xf0] ss:$24 sps:$4 sm:$0xff]  }
  0x55   : > { %3965 = vmatpush1.bf16.msra.mxu0 %v5542_v20  ;;  %3837 = vmatprep.subr.bf16.mxu1 %v5543_v21  ;;  %v5560_v32 = vld [vmem:[%s6625_s25 + $0x9c0] ss:$24 sps:$4 sm:$0xff]   ;;  %v5563_v34 = vld [vmem:[%s6625_s25 + $0x9f4] ss:$24 sps:$4 sm:$0xff]   ;;  %v5566_v36 = vld [vmem:[%s6625_s25 + $0x9f0] ss:$24 sps:$4 sm:$0xff]  }
  0x56   : > { %3966 = vmatprep.subr.bf16.mxu0 %v5545_v22  ;;  %v5567_v37 = vld [vmem:[%s6625_s25 + $0x124] ss:$24 sps:$4 sm:$0xff]   ;;  %v5571_v39 = vld [vmem:[%s6625_s25 + $0x120] ss:$24 sps:$4 sm:$0xff]   ;;  %v5573_v41 = vld [vmem:[%s6625_s25 + $0x154] ss:$24 sps:$4 sm:$0xff]  }
  0x57   : > { %v5569_v38 = vld [vmem:[%s6625_s25 + $0xa24] ss:$24 sps:$4 sm:$0xff]   ;;  %v5572_v40 = vld [vmem:[%s6625_s25 + $0xa20] ss:$24 sps:$4 sm:$0xff]   ;;  %v5575_v42 = vld [vmem:[%s6625_s25 + $0xa54] ss:$24 sps:$4 sm:$0xff]  }
  0x58   : > { %3838 = vmatpush1.bf16.msra.mxu1 %v5547_v23  ;;  %v5577_v43 = vld [vmem:[%s6625_s25 + $0x150] ss:$24 sps:$4 sm:$0xff]   ;;  %v5579_v45 = vld [vmem:[%s6625_s25 + $0x184] ss:$24 sps:$4 sm:$0xff]   ;;  %v5583_v47 = vld [vmem:[%s6625_s25 + $0x180] ss:$24 sps:$4 sm:$0xff]  }
  0x59   : > { %3967 = vmatpush1.bf16.msra.mxu0 %v5548_v24  ;;  %3839 = vmatprep.subr.bf16.mxu1 %v5549_v25  ;;  %v5578_v44 = vld [vmem:[%s6625_s25 + $0xa50] ss:$24 sps:$4 sm:$0xff]   ;;  %v5581_v46 = vld [vmem:[%s6625_s25 + $0xa84] ss:$24 sps:$4 sm:$0xff]   ;;  %v5584_v48 = vld [vmem:[%s6625_s25 + $0xa80] ss:$24 sps:$4 sm:$0xff]  }
  0x5a   : > { %3968 = vmatprep.subr.bf16.mxu0 %v5551_v26  ;;  %v5585_v49 = vld [vmem:[%s6625_s25 + $0x1b4] ss:$24 sps:$4 sm:$0xff]   ;;  %v5589_v51 = vld [vmem:[%s6625_s25 + $0x1b0] ss:$24 sps:$4 sm:$0xff]   ;;  %v5591_v53 = vld [vmem:[%s6625_s25 + $0x1e4] ss:$24 sps:$4 sm:$0xff]  }
  0x5b   : > { %v5587_v50 = vld [vmem:[%s6625_s25 + $0xab4] ss:$24 sps:$4 sm:$0xff]   ;;  %v5590_v52 = vld [vmem:[%s6625_s25 + $0xab0] ss:$24 sps:$4 sm:$0xff]   ;;  %v5593_v54 = vld [vmem:[%s6625_s25 + $0xae4] ss:$24 sps:$4 sm:$0xff]  }
  0x5c   : > { %3840 = vmatpush1.bf16.msra.mxu1 %v5553_v27  ;;  %v5595_v55 = vld [vmem:[%s6625_s25 + $0x1e0] ss:$24 sps:$4 sm:$0xff]   ;;  %v5597_v57 = vld [vmem:[%s6625_s25 + $0x214] ss:$24 sps:$4 sm:$0xff]   ;;  %v5601_v59 = vld [vmem:[%s6625_s25 + $0x210] ss:$24 sps:$4 sm:$0xff]  }
  0x5d   : > { %3969 = vmatpush1.bf16.msra.mxu0 %v5554_v28  ;;  %3841 = vmatprep.subr.bf16.mxu1 %v5555_v29  ;;  %v5596_v56 = vld [vmem:[%s6625_s25 + $0xae0] ss:$24 sps:$4 sm:$0xff]   ;;  %v5599_v58 = vld [vmem:[%s6625_s25 + $0xb14] ss:$24 sps:$4 sm:$0xff]   ;;  %v5602_v60 = vld [vmem:[%s6625_s25 + $0xb10] ss:$24 sps:$4 sm:$0xff]  }
  0x5e   : > { %3970 = vmatprep.subr.bf16.mxu0 %v5557_v30  ;;  %v5627_v61 = vld [vmem:[%s6623_s20 + $0x4] ss:$48 sps:$4 sm:$0xff]   ;;  %v5632_v0 = vld [vmem:[%s6623_s20 + $0x1c] ss:$48 sps:$4 sm:$0xff]   ;;  %v5607_v1 = vld [vmem:[%s6625_s25 + $0x240] ss:$24 sps:$4 sm:$0xff]  }
  0x5f   : > { %v5603_v62 = vld [vmem:[%s6625_s25 + $0x244] ss:$24 sps:$4 sm:$0xff]   ;;  %3865 = vmatprep.mubr.bf16.mxu1 %v5627_v61  ;;  %v5608_v2 = vld [vmem:[%s6625_s25 + $0xb40] ss:$24 sps:$4 sm:$0xff]   ;;  %3994 = vmatprep.mubr.bf16.mxu0 %v5632_v0  ;;  %v5609_v3 = vld [vmem:[%s6625_s25 + $0x274] ss:$24 sps:$4 sm:$0xff]  }
  0x60   : > { %3842 = vmatpush1.bf16.msra.mxu1 %v5559_v31  ;;  %v5605_v63 = vld [vmem:[%s6625_s25 + $0xb44] ss:$24 sps:$4 sm:$0xff]   ;;  %v5611_v4 = vld [vmem:[%s6625_s25 + $0xb74] ss:$24 sps:$4 sm:$0xff]   ;;  %v5613_v5 = vld [vmem:[%s6625_s25 + $0x270] ss:$24 sps:$4 sm:$0xff]  }
  0x61   : > { %3971 = vmatpush1.bf16.msra.mxu0 %v5560_v32  ;;  %3843 = vmatprep.subr.bf16.mxu1 %v5561_v33  ;;  %v5614_v6 = vld [vmem:[%s6625_s25 + $0xb70] ss:$24 sps:$4 sm:$0xff]   ;;  %v5615_v7 = vld [vmem:[%s6625_s25 + $0x2a4] ss:$24 sps:$4 sm:$0xff]   ;;  %v5619_v9 = vld [vmem:[%s6625_s25 + $0x2a0] ss:$24 sps:$4 sm:$0xff]  }
  0x62   : > { %3972 = vmatprep.subr.bf16.mxu0 %v5563_v34  ;;  %v5617_v8 = vld [vmem:[%s6625_s25 + $0xba4] ss:$24 sps:$4 sm:$0xff]   ;;  %v5620_v10 = vld [vmem:[%s6625_s25 + $0xba0] ss:$24 sps:$4 sm:$0xff]   ;;  %v5621_v11 = vld [vmem:[%s6625_s25 + $0x2d4] ss:$24 sps:$4 sm:$0xff]  }
  0x63   : > { %v5623_v12 = vld [vmem:[%s6625_s25 + $0xbd4] ss:$24 sps:$4 sm:$0xff]   ;;  %v5625_v13 = vld [vmem:[%s6625_s25 + $0x2d0] ss:$24 sps:$4 sm:$0xff]   ;;  %v5631_v15 = vld [vmem:[%s6625_s25 + $0x304] ss:$24 sps:$4 sm:$0xff]  }
  0x64   : > { %3844 = vmatpush1.bf16.msra.mxu1 %v5565_v35  ;;  %v5626_v14 = vld [vmem:[%s6625_s25 + $0xbd0] ss:$24 sps:$4 sm:$0xff]   ;;  %v5636_v16 = vld [vmem:[%s6625_s25 + $0xc04] ss:$24 sps:$4 sm:$0xff]   ;;  %v5629_v17 = vld [vmem:[%s6625_s25 + $0x300] ss:$24 sps:$4 sm:$0xff]  }
  0x65   : > { %3973 = vmatpush1.bf16.msra.mxu0 %v5566_v36  ;;  %3845 = vmatprep.subr.bf16.mxu1 %v5567_v37  ;;  %v5634_v18 = vld [vmem:[%s6625_s25 + $0xc00] ss:$24 sps:$4 sm:$0xff]   ;;  %v5641_v21 = vld [vmem:[%s6625_s25 + $0x334] ss:$24 sps:$4 sm:$0xff]   ;;  %v5639_v23 = vld [vmem:[%s6625_s25 + $0x330] ss:$24 sps:$4 sm:$0xff]  }
  0x66   : > { %3974 = vmatprep.subr.bf16.mxu0 %v5569_v38  ;;  %v5637_v19 = vld [vmem:[%s6623_s20] ss:$48 sps:$4 sm:$0xff]   ;;  %v5638_v20 = vld [vmem:[%s6623_s20 + $0x18] ss:$48 sps:$4 sm:$0xff]   ;;  %v5644_v22 = vld [vmem:[%s6625_s25 + $0xc34] ss:$24 sps:$4 sm:$0xff]  }
  0x67   : > { %v5642_v24 = vld [vmem:[%s6625_s25 + $0xc30] ss:$24 sps:$4 sm:$0xff]   ;;  %v5647_v25 = vld [vmem:[%s6625_s25 + $0x364] ss:$24 sps:$4 sm:$0xff]   ;;  %v5645_v27 = vld [vmem:[%s6625_s25 + $0x360] ss:$24 sps:$4 sm:$0xff]  }
  0x68   : > { %3846 = vmatpush1.bf16.msra.mxu1 %v5571_v39  ;;  %v5650_v26 = vld [vmem:[%s6625_s25 + $0xc64] ss:$24 sps:$4 sm:$0xff]   ;;  %v5648_v28 = vld [vmem:[%s6625_s25 + $0xc60] ss:$24 sps:$4 sm:$0xff]   ;;  %v5653_v29 = vld [vmem:[%s6625_s25 + $0x394] ss:$24 sps:$4 sm:$0xff]  }
  0x69   : > { %3975 = vmatpush1.bf16.msra.mxu0 %v5572_v40  ;;  %3847 = vmatprep.subr.bf16.mxu1 %v5573_v41  ;;  %v5656_v30 = vld [vmem:[%s6625_s25 + $0xc94] ss:$24 sps:$4 sm:$0xff]   ;;  %v5651_v31 = vld [vmem:[%s6625_s25 + $0x390] ss:$24 sps:$4 sm:$0xff]   ;;  %v5659_v33 = vld [vmem:[%s6625_s25 + $0x3c4] ss:$24 sps:$4 sm:$0xff]  }
  0x6a   : > { %3976 = vmatprep.subr.bf16.mxu0 %v5575_v42  ;;  %v5654_v32 = vld [vmem:[%s6625_s25 + $0xc90] ss:$24 sps:$4 sm:$0xff]   ;;  %v5662_v34 = vld [vmem:[%s6625_s25 + $0xcc4] ss:$24 sps:$4 sm:$0xff]   ;;  %v5657_v35 = vld [vmem:[%s6625_s25 + $0x3c0] ss:$24 sps:$4 sm:$0xff]  }
  0x6b   : > { %v5660_v36 = vld [vmem:[%s6625_s25 + $0xcc0] ss:$24 sps:$4 sm:$0xff]   ;;  %v5665_v37 = vld [vmem:[%s6625_s25 + $0x3f4] ss:$24 sps:$4 sm:$0xff]   ;;  %v5663_v39 = vld [vmem:[%s6625_s25 + $0x3f0] ss:$24 sps:$4 sm:$0xff]  }
  0x6c   : > { %3848 = vmatpush1.bf16.msra.mxu1 %v5577_v43  ;;  %v5668_v38 = vld [vmem:[%s6625_s25 + $0xcf4] ss:$24 sps:$4 sm:$0xff]   ;;  %v5666_v40 = vld [vmem:[%s6625_s25 + $0xcf0] ss:$24 sps:$4 sm:$0xff]   ;;  %v5671_v41 = vld [vmem:[%s6625_s25 + $0x424] ss:$24 sps:$4 sm:$0xff]  }
  0x6d   : > { %3977 = vmatpush1.bf16.msra.mxu0 %v5578_v44  ;;  %3849 = vmatprep.subr.bf16.mxu1 %v5579_v45  ;;  %v5674_v42 = vld [vmem:[%s6625_s25 + $0xd24] ss:$24 sps:$4 sm:$0xff]   ;;  %v5669_v43 = vld [vmem:[%s6625_s25 + $0x420] ss:$24 sps:$4 sm:$0xff]   ;;  %v5677_v45 = vld [vmem:[%s6625_s25 + $0x454] ss:$24 sps:$4 sm:$0xff]  }
  0x6e   : > { %3978 = vmatprep.subr.bf16.mxu0 %v5581_v46  ;;  %v5672_v44 = vld [vmem:[%s6625_s25 + $0xd20] ss:$24 sps:$4 sm:$0xff]   ;;  %v5680_v46 = vld [vmem:[%s6625_s25 + $0xd54] ss:$24 sps:$4 sm:$0xff]   ;;  %p5406_p7 = scmp.ne.s32.totalorder %s6495_s15, 7 }
  0x6f   : > { %v5693_v61 = vld [vmem:[%s6625_s25 + $0x4e0] ss:$24 sps:$4 sm:$0xff]   ;;  %v5704_v0 = vld [vmem:[%s6625_s25 + $0xe14] ss:$24 sps:$4 sm:$0xff]  }
  0x70   : > { %3850 = vmatpush1.bf16.msra.mxu1 %v5583_v47  ;;  %v5731_v47 = vld [vmem:[%s6623_s20 + $0xc] ss:$48 sps:$4 sm:$0xff]  }
  0x71   : > { %3979 = vmatpush1.bf16.msra.mxu0 %v5584_v48  ;;  %3851 = vmatprep.subr.bf16.mxu1 %v5585_v49  ;;  %v5675_v48 = vld [vmem:[%s6625_s25 + $0x450] ss:$24 sps:$4 sm:$0xff]  }
  0x72   : > { %3980 = vmatprep.subr.bf16.mxu0 %v5587_v50  ;;  %v5678_v49 = vld [vmem:[%s6625_s25 + $0xd50] ss:$24 sps:$4 sm:$0xff]   ;;  %v5737_v50 = vld [vmem:[%s6623_s20 + $0x24] ss:$48 sps:$4 sm:$0xff]  }
  0x74   : > { %3852 = vmatpush1.bf16.msra.mxu1 %v5589_v51  ;;  %v5683_v51 = vld [vmem:[%s6625_s25 + $0x484] ss:$24 sps:$4 sm:$0xff]  }
  0x75   : > { %3981 = vmatpush1.bf16.msra.mxu0 %v5590_v52  ;;  %3853 = vmatprep.subr.bf16.mxu1 %v5591_v53  ;;  %v5686_v52 = vld [vmem:[%s6625_s25 + $0xd84] ss:$24 sps:$4 sm:$0xff]   ;;  %v5681_v53 = vld [vmem:[%s6625_s25 + $0x480] ss:$24 sps:$4 sm:$0xff]  }
  0x76   : > { %3982 = vmatprep.subr.bf16.mxu0 %v5593_v54  ;;  %v5684_v54 = vld [vmem:[%s6625_s25 + $0xd80] ss:$24 sps:$4 sm:$0xff]  }
  0x78   : > { %3854 = vmatpush1.bf16.msra.mxu1 %v5595_v55  ;;  %v5689_v55 = vld [vmem:[%s6625_s25 + $0x4b4] ss:$24 sps:$4 sm:$0xff]  }
  0x79   : > { %3983 = vmatpush1.bf16.msra.mxu0 %v5596_v56  ;;  %3855 = vmatprep.subr.bf16.mxu1 %v5597_v57  ;;  %v5692_v56 = vld [vmem:[%s6625_s25 + $0xdb4] ss:$24 sps:$4 sm:$0xff]   ;;  %v5687_v57 = vld [vmem:[%s6625_s25 + $0x4b0] ss:$24 sps:$4 sm:$0xff]  }
  0x7a   : > { %3984 = vmatprep.subr.bf16.mxu0 %v5599_v58  ;;  %v5690_v58 = vld [vmem:[%s6625_s25 + $0xdb0] ss:$24 sps:$4 sm:$0xff]  }
  0x7c   : > { %3856 = vmatpush1.bf16.msra.mxu1 %v5601_v59  ;;  %v5695_v59 = vld [vmem:[%s6625_s25 + $0x4e4] ss:$24 sps:$4 sm:$0xff]  }
  0x7d   : > { %3985 = vmatpush1.bf16.msra.mxu0 %v5602_v60  ;;  %3857 = vmatprep.subr.bf16.mxu1 %v5603_v62  ;;  %v5698_v60 = vld [vmem:[%s6625_s25 + $0xde4] ss:$24 sps:$4 sm:$0xff]   ;;  %v5696_v62 = vld [vmem:[%s6625_s25 + $0xde0] ss:$24 sps:$4 sm:$0xff]  }
  0x7e   : > { %3986 = vmatprep.subr.bf16.mxu0 %v5605_v63  ;;  %v5701_v63 = vld [vmem:[%s6625_s25 + $0x514] ss:$24 sps:$4 sm:$0xff]  }
  0x80   : > { %3858 = vmatpush1.bf16.msra.mxu1 %v5607_v1  ;;  %v5699_v1 = vld [vmem:[%s6625_s25 + $0x510] ss:$24 sps:$4 sm:$0xff]  }
  0x81   : > { %3987 = vmatpush1.bf16.msra.mxu0 %v5608_v2  ;;  %3859 = vmatprep.subr.bf16.mxu1 %v5609_v3  ;;  %v5702_v2 = vld [vmem:[%s6625_s25 + $0xe10] ss:$24 sps:$4 sm:$0xff]   ;;  %v5707_v3 = vld [vmem:[%s6625_s25 + $0x544] ss:$24 sps:$4 sm:$0xff]  }
  0x82   : > { %3988 = vmatprep.subr.bf16.mxu0 %v5611_v4  ;;  %v5710_v4 = vld [vmem:[%s6625_s25 + $0xe44] ss:$24 sps:$4 sm:$0xff]  }
  0x84   : > { %3860 = vmatpush1.bf16.msra.mxu1 %v5613_v5  ;;  %v5705_v5 = vld [vmem:[%s6625_s25 + $0x540] ss:$24 sps:$4 sm:$0xff]  }
  0x85   : > { %3989 = vmatpush1.bf16.msra.mxu0 %v5614_v6  ;;  %3861 = vmatprep.subr.bf16.mxu1 %v5615_v7  ;;  %v5708_v6 = vld [vmem:[%s6625_s25 + $0xe40] ss:$24 sps:$4 sm:$0xff]   ;;  %v5713_v7 = vld [vmem:[%s6625_s25 + $0x574] ss:$24 sps:$4 sm:$0xff]  }
  0x86   : > { %3990 = vmatprep.subr.bf16.mxu0 %v5617_v8  ;;  %v5716_v8 = vld [vmem:[%s6625_s25 + $0xe74] ss:$24 sps:$4 sm:$0xff]  }
  0x88   : > { %3862 = vmatpush1.bf16.msra.mxu1 %v5619_v9  ;;  %v5711_v9 = vld [vmem:[%s6625_s25 + $0x570] ss:$24 sps:$4 sm:$0xff]  }
  0x89   : > { %3991 = vmatpush1.bf16.msra.mxu0 %v5620_v10  ;;  %3863 = vmatprep.subr.bf16.mxu1 %v5621_v11  ;;  %v5714_v10 = vld [vmem:[%s6625_s25 + $0xe70] ss:$24 sps:$4 sm:$0xff]   ;;  %v5719_v11 = vld [vmem:[%s6625_s25 + $0x5a4] ss:$24 sps:$4 sm:$0xff]  }
  0x8a   : > { %3992 = vmatprep.subr.bf16.mxu0 %v5623_v12  ;;  %v5722_v12 = vld [vmem:[%s6625_s25 + $0xea4] ss:$24 sps:$4 sm:$0xff]  }
  0x8c   : > { %3864 = vmatpush1.bf16.msra.mxu1 %v5625_v13  ;;  %v5717_v13 = vld [vmem:[%s6625_s25 + $0x5a0] ss:$24 sps:$4 sm:$0xff]  }
  0x8d   : > { %3993 = vmatpush1.bf16.msra.mxu0 %v5626_v14  ;;  %3876 = vmatprep.subr.bf16.mxu1 %v5631_v15  ;;  %v5720_v14 = vld [vmem:[%s6625_s25 + $0xea0] ss:$24 sps:$4 sm:$0xff]   ;;  %v5725_v15 = vld [vmem:[%s6625_s25 + $0x5d4] ss:$24 sps:$4 sm:$0xff]  }
  0x8e   : > { %4005 = vmatprep.subr.bf16.mxu0 %v5636_v16  ;;  %v5728_v16 = vld [vmem:[%s6625_s25 + $0xed4] ss:$24 sps:$4 sm:$0xff]  }
  0x8f   : > { %3866 = vmatmul.mubr.bf16.vlgmr.msra.gmra.mrb[0].mxu1 %v5637_v19  ;;  %v5734_v19 = vld [vmem:[%s6625_s25 + $0x604] ss:$24 sps:$4 sm:$0xff]  }
  0x90   : > { %3995 = vmatmul.mubr.bf16.vlgmr.msra.gmra.mrb[0].mxu0 %v5638_v20  ;;  %3877 = vmatpush1.bf16.msra.mxu1 %v5629_v17  ;;  %v5723_v17 = vld [vmem:[%s6625_s25 + $0x5d0] ss:$24 sps:$4 sm:$0xff]   ;;  %v5740_v20 = vld [vmem:[%s6625_s25 + $0xf04] ss:$24 sps:$4 sm:$0xff]  }
  0x91   : > { %4006 = vmatpush1.bf16.msra.mxu0 %v5634_v18  ;;  %3878 = vmatprep.subr.bf16.mxu1 %v5641_v21  ;;  %v5726_v18 = vld [vmem:[%s6625_s25 + $0xed0] ss:$24 sps:$4 sm:$0xff]  }
  0x92   : > { %4007 = vmatprep.subr.bf16.mxu0 %v5644_v22  ;;  %3908 = vmatprep.mubr.bf16.mxu1 %v5731_v47  ;;  %v5729_v21 = vld [vmem:[%s6623_s20 + $0x8] ss:$48 sps:$4 sm:$0xff]   ;;  %v5773_v47 = vld [vmem:[%s6625_s25 + $0x724] ss:$24 sps:$4 sm:$0xff]  }
  0x93   : > { %4037 = vmatprep.mubr.bf16.mxu0 %v5737_v50  ;;  %v5732_v22 = vld [vmem:[%s6625_s25 + $0x600] ss:$24 sps:$4 sm:$0xff]  }
  0x94   : > { %3879 = vmatpush1.bf16.msra.mxu1 %v5639_v23  ;;  %v5735_v23 = vld [vmem:[%s6623_s20 + $0x20] ss:$48 sps:$4 sm:$0xff]  }
  0x95   : > { %4008 = vmatpush1.bf16.msra.mxu0 %v5642_v24  ;;  %3880 = vmatprep.subr.bf16.mxu1 %v5647_v25  ;;  %v5738_v24 = vld [vmem:[%s6625_s25 + $0xf00] ss:$24 sps:$4 sm:$0xff]   ;;  %v5743_v25 = vld [vmem:[%s6625_s25 + $0x634] ss:$24 sps:$4 sm:$0xff]  }
  0x96   : > { %4009 = vmatprep.subr.bf16.mxu0 %v5650_v26  ;;  %v5746_v26 = vld [vmem:[%s6625_s25 + $0xf34] ss:$24 sps:$4 sm:$0xff]   ;;  %v5774_v50 = vld [vmem:[%s6625_s25 + $0x1020] ss:$24 sps:$4 sm:$0xff]  }
  0x98   : > { %3881 = vmatpush1.bf16.msra.mxu1 %v5645_v27  ;;  %v5741_v27 = vld [vmem:[%s6625_s25 + $0x630] ss:$24 sps:$4 sm:$0xff]  }
  0x99   : > { %4010 = vmatpush1.bf16.msra.mxu0 %v5648_v28  ;;  %3882 = vmatprep.subr.bf16.mxu1 %v5653_v29  ;;  %v5744_v28 = vld [vmem:[%s6625_s25 + $0xf30] ss:$24 sps:$4 sm:$0xff]   ;;  %v5749_v29 = vld [vmem:[%s6625_s25 + $0x664] ss:$24 sps:$4 sm:$0xff]  }
  0x9a   : > { %4011 = vmatprep.subr.bf16.mxu0 %v5656_v30  ;;  %v5752_v30 = vld [vmem:[%s6625_s25 + $0xf64] ss:$24 sps:$4 sm:$0xff]  }
  0x9c   : > { %3883 = vmatpush1.bf16.msra.mxu1 %v5651_v31  ;;  %v5747_v31 = vld [vmem:[%s6625_s25 + $0x660] ss:$24 sps:$4 sm:$0xff]  }
  0x9d   : > { %4012 = vmatpush1.bf16.msra.mxu0 %v5654_v32  ;;  %3884 = vmatprep.subr.bf16.mxu1 %v5659_v33  ;;  %v5833_v32 = vld [vmem:[%s6623_s20 + $0x14] ss:$48 sps:$4 sm:$0xff]   ;;  %v5750_v33 = vld [vmem:[%s6625_s25 + $0xf60] ss:$24 sps:$4 sm:$0xff]  }
  0x9e   : > { %4013 = vmatprep.subr.bf16.mxu0 %v5662_v34  ;;  %v5836_v34 = vld [vmem:[%s6623_s20 + $0x2c] ss:$48 sps:$4 sm:$0xff]  }
  0xa0   : > { %3885 = vmatpush1.bf16.msra.mxu1 %v5657_v35  ;;  %v5755_v35 = vld [vmem:[%s6625_s25 + $0x694] ss:$24 sps:$4 sm:$0xff]  }
  0xa1   : > { %4014 = vmatpush1.bf16.msra.mxu0 %v5660_v36  ;;  %3886 = vmatprep.subr.bf16.mxu1 %v5665_v37  ;;  %v5758_v36 = vld [vmem:[%s6625_s25 + $0xf94] ss:$24 sps:$4 sm:$0xff]   ;;  %v5753_v37 = vld [vmem:[%s6625_s25 + $0x690] ss:$24 sps:$4 sm:$0xff]  }
  0xa2   : > { %4015 = vmatprep.subr.bf16.mxu0 %v5668_v38  ;;  %v5756_v38 = vld [vmem:[%s6625_s25 + $0xf90] ss:$24 sps:$4 sm:$0xff]  }
  0xa4   : > { %3887 = vmatpush1.bf16.msra.mxu1 %v5663_v39  ;;  %v5761_v39 = vld [vmem:[%s6625_s25 + $0x6c4] ss:$24 sps:$4 sm:$0xff]  }
  0xa5   : > { %4016 = vmatpush1.bf16.msra.mxu0 %v5666_v40  ;;  %3888 = vmatprep.subr.bf16.mxu1 %v5671_v41  ;;  %v5764_v40 = vld [vmem:[%s6625_s25 + $0xfc4] ss:$24 sps:$4 sm:$0xff]   ;;  %v5759_v41 = vld [vmem:[%s6625_s25 + $0x6c0] ss:$24 sps:$4 sm:$0xff]  }
  0xa6   : > { %4017 = vmatprep.subr.bf16.mxu0 %v5674_v42  ;;  %v5762_v42 = vld [vmem:[%s6625_s25 + $0xfc0] ss:$24 sps:$4 sm:$0xff]  }
  0xa8   : > { %3889 = vmatpush1.bf16.msra.mxu1 %v5669_v43  ;;  %v5767_v43 = vld [vmem:[%s6625_s25 + $0x6f4] ss:$24 sps:$4 sm:$0xff]  }
  0xa9   : > { %4018 = vmatpush1.bf16.msra.mxu0 %v5672_v44  ;;  %3890 = vmatprep.subr.bf16.mxu1 %v5677_v45  ;;  %v5770_v44 = vld [vmem:[%s6625_s25 + $0xff4] ss:$24 sps:$4 sm:$0xff]   ;;  %v5765_v45 = vld [vmem:[%s6625_s25 + $0x6f0] ss:$24 sps:$4 sm:$0xff]  }
  0xaa   : > { %4019 = vmatprep.subr.bf16.mxu0 %v5680_v46  ;;  %v5768_v46 = vld [vmem:[%s6625_s25 + $0xff0] ss:$24 sps:$4 sm:$0xff]  }
  0xac   : > { %3891 = vmatpush1.bf16.msra.mxu1 %v5675_v48  ;;  %v5776_v48 = vld [vmem:[%s6625_s25 + $0x1024] ss:$24 sps:$4 sm:$0xff]  }
  0xad   : > { %4020 = vmatpush1.bf16.msra.mxu0 %v5678_v49  ;;  %3892 = vmatprep.subr.bf16.mxu1 %v5683_v51  ;;  %v5771_v49 = vld [vmem:[%s6625_s25 + $0x720] ss:$24 sps:$4 sm:$0xff]   ;;  %v5779_v51 = vld [vmem:[%s6625_s25 + $0x754] ss:$24 sps:$4 sm:$0xff]  }
  0xae   : > { %4021 = vmatprep.subr.bf16.mxu0 %v5686_v52  ;;  %v5782_v52 = vld [vmem:[%s6625_s25 + $0x1054] ss:$24 sps:$4 sm:$0xff]  }
  0xb0   : > { %3893 = vmatpush1.bf16.msra.mxu1 %v5681_v53  ;;  %v5777_v53 = vld [vmem:[%s6625_s25 + $0x750] ss:$24 sps:$4 sm:$0xff]  }
  0xb1   : > { %4022 = vmatpush1.bf16.msra.mxu0 %v5684_v54  ;;  %3894 = vmatprep.subr.bf16.mxu1 %v5689_v55  ;;  %v5780_v54 = vld [vmem:[%s6625_s25 + $0x1050] ss:$24 sps:$4 sm:$0xff]   ;;  %v5785_v55 = vld [vmem:[%s6625_s25 + $0x784] ss:$24 sps:$4 sm:$0xff]  }
  0xb2   : > { %4023 = vmatprep.subr.bf16.mxu0 %v5692_v56  ;;  %v5788_v56 = vld [vmem:[%s6625_s25 + $0x1084] ss:$24 sps:$4 sm:$0xff]  }
  0xb4   : > { %3895 = vmatpush1.bf16.msra.mxu1 %v5687_v57  ;;  %v5783_v57 = vld [vmem:[%s6625_s25 + $0x780] ss:$24 sps:$4 sm:$0xff]  }
  0xb5   : > { %4024 = vmatpush1.bf16.msra.mxu0 %v5690_v58  ;;  %3896 = vmatprep.subr.bf16.mxu1 %v5695_v59  ;;  %v5786_v58 = vld [vmem:[%s6625_s25 + $0x1080] ss:$24 sps:$4 sm:$0xff]   ;;  %v5791_v59 = vld [vmem:[%s6625_s25 + $0x7b4] ss:$24 sps:$4 sm:$0xff]  }
  0xb6   : > { %4025 = vmatprep.subr.bf16.mxu0 %v5698_v60  ;;  %v5794_v60 = vld [vmem:[%s6625_s25 + $0x10b4] ss:$24 sps:$4 sm:$0xff]  }
  0xb8   : > { %3897 = vmatpush1.bf16.msra.mxu1 %v5693_v61  ;;  %v5789_v61 = vld [vmem:[%s6625_s25 + $0x7b0] ss:$24 sps:$4 sm:$0xff]  }
  0xb9   : > { %4026 = vmatpush1.bf16.msra.mxu0 %v5696_v62  ;;  %3898 = vmatprep.subr.bf16.mxu1 %v5701_v63  ;;  %v5792_v62 = vld [vmem:[%s6625_s25 + $0x10b0] ss:$24 sps:$4 sm:$0xff]   ;;  %v5797_v63 = vld [vmem:[%s6625_s25 + $0x7e4] ss:$24 sps:$4 sm:$0xff]  }
  0xba   : > { %4027 = vmatprep.subr.bf16.mxu0 %v5704_v0  ;;  %v5800_v0 = vld [vmem:[%s6625_s25 + $0x10e4] ss:$24 sps:$4 sm:$0xff]  }
  0xbc   : > { %3899 = vmatpush1.bf16.msra.mxu1 %v5699_v1  ;;  %v5795_v1 = vld [vmem:[%s6625_s25 + $0x7e0] ss:$24 sps:$4 sm:$0xff]  }
  0xbd   : > { %4028 = vmatpush1.bf16.msra.mxu0 %v5702_v2  ;;  %3900 = vmatprep.subr.bf16.mxu1 %v5707_v3  ;;  %v5798_v2 = vld [vmem:[%s6625_s25 + $0x10e0] ss:$24 sps:$4 sm:$0xff]   ;;  %v5803_v3 = vld [vmem:[%s6625_s25 + $0x814] ss:$24 sps:$4 sm:$0xff]  }
  0xbe   : > { %4029 = vmatprep.subr.bf16.mxu0 %v5710_v4  ;;  %v5806_v4 = vld [vmem:[%s6625_s25 + $0x1114] ss:$24 sps:$4 sm:$0xff]  }
  0xc0   : > { %3901 = vmatpush1.bf16.msra.mxu1 %v5705_v5  ;;  %v5801_v5 = vld [vmem:[%s6625_s25 + $0x810] ss:$24 sps:$4 sm:$0xff]  }
  0xc1   : > { %4030 = vmatpush1.bf16.msra.mxu0 %v5708_v6  ;;  %3902 = vmatprep.subr.bf16.mxu1 %v5713_v7  ;;  %v5804_v6 = vld [vmem:[%s6625_s25 + $0x1110] ss:$24 sps:$4 sm:$0xff]   ;;  %v5809_v7 = vld [vmem:[%s6625_s25 + $0x844] ss:$24 sps:$4 sm:$0xff]  }
  0xc2   : > { %4031 = vmatprep.subr.bf16.mxu0 %v5716_v8  ;;  %v5812_v8 = vld [vmem:[%s6625_s25 + $0x1144] ss:$24 sps:$4 sm:$0xff]  }
  0xc4   : > { %3903 = vmatpush1.bf16.msra.mxu1 %v5711_v9  ;;  %v5807_v9 = vld [vmem:[%s6625_s25 + $0x840] ss:$24 sps:$4 sm:$0xff]  }
  0xc5   : > { %4032 = vmatpush1.bf16.msra.mxu0 %v5714_v10  ;;  %3904 = vmatprep.subr.bf16.mxu1 %v5719_v11  ;;  %v5810_v10 = vld [vmem:[%s6625_s25 + $0x1140] ss:$24 sps:$4 sm:$0xff]   ;;  %v5815_v11 = vld [vmem:[%s6625_s25 + $0x874] ss:$24 sps:$4 sm:$0xff]  }
  0xc6   : > { %4033 = vmatprep.subr.bf16.mxu0 %v5722_v12  ;;  %v5818_v12 = vld [vmem:[%s6625_s25 + $0x1174] ss:$24 sps:$4 sm:$0xff]  }
  0xc8   : > { %3905 = vmatpush1.bf16.msra.mxu1 %v5717_v13  ;;  %v5813_v13 = vld [vmem:[%s6625_s25 + $0x870] ss:$24 sps:$4 sm:$0xff]  }
  0xc9   : > { %4034 = vmatpush1.bf16.msra.mxu0 %v5720_v14  ;;  %3906 = vmatprep.subr.bf16.mxu1 %v5725_v15  ;;  %v5816_v14 = vld [vmem:[%s6625_s25 + $0x1170] ss:$24 sps:$4 sm:$0xff]   ;;  %v5821_v15 = vld [vmem:[%s6625_s25 + $0x8a4] ss:$24 sps:$4 sm:$0xff]  }
  0xca   : > { %4035 = vmatprep.subr.bf16.mxu0 %v5728_v16  ;;  %v5824_v16 = vld [vmem:[%s6625_s25 + $0x11a4] ss:$24 sps:$4 sm:$0xff]  }
  0xcc   : > { %3907 = vmatpush1.bf16.msra.mxu1 %v5723_v17  ;;  %v5819_v17 = vld [vmem:[%s6625_s25 + $0x8a0] ss:$24 sps:$4 sm:$0xff]  }
  0xcd   : > { %4036 = vmatpush1.bf16.msra.mxu0 %v5726_v18  ;;  %3919 = vmatprep.subr.bf16.mxu1 %v5734_v19  ;;  %v5822_v18 = vld [vmem:[%s6625_s25 + $0x11a0] ss:$24 sps:$4 sm:$0xff]   ;;  %v5827_v19 = vld [vmem:[%s6625_s25 + $0x8d4] ss:$24 sps:$4 sm:$0xff]  }
  0xce   : > { %4048 = vmatprep.subr.bf16.mxu0 %v5740_v20  ;;  %v5830_v20 = vld [vmem:[%s6625_s25 + $0x11d4] ss:$24 sps:$4 sm:$0xff]  }
  0xcf   : > { %3909 = vmatmul.mubr.bf16.vlgmr.msra.gmra.mrb[0].mxu1 %v5729_v21  ;;  %v5825_v21 = vld [vmem:[%s6625_s25 + $0x8d0] ss:$24 sps:$4 sm:$0xff]  }
  0xd0   : > { %4038 = vmatmul.mubr.bf16.vlgmr.msra.gmra.mrb[0].mxu0 %v5735_v23  ;;  %3920 = vmatpush1.bf16.msra.mxu1 %v5732_v22  ;;  %v5828_v22 = vld [vmem:[%s6625_s25 + $0x11d0] ss:$24 sps:$4 sm:$0xff]   ;;  %v5839_v23 = vld [vmem:[%s6625_s25 + $0xc] ss:$24 sps:$4 sm:$0xff]  }
  0xd1   : > { %4049 = vmatpush1.bf16.msra.mxu0 %v5738_v24  ;;  %3921 = vmatprep.subr.bf16.mxu1 %v5743_v25  ;;  %v5842_v24 = vld [vmem:[%s6625_s25 + $0x14] ss:$24 sps:$4 sm:$0xff]   ;;  %v5831_v25 = vld [vmem:[%s6623_s20 + $0x10] ss:$48 sps:$4 sm:$0xff]  }
  0xd2   : > { %4050 = vmatprep.subr.bf16.mxu0 %v5746_v26  ;;  %3951 = vmatprep.mubr.bf16.mxu1 %v5833_v32  ;;  %v5834_v26 = vld [vmem:[%s6623_s20 + $0x28] ss:$48 sps:$4 sm:$0xff]  }
  0xd3   : > { %4080 = vmatprep.mubr.bf16.mxu0 %v5836_v34  ;;  %v5846_v32 = vld [vmem:[%s6625_s25 + $0x40] ss:$24 sps:$4 sm:$0xff]   ;;  %v5854_v34 = vld [vmem:[%s6625_s25 + $0x74] ss:$24 sps:$4 sm:$0xff]  }
  0xd4   : > { %3922 = vmatpush1.bf16.msra.mxu1 %v5741_v27  ;;  %v5837_v27 = vld [vmem:[%s6625_s25 + $0x8] ss:$24 sps:$4 sm:$0xff]  }
  0xd5   : > { %4051 = vmatpush1.bf16.msra.mxu0 %v5744_v28  ;;  %3923 = vmatprep.subr.bf16.mxu1 %v5749_v29  ;;  %v5840_v28 = vld [vmem:[%s6625_s25 + $0x10] ss:$24 sps:$4 sm:$0xff]   ;;  %v5845_v29 = vld [vmem:[%s6625_s25 + $0x3c] ss:$24 sps:$4 sm:$0xff]  }
  0xd6   : > { %4052 = vmatprep.subr.bf16.mxu0 %v5752_v30  ;;  %v5848_v30 = vld [vmem:[%s6625_s25 + $0x44] ss:$24 sps:$4 sm:$0xff]  }
  0xd8   : > { %3924 = vmatpush1.bf16.msra.mxu1 %v5747_v31  ;;  %v5843_v31 = vld [vmem:[%s6625_s25 + $0x38] ss:$24 sps:$4 sm:$0xff]  }
  0xd9   : > { %4053 = vmatpush1.bf16.msra.mxu0 %v5750_v33  ;;  %3925 = vmatprep.subr.bf16.mxu1 %v5755_v35  ;;  %v5851_v33 = vld [vmem:[%s6625_s25 + $0x6c] ss:$24 sps:$4 sm:$0xff]  }
  0xda   : > { %4054 = vmatprep.subr.bf16.mxu0 %v5758_v36  ;;  %v6413_v35 = vld [vmem:[%s6623_s20 + $0x4] ss:$48 sps:$4 sm:$0xff]   ;;  %v5849_v36 = vld [vmem:[%s6625_s25 + $0x68] ss:$24 sps:$4 sm:$0xff]  }
  0xdc   : > { %3926 = vmatpush1.bf16.msra.mxu1 %v5753_v37  ;;  %v5852_v37 = vld [vmem:[%s6625_s25 + $0x70] ss:$24 sps:$4 sm:$0xff]  }
  0xdd   : > { %4055 = vmatpush1.bf16.msra.mxu0 %v5756_v38  ;;  %3927 = vmatprep.subr.bf16.mxu1 %v5761_v39  ;;  %v5857_v38 = vld [vmem:[%s6625_s25 + $0x9c] ss:$24 sps:$4 sm:$0xff]  }
  0xde   : > { %4056 = vmatprep.subr.bf16.mxu0 %v5764_v40  ;;  %v5860_v39 = vld [vmem:[%s6625_s25 + $0xa4] ss:$24 sps:$4 sm:$0xff]   ;;  %v5855_v40 = vld [vmem:[%s6625_s25 + $0x98] ss:$24 sps:$4 sm:$0xff]  }
  0xe0   : > { %3928 = vmatpush1.bf16.msra.mxu1 %v5759_v41  ;;  %v5858_v41 = vld [vmem:[%s6625_s25 + $0xa0] ss:$24 sps:$4 sm:$0xff]  }
  0xe1   : > { %4057 = vmatpush1.bf16.msra.mxu0 %v5762_v42  ;;  %3929 = vmatprep.subr.bf16.mxu1 %v5767_v43  ;;  %v5863_v42 = vld [vmem:[%s6625_s25 + $0xcc] ss:$24 sps:$4 sm:$0xff]  }
  0xe2   : > { %4058 = vmatprep.subr.bf16.mxu0 %v5770_v44  ;;  %v5866_v43 = vld [vmem:[%s6625_s25 + $0xd4] ss:$24 sps:$4 sm:$0xff]   ;;  %v5861_v44 = vld [vmem:[%s6625_s25 + $0xc8] ss:$24 sps:$4 sm:$0xff]  }
  0xe4   : > { %3930 = vmatpush1.bf16.msra.mxu1 %v5765_v45  ;;  %v5864_v45 = vld [vmem:[%s6625_s25 + $0xd0] ss:$24 sps:$4 sm:$0xff]  }
  0xe5   : > { %4059 = vmatpush1.bf16.msra.mxu0 %v5768_v46  ;;  %3931 = vmatprep.subr.bf16.mxu1 %v5773_v47  ;;  %v5869_v46 = vld [vmem:[%s6625_s25 + $0xfc] ss:$24 sps:$4 sm:$0xff]  }
  0xe6   : > { %4060 = vmatprep.subr.bf16.mxu0 %v5776_v48  ;;  %v5872_v47 = vld [vmem:[%s6625_s25 + $0x104] ss:$24 sps:$4 sm:$0xff]   ;;  %v5867_v48 = vld [vmem:[%s6625_s25 + $0xf8] ss:$24 sps:$4 sm:$0xff]  }
  0xe8   : > { %3932 = vmatpush1.bf16.msra.mxu1 %v5771_v49  ;;  %v5870_v49 = vld [vmem:[%s6625_s25 + $0x100] ss:$24 sps:$4 sm:$0xff]  }
  0xe9   : > { %4061 = vmatpush1.bf16.msra.mxu0 %v5774_v50  ;;  %3933 = vmatprep.subr.bf16.mxu1 %v5779_v51  ;;  %v5875_v50 = vld [vmem:[%s6625_s25 + $0x12c] ss:$24 sps:$4 sm:$0xff]  }
  0xea   : > { %4062 = vmatprep.subr.bf16.mxu0 %v5782_v52  ;;  %v5878_v51 = vld [vmem:[%s6625_s25 + $0x134] ss:$24 sps:$4 sm:$0xff]   ;;  %v5873_v52 = vld [vmem:[%s6625_s25 + $0x128] ss:$24 sps:$4 sm:$0xff]  }
  0xec   : > { %3934 = vmatpush1.bf16.msra.mxu1 %v5777_v53  ;;  %v5876_v53 = vld [vmem:[%s6625_s25 + $0x130] ss:$24 sps:$4 sm:$0xff]  }
  0xed   : > { %4063 = vmatpush1.bf16.msra.mxu0 %v5780_v54  ;;  %3935 = vmatprep.subr.bf16.mxu1 %v5785_v55  ;;  %v5881_v54 = vld [vmem:[%s6625_s25 + $0x15c] ss:$24 sps:$4 sm:$0xff]  }
  0xee   : > { %4064 = vmatprep.subr.bf16.mxu0 %v5788_v56  ;;  %v5884_v55 = vld [vmem:[%s6625_s25 + $0x164] ss:$24 sps:$4 sm:$0xff]   ;;  %v5879_v56 = vld [vmem:[%s6625_s25 + $0x158] ss:$24 sps:$4 sm:$0xff]  }
  0xf0   : > { %3936 = vmatpush1.bf16.msra.mxu1 %v5783_v57  ;;  %v5882_v57 = vld [vmem:[%s6625_s25 + $0x160] ss:$24 sps:$4 sm:$0xff]  }
  0xf1   : > { %4065 = vmatpush1.bf16.msra.mxu0 %v5786_v58  ;;  %3937 = vmatprep.subr.bf16.mxu1 %v5791_v59  ;;  %v5887_v58 = vld [vmem:[%s6625_s25 + $0x18c] ss:$24 sps:$4 sm:$0xff]  }
  0xf2   : > { %4066 = vmatprep.subr.bf16.mxu0 %v5794_v60  ;;  %v5890_v59 = vld [vmem:[%s6625_s25 + $0x194] ss:$24 sps:$4 sm:$0xff]   ;;  %v5885_v60 = vld [vmem:[%s6625_s25 + $0x188] ss:$24 sps:$4 sm:$0xff]  }
  0xf4   : > { %3938 = vmatpush1.bf16.msra.mxu1 %v5789_v61  ;;  %v5888_v61 = vld [vmem:[%s6625_s25 + $0x190] ss:$24 sps:$4 sm:$0xff]  }
  0xf5   : > { %4067 = vmatpush1.bf16.msra.mxu0 %v5792_v62  ;;  %3939 = vmatprep.subr.bf16.mxu1 %v5797_v63  ;;  %v5893_v62 = vld [vmem:[%s6625_s25 + $0x1bc] ss:$24 sps:$4 sm:$0xff]  }
  0xf6   : > { %4068 = vmatprep.subr.bf16.mxu0 %v5800_v0  ;;  %v5896_v63 = vld [vmem:[%s6625_s25 + $0x1c4] ss:$24 sps:$4 sm:$0xff]   ;;  %v5891_v0 = vld [vmem:[%s6625_s25 + $0x1b8] ss:$24 sps:$4 sm:$0xff]  }
  0xf8   : > { %3940 = vmatpush1.bf16.msra.mxu1 %v5795_v1  ;;  %v5894_v1 = vld [vmem:[%s6625_s25 + $0x1c0] ss:$24 sps:$4 sm:$0xff]  }
  0xf9   : > { %4069 = vmatpush1.bf16.msra.mxu0 %v5798_v2  ;;  %3941 = vmatprep.subr.bf16.mxu1 %v5803_v3  ;;  %v5899_v2 = vld [vmem:[%s6625_s25 + $0x1ec] ss:$24 sps:$4 sm:$0xff]  }
  0xfa   : > { %4070 = vmatprep.subr.bf16.mxu0 %v5806_v4  ;;  %v5902_v3 = vld [vmem:[%s6625_s25 + $0x1f4] ss:$24 sps:$4 sm:$0xff]   ;;  %v5897_v4 = vld [vmem:[%s6625_s25 + $0x1e8] ss:$24 sps:$4 sm:$0xff]  }
  0xfc   : > { %3942 = vmatpush1.bf16.msra.mxu1 %v5801_v5  ;;  %v5900_v5 = vld [vmem:[%s6625_s25 + $0x1f0] ss:$24 sps:$4 sm:$0xff]  }
  0xfd   : > { %4071 = vmatpush1.bf16.msra.mxu0 %v5804_v6  ;;  %3943 = vmatprep.subr.bf16.mxu1 %v5809_v7  ;;  %v5905_v6 = vld [vmem:[%s6625_s25 + $0x21c] ss:$24 sps:$4 sm:$0xff]  }
  0xfe   : > { %4072 = vmatprep.subr.bf16.mxu0 %v5812_v8  ;;  %v5908_v7 = vld [vmem:[%s6625_s25 + $0x224] ss:$24 sps:$4 sm:$0xff]   ;;  %v5903_v8 = vld [vmem:[%s6625_s25 + $0x218] ss:$24 sps:$4 sm:$0xff]  }
 0x100   : > { %3944 = vmatpush1.bf16.msra.mxu1 %v5807_v9  ;;  %v5906_v9 = vld [vmem:[%s6625_s25 + $0x220] ss:$24 sps:$4 sm:$0xff]  }
 0x101   : > { %4073 = vmatpush1.bf16.msra.mxu0 %v5810_v10  ;;  %3945 = vmatprep.subr.bf16.mxu1 %v5815_v11  ;;  %v5911_v10 = vld [vmem:[%s6625_s25 + $0x24c] ss:$24 sps:$4 sm:$0xff]  }
 0x102   : > { %4074 = vmatprep.subr.bf16.mxu0 %v5818_v12  ;;  %v5914_v11 = vld [vmem:[%s6625_s25 + $0x254] ss:$24 sps:$4 sm:$0xff]   ;;  %v5909_v12 = vld [vmem:[%s6625_s25 + $0x248] ss:$24 sps:$4 sm:$0xff]  }
 0x104   : > { %3946 = vmatpush1.bf16.msra.mxu1 %v5813_v13  ;;  %v5912_v13 = vld [vmem:[%s6625_s25 + $0x250] ss:$24 sps:$4 sm:$0xff]  }
 0x105   : > { %4075 = vmatpush1.bf16.msra.mxu0 %v5816_v14  ;;  %3947 = vmatprep.subr.bf16.mxu1 %v5821_v15  ;;  %v5917_v14 = vld [vmem:[%s6625_s25 + $0x27c] ss:$24 sps:$4 sm:$0xff]  }
 0x106   : > { %4076 = vmatprep.subr.bf16.mxu0 %v5824_v16  ;;  %v5920_v15 = vld [vmem:[%s6625_s25 + $0x284] ss:$24 sps:$4 sm:$0xff]   ;;  %v5915_v16 = vld [vmem:[%s6625_s25 + $0x278] ss:$24 sps:$4 sm:$0xff]  }
 0x108   : > { %3948 = vmatpush1.bf16.msra.mxu1 %v5819_v17  ;;  %v5918_v17 = vld [vmem:[%s6625_s25 + $0x280] ss:$24 sps:$4 sm:$0xff]  }
 0x109   : > { %4077 = vmatpush1.bf16.msra.mxu0 %v5822_v18  ;;  %3949 = vmatprep.subr.bf16.mxu1 %v5827_v19  ;;  %v5923_v18 = vld [vmem:[%s6625_s25 + $0x2ac] ss:$24 sps:$4 sm:$0xff]  }
 0x10a   : > { %4078 = vmatprep.subr.bf16.mxu0 %v5830_v20  ;;  %v5926_v19 = vld [vmem:[%s6625_s25 + $0x2b4] ss:$24 sps:$4 sm:$0xff]   ;;  %v5921_v20 = vld [vmem:[%s6625_s25 + $0x2a8] ss:$24 sps:$4 sm:$0xff]  }
 0x10c   : > { %3950 = vmatpush1.bf16.msra.mxu1 %v5825_v21  ;;  %v5924_v21 = vld [vmem:[%s6625_s25 + $0x2b0] ss:$24 sps:$4 sm:$0xff]  }
 0x10d   : > { %4079 = vmatpush1.bf16.msra.mxu0 %v5828_v22  ;;  %4091 = vmatprep.subr.bf16.mxu1 %v5839_v23  ;;  %v5929_v22 = vld [vmem:[%s6625_s25 + $0x2dc] ss:$24 sps:$4 sm:$0xff]  }
 0x10e   : > { %4349 = vmatprep.subr.bf16.mxu0 %v5842_v24  ;;  %v5932_v23 = vld [vmem:[%s6625_s25 + $0x2e4] ss:$24 sps:$4 sm:$0xff]   ;;  %v5927_v24 = vld [vmem:[%s6625_s25 + $0x2d8] ss:$24 sps:$4 sm:$0xff]  }
 0x10f   : > { %3952 = vmatmul.mubr.bf16.vlgmr.msra.gmra.mrb[0].mxu1 %v5831_v25  ;;  %v5930_v25 = vld [vmem:[%s6625_s25 + $0x2e0] ss:$24 sps:$4 sm:$0xff]  }
 0x110   : > { %4081 = vmatmul.mubr.bf16.vlgmr.msra.gmra.mrb[0].mxu0 %v5834_v26  ;;  %4092 = vmatpush1.bf16.msra.mxu1 %v5837_v27  ;;  %v5935_v26 = vld [vmem:[%s6625_s25 + $0x30c] ss:$24 sps:$4 sm:$0xff]  }
 0x111   : > { %4350 = vmatpush1.bf16.msra.mxu0 %v5840_v28  ;;  %4093 = vmatprep.subr.bf16.mxu1 %v5845_v29  ;;  %v5938_v27 = vld [vmem:[%s6625_s25 + $0x314] ss:$24 sps:$4 sm:$0xff]   ;;  %v5933_v28 = vld [vmem:[%s6625_s25 + $0x308] ss:$24 sps:$4 sm:$0xff]  }
 0x112   : > { %4351 = vmatprep.subr.bf16.mxu0 %v5848_v30  ;;  %4123 = vmatprep.mubr.bf16.mxu1 %v6413_v35  ;;  %v5936_v29 = vld [vmem:[%s6625_s25 + $0x310] ss:$24 sps:$4 sm:$0xff]   ;;  %v5941_v30 = vld [vmem:[%s6625_s25 + $0x33c] ss:$24 sps:$4 sm:$0xff]  }
 0x113   : > { %4381 = vmatprep.mubr.bf16.mxu0 %v6413_v35  ;;  %v5947_v35 = vld [vmem:[%s6625_s25 + $0x36c] ss:$24 sps:$4 sm:$0xff]  }
 0x114   : > { %4094 = vmatpush1.bf16.msra.mxu1 %v5843_v31  ;;  %v5944_v31 = vld [vmem:[%s6625_s25 + $0x344] ss:$24 sps:$4 sm:$0xff]  }
 0x115   : > { %4352 = vmatpush1.bf16.msra.mxu0 %v5846_v32  ;;  %4095 = vmatprep.subr.bf16.mxu1 %v5851_v33  ;;  %v6414_v32 = vld [vmem:[%s6623_s20] ss:$48 sps:$4 sm:$0xff]  }
 0x116   : > { %4353 = vmatprep.subr.bf16.mxu0 %v5854_v34  ;;  %v5939_v33 = vld [vmem:[%s6625_s25 + $0x338] ss:$24 sps:$4 sm:$0xff]  }
 0x117   : > { %v5942_v34 = vld [vmem:[%s6625_s25 + $0x340] ss:$24 sps:$4 sm:$0xff]  }
 0x118   : > { %4096 = vmatpush1.bf16.msra.mxu1 %v5849_v36  ;;  %v5950_v36 = vld [vmem:[%s6625_s25 + $0x374] ss:$24 sps:$4 sm:$0xff]  }
 0x119   : > { %4354 = vmatpush1.bf16.msra.mxu0 %v5852_v37  ;;  %4097 = vmatprep.subr.bf16.mxu1 %v5857_v38  ;;  %v6415_v37 = vld [vmem:[%s6623_s20 + $0xc] ss:$48 sps:$4 sm:$0xff]   ;;  %v5945_v38 = vld [vmem:[%s6625_s25 + $0x368] ss:$24 sps:$4 sm:$0xff]  }
 0x11a   : > { %4355 = vmatprep.subr.bf16.mxu0 %v5860_v39  ;;  %v5948_v39 = vld [vmem:[%s6625_s25 + $0x370] ss:$24 sps:$4 sm:$0xff]  }
 0x11c   : > { %4098 = vmatpush1.bf16.msra.mxu1 %v5855_v40  ;;  %v5953_v40 = vld [vmem:[%s6625_s25 + $0x39c] ss:$24 sps:$4 sm:$0xff]  }
 0x11d   : > { %4356 = vmatpush1.bf16.msra.mxu0 %v5858_v41  ;;  %4099 = vmatprep.subr.bf16.mxu1 %v5863_v42  ;;  %v5956_v41 = vld [vmem:[%s6625_s25 + $0x3a4] ss:$24 sps:$4 sm:$0xff]   ;;  %v5951_v42 = vld [vmem:[%s6625_s25 + $0x398] ss:$24 sps:$4 sm:$0xff]  }
 0x11e   : > { %4357 = vmatprep.subr.bf16.mxu0 %v5866_v43  ;;  %v5954_v43 = vld [vmem:[%s6625_s25 + $0x3a0] ss:$24 sps:$4 sm:$0xff]  }
 0x120   : > { %4100 = vmatpush1.bf16.msra.mxu1 %v5861_v44  ;;  %v5959_v44 = vld [vmem:[%s6625_s25 + $0x3cc] ss:$24 sps:$4 sm:$0xff]  }
 0x121   : > { %4358 = vmatpush1.bf16.msra.mxu0 %v5864_v45  ;;  %4101 = vmatprep.subr.bf16.mxu1 %v5869_v46  ;;  %v5962_v45 = vld [vmem:[%s6625_s25 + $0x3d4] ss:$24 sps:$4 sm:$0xff]   ;;  %v5957_v46 = vld [vmem:[%s6625_s25 + $0x3c8] ss:$24 sps:$4 sm:$0xff]  }
 0x122   : > { %4359 = vmatprep.subr.bf16.mxu0 %v5872_v47  ;;  %v5960_v47 = vld [vmem:[%s6625_s25 + $0x3d0] ss:$24 sps:$4 sm:$0xff]  }
 0x124   : > { %4102 = vmatpush1.bf16.msra.mxu1 %v5867_v48  ;;  %v5965_v48 = vld [vmem:[%s6625_s25 + $0x3fc] ss:$24 sps:$4 sm:$0xff]  }
 0x125   : > { %4360 = vmatpush1.bf16.msra.mxu0 %v5870_v49  ;;  %4103 = vmatprep.subr.bf16.mxu1 %v5875_v50  ;;  %v5968_v49 = vld [vmem:[%s6625_s25 + $0x404] ss:$24 sps:$4 sm:$0xff]   ;;  %v5963_v50 = vld [vmem:[%s6625_s25 + $0x3f8] ss:$24 sps:$4 sm:$0xff]  }
 0x126   : > { %4361 = vmatprep.subr.bf16.mxu0 %v5878_v51  ;;  %v5966_v51 = vld [vmem:[%s6625_s25 + $0x400] ss:$24 sps:$4 sm:$0xff]  }
 0x128   : > { %4104 = vmatpush1.bf16.msra.mxu1 %v5873_v52  ;;  %v5971_v52 = vld [vmem:[%s6625_s25 + $0x42c] ss:$24 sps:$4 sm:$0xff]  }
 0x129   : > { %4362 = vmatpush1.bf16.msra.mxu0 %v5876_v53  ;;  %4105 = vmatprep.subr.bf16.mxu1 %v5881_v54  ;;  %v5974_v53 = vld [vmem:[%s6625_s25 + $0x434] ss:$24 sps:$4 sm:$0xff]   ;;  %v5969_v54 = vld [vmem:[%s6625_s25 + $0x428] ss:$24 sps:$4 sm:$0xff]  }
 0x12a   : > { %4363 = vmatprep.subr.bf16.mxu0 %v5884_v55  ;;  %v5972_v55 = vld [vmem:[%s6625_s25 + $0x430] ss:$24 sps:$4 sm:$0xff]  }
 0x12c   : > { %4106 = vmatpush1.bf16.msra.mxu1 %v5879_v56  ;;  %v5977_v56 = vld [vmem:[%s6625_s25 + $0x45c] ss:$24 sps:$4 sm:$0xff]  }
 0x12d   : > { %4364 = vmatpush1.bf16.msra.mxu0 %v5882_v57  ;;  %4107 = vmatprep.subr.bf16.mxu1 %v5887_v58  ;;  %v5980_v57 = vld [vmem:[%s6625_s25 + $0x464] ss:$24 sps:$4 sm:$0xff]   ;;  %v5975_v58 = vld [vmem:[%s6625_s25 + $0x458] ss:$24 sps:$4 sm:$0xff]  }
 0x12e   : > { %4365 = vmatprep.subr.bf16.mxu0 %v5890_v59  ;;  %v5978_v59 = vld [vmem:[%s6625_s25 + $0x460] ss:$24 sps:$4 sm:$0xff]  }
 0x130   : > { %4108 = vmatpush1.bf16.msra.mxu1 %v5885_v60  ;;  %v5983_v60 = vld [vmem:[%s6625_s25 + $0x48c] ss:$24 sps:$4 sm:$0xff]  }
 0x131   : > { %4366 = vmatpush1.bf16.msra.mxu0 %v5888_v61  ;;  %4109 = vmatprep.subr.bf16.mxu1 %v5893_v62  ;;  %v5986_v61 = vld [vmem:[%s6625_s25 + $0x494] ss:$24 sps:$4 sm:$0xff]   ;;  %v5981_v62 = vld [vmem:[%s6625_s25 + $0x488] ss:$24 sps:$4 sm:$0xff]  }
 0x132   : > { %4367 = vmatprep.subr.bf16.mxu0 %v5896_v63  ;;  %v5984_v63 = vld [vmem:[%s6625_s25 + $0x490] ss:$24 sps:$4 sm:$0xff]  }
 0x134   : > { %4110 = vmatpush1.bf16.msra.mxu1 %v5891_v0  ;;  %v5989_v0 = vld [vmem:[%s6625_s25 + $0x4bc] ss:$24 sps:$4 sm:$0xff]  }
 0x135   : > { %4368 = vmatpush1.bf16.msra.mxu0 %v5894_v1  ;;  %4111 = vmatprep.subr.bf16.mxu1 %v5899_v2  ;;  %v5992_v1 = vld [vmem:[%s6625_s25 + $0x4c4] ss:$24 sps:$4 sm:$0xff]   ;;  %v5987_v2 = vld [vmem:[%s6625_s25 + $0x4b8] ss:$24 sps:$4 sm:$0xff]  }
 0x136   : > { %4369 = vmatprep.subr.bf16.mxu0 %v5902_v3  ;;  %v5990_v3 = vld [vmem:[%s6625_s25 + $0x4c0] ss:$24 sps:$4 sm:$0xff]  }
 0x138   : > { %4112 = vmatpush1.bf16.msra.mxu1 %v5897_v4  ;;  %v5995_v4 = vld [vmem:[%s6625_s25 + $0x4ec] ss:$24 sps:$4 sm:$0xff]  }
 0x139   : > { %4370 = vmatpush1.bf16.msra.mxu0 %v5900_v5  ;;  %4113 = vmatprep.subr.bf16.mxu1 %v5905_v6  ;;  %v5998_v5 = vld [vmem:[%s6625_s25 + $0x4f4] ss:$24 sps:$4 sm:$0xff]   ;;  %v5993_v6 = vld [vmem:[%s6625_s25 + $0x4e8] ss:$24 sps:$4 sm:$0xff]  }
 0x13a   : > { %4371 = vmatprep.subr.bf16.mxu0 %v5908_v7  ;;  %v5996_v7 = vld [vmem:[%s6625_s25 + $0x4f0] ss:$24 sps:$4 sm:$0xff]  }
 0x13c   : > { %4114 = vmatpush1.bf16.msra.mxu1 %v5903_v8  ;;  %v6001_v8 = vld [vmem:[%s6625_s25 + $0x51c] ss:$24 sps:$4 sm:$0xff]  }
 0x13d   : > { %4372 = vmatpush1.bf16.msra.mxu0 %v5906_v9  ;;  %4115 = vmatprep.subr.bf16.mxu1 %v5911_v10  ;;  %v6004_v9 = vld [vmem:[%s6625_s25 + $0x524] ss:$24 sps:$4 sm:$0xff]   ;;  %v5999_v10 = vld [vmem:[%s6625_s25 + $0x518] ss:$24 sps:$4 sm:$0xff]  }
 0x13e   : > { %4373 = vmatprep.subr.bf16.mxu0 %v5914_v11  ;;  %v6002_v11 = vld [vmem:[%s6625_s25 + $0x520] ss:$24 sps:$4 sm:$0xff]  }
 0x140   : > { %4116 = vmatpush1.bf16.msra.mxu1 %v5909_v12  ;;  %v6007_v12 = vld [vmem:[%s6625_s25 + $0x54c] ss:$24 sps:$4 sm:$0xff]  }
 0x141   : > { %4374 = vmatpush1.bf16.msra.mxu0 %v5912_v13  ;;  %4117 = vmatprep.subr.bf16.mxu1 %v5917_v14  ;;  %v6010_v13 = vld [vmem:[%s6625_s25 + $0x554] ss:$24 sps:$4 sm:$0xff]   ;;  %v6005_v14 = vld [vmem:[%s6625_s25 + $0x548] ss:$24 sps:$4 sm:$0xff]  }
 0x142   : > { %4375 = vmatprep.subr.bf16.mxu0 %v5920_v15  ;;  %v6008_v15 = vld [vmem:[%s6625_s25 + $0x550] ss:$24 sps:$4 sm:$0xff]  }
 0x144   : > { %4118 = vmatpush1.bf16.msra.mxu1 %v5915_v16  ;;  %v6013_v16 = vld [vmem:[%s6625_s25 + $0x57c] ss:$24 sps:$4 sm:$0xff]  }
 0x145   : > { %4376 = vmatpush1.bf16.msra.mxu0 %v5918_v17  ;;  %4119 = vmatprep.subr.bf16.mxu1 %v5923_v18  ;;  %v6016_v17 = vld [vmem:[%s6625_s25 + $0x584] ss:$24 sps:$4 sm:$0xff]   ;;  %v6011_v18 = vld [vmem:[%s6625_s25 + $0x578] ss:$24 sps:$4 sm:$0xff]  }
 0x146   : > { %4377 = vmatprep.subr.bf16.mxu0 %v5926_v19  ;;  %v6014_v19 = vld [vmem:[%s6625_s25 + $0x580] ss:$24 sps:$4 sm:$0xff]  }
 0x148   : > { %4120 = vmatpush1.bf16.msra.mxu1 %v5921_v20  ;;  %v6019_v20 = vld [vmem:[%s6625_s25 + $0x5ac] ss:$24 sps:$4 sm:$0xff]  }
 0x149   : > { %4378 = vmatpush1.bf16.msra.mxu0 %v5924_v21  ;;  %4121 = vmatprep.subr.bf16.mxu1 %v5929_v22  ;;  %v6022_v21 = vld [vmem:[%s6625_s25 + $0x5b4] ss:$24 sps:$4 sm:$0xff]   ;;  %v6017_v22 = vld [vmem:[%s6625_s25 + $0x5a8] ss:$24 sps:$4 sm:$0xff]  }
 0x14a   : > { %4379 = vmatprep.subr.bf16.mxu0 %v5932_v23  ;;  %v6020_v23 = vld [vmem:[%s6625_s25 + $0x5b0] ss:$24 sps:$4 sm:$0xff]  }
 0x14c   : > { %4122 = vmatpush1.bf16.msra.mxu1 %v5927_v24  ;;  %v6025_v24 = vld [vmem:[%s6625_s25 + $0x5dc] ss:$24 sps:$4 sm:$0xff]  }
 0x14d   : > { %4380 = vmatpush1.bf16.msra.mxu0 %v5930_v25  ;;  %4134 = vmatprep.subr.bf16.mxu1 %v5935_v26  ;;  %v6028_v25 = vld [vmem:[%s6625_s25 + $0x5e4] ss:$24 sps:$4 sm:$0xff]   ;;  %v6023_v26 = vld [vmem:[%s6625_s25 + $0x5d8] ss:$24 sps:$4 sm:$0xff]  }
 0x14e   : > { %4392 = vmatprep.subr.bf16.mxu0 %v5938_v27  ;;  %v6026_v27 = vld [vmem:[%s6625_s25 + $0x5e0] ss:$24 sps:$4 sm:$0xff]  }
 0x14f   : > { %4124 = vmatmul.mubr.bf16.vlgmr.msra.gmra.mrb[4].mxu1 %v6414_v32 }
 0x150   : > { %4382 = vmatmul.mubr.bf16.vlgmr.msra.gmra.mrb[4].mxu0 %v6414_v32  ;;  %4135 = vmatpush1.bf16.msra.mxu1 %v5933_v28  ;;  %v6031_v28 = vld [vmem:[%s6625_s25 + $0x60c] ss:$24 sps:$4 sm:$0xff]   ;;  %v6037_v32 = vld [vmem:[%s6625_s25 + $0x63c] ss:$24 sps:$4 sm:$0xff]  }
 0x151   : > { %4393 = vmatpush1.bf16.msra.mxu0 %v5936_v29  ;;  %4136 = vmatprep.subr.bf16.mxu1 %v5941_v30  ;;  %v6034_v29 = vld [vmem:[%s6625_s25 + $0x614] ss:$24 sps:$4 sm:$0xff]   ;;  %v6029_v30 = vld [vmem:[%s6625_s25 + $0x608] ss:$24 sps:$4 sm:$0xff]  }
 0x152   : > { %4394 = vmatprep.subr.bf16.mxu0 %v5944_v31  ;;  %4166 = vmatprep.mubr.bf16.mxu1 %v6415_v37  ;;  %v6032_v31 = vld [vmem:[%s6625_s25 + $0x610] ss:$24 sps:$4 sm:$0xff]  }
 0x153   : > { %4424 = vmatprep.mubr.bf16.mxu0 %v6415_v37  ;;  %v6043_v37 = vld [vmem:[%s6625_s25 + $0x66c] ss:$24 sps:$4 sm:$0xff]  }
 0x154   : > { %4137 = vmatpush1.bf16.msra.mxu1 %v5939_v33  ;;  %v6040_v33 = vld [vmem:[%s6625_s25 + $0x644] ss:$24 sps:$4 sm:$0xff]  }
 0x155   : > { %4395 = vmatpush1.bf16.msra.mxu0 %v5942_v34  ;;  %4138 = vmatprep.subr.bf16.mxu1 %v5947_v35  ;;  %v6416_v34 = vld [vmem:[%s6623_s20 + $0x8] ss:$48 sps:$4 sm:$0xff]  }
 0x156   : > { %4396 = vmatprep.subr.bf16.mxu0 %v5950_v36  ;;  %v6035_v35 = vld [vmem:[%s6625_s25 + $0x638] ss:$24 sps:$4 sm:$0xff]  }
 0x157   : > { %v6038_v36 = vld [vmem:[%s6625_s25 + $0x640] ss:$24 sps:$4 sm:$0xff]  }
 0x158   : > { %4139 = vmatpush1.bf16.msra.mxu1 %v5945_v38  ;;  %v6046_v38 = vld [vmem:[%s6625_s25 + $0x674] ss:$24 sps:$4 sm:$0xff]  }
 0x159   : > { %4397 = vmatpush1.bf16.msra.mxu0 %v5948_v39  ;;  %4140 = vmatprep.subr.bf16.mxu1 %v5953_v40  ;;  %v6417_v39 = vld [vmem:[%s6623_s20 + $0x14] ss:$48 sps:$4 sm:$0xff]   ;;  %v6041_v40 = vld [vmem:[%s6625_s25 + $0x668] ss:$24 sps:$4 sm:$0xff]  }
 0x15a   : > { %4398 = vmatprep.subr.bf16.mxu0 %v5956_v41  ;;  %v6044_v41 = vld [vmem:[%s6625_s25 + $0x670] ss:$24 sps:$4 sm:$0xff]  }
 0x15c   : > { %4141 = vmatpush1.bf16.msra.mxu1 %v5951_v42  ;;  %v6049_v42 = vld [vmem:[%s6625_s25 + $0x69c] ss:$24 sps:$4 sm:$0xff]  }
 0x15d   : > { %4399 = vmatpush1.bf16.msra.mxu0 %v5954_v43  ;;  %4142 = vmatprep.subr.bf16.mxu1 %v5959_v44  ;;  %v6052_v43 = vld [vmem:[%s6625_s25 + $0x6a4] ss:$24 sps:$4 sm:$0xff]   ;;  %v6047_v44 = vld [vmem:[%s6625_s25 + $0x698] ss:$24 sps:$4 sm:$0xff]  }
 0x15e   : > { %4400 = vmatprep.subr.bf16.mxu0 %v5962_v45  ;;  %v6050_v45 = vld [vmem:[%s6625_s25 + $0x6a0] ss:$24 sps:$4 sm:$0xff]  }
 0x160   : > { %4143 = vmatpush1.bf16.msra.mxu1 %v5957_v46  ;;  %v6055_v46 = vld [vmem:[%s6625_s25 + $0x6cc] ss:$24 sps:$4 sm:$0xff]  }
 0x161   : > { %4401 = vmatpush1.bf16.msra.mxu0 %v5960_v47  ;;  %4144 = vmatprep.subr.bf16.mxu1 %v5965_v48  ;;  %v6058_v47 = vld [vmem:[%s6625_s25 + $0x6d4] ss:$24 sps:$4 sm:$0xff]   ;;  %v6053_v48 = vld [vmem:[%s6625_s25 + $0x6c8] ss:$24 sps:$4 sm:$0xff]  }
 0x162   : > { %4402 = vmatprep.subr.bf16.mxu0 %v5968_v49  ;;  %v6056_v49 = vld [vmem:[%s6625_s25 + $0x6d0] ss:$24 sps:$4 sm:$0xff]  }
 0x164   : > { %4145 = vmatpush1.bf16.msra.mxu1 %v5963_v50  ;;  %v6061_v50 = vld [vmem:[%s6625_s25 + $0x6fc] ss:$24 sps:$4 sm:$0xff]  }
 0x165   : > { %4403 = vmatpush1.bf16.msra.mxu0 %v5966_v51  ;;  %4146 = vmatprep.subr.bf16.mxu1 %v5971_v52  ;;  %v6064_v51 = vld [vmem:[%s6625_s25 + $0x704] ss:$24 sps:$4 sm:$0xff]   ;;  %v6059_v52 = vld [vmem:[%s6625_s25 + $0x6f8] ss:$24 sps:$4 sm:$0xff]  }
 0x166   : > { %4404 = vmatprep.subr.bf16.mxu0 %v5974_v53  ;;  %v6062_v53 = vld [vmem:[%s6625_s25 + $0x700] ss:$24 sps:$4 sm:$0xff]  }
 0x168   : > { %4147 = vmatpush1.bf16.msra.mxu1 %v5969_v54  ;;  %v6067_v54 = vld [vmem:[%s6625_s25 + $0x72c] ss:$24 sps:$4 sm:$0xff]  }
 0x169   : > { %4405 = vmatpush1.bf16.msra.mxu0 %v5972_v55  ;;  %4148 = vmatprep.subr.bf16.mxu1 %v5977_v56  ;;  %v6070_v55 = vld [vmem:[%s6625_s25 + $0x734] ss:$24 sps:$4 sm:$0xff]   ;;  %v6065_v56 = vld [vmem:[%s6625_s25 + $0x728] ss:$24 sps:$4 sm:$0xff]  }
 0x16a   : > { %4406 = vmatprep.subr.bf16.mxu0 %v5980_v57  ;;  %v6068_v57 = vld [vmem:[%s6625_s25 + $0x730] ss:$24 sps:$4 sm:$0xff]  }
 0x16c   : > { %4149 = vmatpush1.bf16.msra.mxu1 %v5975_v58  ;;  %v6073_v58 = vld [vmem:[%s6625_s25 + $0x75c] ss:$24 sps:$4 sm:$0xff]  }
 0x16d   : > { %4407 = vmatpush1.bf16.msra.mxu0 %v5978_v59  ;;  %4150 = vmatprep.subr.bf16.mxu1 %v5983_v60  ;;  %v6076_v59 = vld [vmem:[%s6625_s25 + $0x764] ss:$24 sps:$4 sm:$0xff]   ;;  %v6071_v60 = vld [vmem:[%s6625_s25 + $0x758] ss:$24 sps:$4 sm:$0xff]  }
 0x16e   : > { %4408 = vmatprep.subr.bf16.mxu0 %v5986_v61  ;;  %v6074_v61 = vld [vmem:[%s6625_s25 + $0x760] ss:$24 sps:$4 sm:$0xff]  }
 0x170   : > { %4151 = vmatpush1.bf16.msra.mxu1 %v5981_v62  ;;  %v6079_v62 = vld [vmem:[%s6625_s25 + $0x78c] ss:$24 sps:$4 sm:$0xff]  }
 0x171   : > { %4409 = vmatpush1.bf16.msra.mxu0 %v5984_v63  ;;  %4152 = vmatprep.subr.bf16.mxu1 %v5989_v0  ;;  %v6082_v63 = vld [vmem:[%s6625_s25 + $0x794] ss:$24 sps:$4 sm:$0xff]   ;;  %v6077_v0 = vld [vmem:[%s6625_s25 + $0x788] ss:$24 sps:$4 sm:$0xff]  }
 0x172   : > { %4410 = vmatprep.subr.bf16.mxu0 %v5992_v1  ;;  %v6080_v1 = vld [vmem:[%s6625_s25 + $0x790] ss:$24 sps:$4 sm:$0xff]  }
 0x174   : > { %4153 = vmatpush1.bf16.msra.mxu1 %v5987_v2  ;;  %v6085_v2 = vld [vmem:[%s6625_s25 + $0x7bc] ss:$24 sps:$4 sm:$0xff]  }
 0x175   : > { %4411 = vmatpush1.bf16.msra.mxu0 %v5990_v3  ;;  %4154 = vmatprep.subr.bf16.mxu1 %v5995_v4  ;;  %v6088_v3 = vld [vmem:[%s6625_s25 + $0x7c4] ss:$24 sps:$4 sm:$0xff]   ;;  %v6083_v4 = vld [vmem:[%s6625_s25 + $0x7b8] ss:$24 sps:$4 sm:$0xff]  }
 0x176   : > { %4412 = vmatprep.subr.bf16.mxu0 %v5998_v5  ;;  %v6086_v5 = vld [vmem:[%s6625_s25 + $0x7c0] ss:$24 sps:$4 sm:$0xff]  }
 0x178   : > { %4155 = vmatpush1.bf16.msra.mxu1 %v5993_v6  ;;  %v6091_v6 = vld [vmem:[%s6625_s25 + $0x7ec] ss:$24 sps:$4 sm:$0xff]  }
 0x179   : > { %4413 = vmatpush1.bf16.msra.mxu0 %v5996_v7  ;;  %4156 = vmatprep.subr.bf16.mxu1 %v6001_v8  ;;  %v6094_v7 = vld [vmem:[%s6625_s25 + $0x7f4] ss:$24 sps:$4 sm:$0xff]   ;;  %v6089_v8 = vld [vmem:[%s6625_s25 + $0x7e8] ss:$24 sps:$4 sm:$0xff]  }
 0x17a   : > { %4414 = vmatprep.subr.bf16.mxu0 %v6004_v9  ;;  %v6092_v9 = vld [vmem:[%s6625_s25 + $0x7f0] ss:$24 sps:$4 sm:$0xff]  }
 0x17c   : > { %4157 = vmatpush1.bf16.msra.mxu1 %v5999_v10  ;;  %v6097_v10 = vld [vmem:[%s6625_s25 + $0x81c] ss:$24 sps:$4 sm:$0xff]  }
 0x17d   : > { %4415 = vmatpush1.bf16.msra.mxu0 %v6002_v11  ;;  %4158 = vmatprep.subr.bf16.mxu1 %v6007_v12  ;;  %v6100_v11 = vld [vmem:[%s6625_s25 + $0x824] ss:$24 sps:$4 sm:$0xff]   ;;  %v6095_v12 = vld [vmem:[%s6625_s25 + $0x818] ss:$24 sps:$4 sm:$0xff]  }
 0x17e   : > { %4416 = vmatprep.subr.bf16.mxu0 %v6010_v13  ;;  %v6098_v13 = vld [vmem:[%s6625_s25 + $0x820] ss:$24 sps:$4 sm:$0xff]  }
 0x180   : > { %4159 = vmatpush1.bf16.msra.mxu1 %v6005_v14  ;;  %v6103_v14 = vld [vmem:[%s6625_s25 + $0x84c] ss:$24 sps:$4 sm:$0xff]  }
 0x181   : > { %4417 = vmatpush1.bf16.msra.mxu0 %v6008_v15  ;;  %4160 = vmatprep.subr.bf16.mxu1 %v6013_v16  ;;  %v6106_v15 = vld [vmem:[%s6625_s25 + $0x854] ss:$24 sps:$4 sm:$0xff]   ;;  %v6101_v16 = vld [vmem:[%s6625_s25 + $0x848] ss:$24 sps:$4 sm:$0xff]  }
 0x182   : > { %4418 = vmatprep.subr.bf16.mxu0 %v6016_v17  ;;  %v6104_v17 = vld [vmem:[%s6625_s25 + $0x850] ss:$24 sps:$4 sm:$0xff]  }
 0x184   : > { %4161 = vmatpush1.bf16.msra.mxu1 %v6011_v18  ;;  %v6109_v18 = vld [vmem:[%s6625_s25 + $0x87c] ss:$24 sps:$4 sm:$0xff]  }
 0x185   : > { %4419 = vmatpush1.bf16.msra.mxu0 %v6014_v19  ;;  %4162 = vmatprep.subr.bf16.mxu1 %v6019_v20  ;;  %v6112_v19 = vld [vmem:[%s6625_s25 + $0x884] ss:$24 sps:$4 sm:$0xff]   ;;  %v6107_v20 = vld [vmem:[%s6625_s25 + $0x878] ss:$24 sps:$4 sm:$0xff]  }
 0x186   : > { %4420 = vmatprep.subr.bf16.mxu0 %v6022_v21  ;;  %v6110_v21 = vld [vmem:[%s6625_s25 + $0x880] ss:$24 sps:$4 sm:$0xff]  }
 0x188   : > { %4163 = vmatpush1.bf16.msra.mxu1 %v6017_v22  ;;  %v6115_v22 = vld [vmem:[%s6625_s25 + $0x8ac] ss:$24 sps:$4 sm:$0xff]  }
 0x189   : > { %4421 = vmatpush1.bf16.msra.mxu0 %v6020_v23  ;;  %4164 = vmatprep.subr.bf16.mxu1 %v6025_v24  ;;  %v6118_v23 = vld [vmem:[%s6625_s25 + $0x8b4] ss:$24 sps:$4 sm:$0xff]   ;;  %v6113_v24 = vld [vmem:[%s6625_s25 + $0x8a8] ss:$24 sps:$4 sm:$0xff]  }
 0x18a   : > { %4422 = vmatprep.subr.bf16.mxu0 %v6028_v25  ;;  %v6116_v25 = vld [vmem:[%s6625_s25 + $0x8b0] ss:$24 sps:$4 sm:$0xff]  }
 0x18c   : > { %4165 = vmatpush1.bf16.msra.mxu1 %v6023_v26  ;;  %v6121_v26 = vld [vmem:[%s6625_s25 + $0x8dc] ss:$24 sps:$4 sm:$0xff]  }
 0x18d   : > { %4423 = vmatpush1.bf16.msra.mxu0 %v6026_v27  ;;  %4177 = vmatprep.subr.bf16.mxu1 %v6031_v28  ;;  %v6124_v27 = vld [vmem:[%s6625_s25 + $0x8e4] ss:$24 sps:$4 sm:$0xff]   ;;  %v6119_v28 = vld [vmem:[%s6625_s25 + $0x8d8] ss:$24 sps:$4 sm:$0xff]  }
 0x18e   : > { %4435 = vmatprep.subr.bf16.mxu0 %v6034_v29  ;;  %v6122_v29 = vld [vmem:[%s6625_s25 + $0x8e0] ss:$24 sps:$4 sm:$0xff]  }
 0x18f   : > { %4167 = vmatmul.mubr.bf16.vlgmr.msra.gmra.mrb[4].mxu1 %v6416_v34 }
 0x190   : > { %4425 = vmatmul.mubr.bf16.vlgmr.msra.gmra.mrb[4].mxu0 %v6416_v34  ;;  %4178 = vmatpush1.bf16.msra.mxu1 %v6029_v30  ;;  %v6127_v30 = vld [vmem:[%s6625_s25 + $0x90c] ss:$24 sps:$4 sm:$0xff]   ;;  %v6133_v34 = vld [vmem:[%s6625_s25 + $0x93c] ss:$24 sps:$4 sm:$0xff]  }
 0x191   : > { %4436 = vmatpush1.bf16.msra.mxu0 %v6032_v31  ;;  %4179 = vmatprep.subr.bf16.mxu1 %v6037_v32  ;;  %v6130_v31 = vld [vmem:[%s6625_s25 + $0x914] ss:$24 sps:$4 sm:$0xff]   ;;  %v6125_v32 = vld [vmem:[%s6625_s25 + $0x908] ss:$24 sps:$4 sm:$0xff]  }
 0x192   : > { %4437 = vmatprep.subr.bf16.mxu0 %v6040_v33  ;;  %4209 = vmatprep.mubr.bf16.mxu1 %v6417_v39  ;;  %v6128_v33 = vld [vmem:[%s6625_s25 + $0x910] ss:$24 sps:$4 sm:$0xff]  }
 0x193   : > { %4467 = vmatprep.mubr.bf16.mxu0 %v6417_v39  ;;  %v6139_v39 = vld [vmem:[%s6625_s25 + $0x96c] ss:$24 sps:$4 sm:$0xff]  }
 0x194   : > { %4180 = vmatpush1.bf16.msra.mxu1 %v6035_v35  ;;  %v6136_v35 = vld [vmem:[%s6625_s25 + $0x944] ss:$24 sps:$4 sm:$0xff]  }
 0x195   : > { %4438 = vmatpush1.bf16.msra.mxu0 %v6038_v36  ;;  %4181 = vmatprep.subr.bf16.mxu1 %v6043_v37  ;;  %v6418_v36 = vld [vmem:[%s6623_s20 + $0x10] ss:$48 sps:$4 sm:$0xff]  }
 0x196   : > { %4439 = vmatprep.subr.bf16.mxu0 %v6046_v38  ;;  %v6131_v37 = vld [vmem:[%s6625_s25 + $0x938] ss:$24 sps:$4 sm:$0xff]  }
 0x197   : > { %v6134_v38 = vld [vmem:[%s6625_s25 + $0x940] ss:$24 sps:$4 sm:$0xff]  }
 0x198   : > { %4182 = vmatpush1.bf16.msra.mxu1 %v6041_v40  ;;  %v6142_v40 = vld [vmem:[%s6625_s25 + $0x974] ss:$24 sps:$4 sm:$0xff]  }
 0x199   : > { %4440 = vmatpush1.bf16.msra.mxu0 %v6044_v41  ;;  %4183 = vmatprep.subr.bf16.mxu1 %v6049_v42  ;;  %v6419_v41 = vld [vmem:[%s6623_s20 + $0x1c] ss:$48 sps:$4 sm:$0xff]   ;;  %v6137_v42 = vld [vmem:[%s6625_s25 + $0x968] ss:$24 sps:$4 sm:$0xff]  }
 0x19a   : > { %4441 = vmatprep.subr.bf16.mxu0 %v6052_v43  ;;  %v6140_v43 = vld [vmem:[%s6625_s25 + $0x970] ss:$24 sps:$4 sm:$0xff]  }
 0x19c   : > { %4184 = vmatpush1.bf16.msra.mxu1 %v6047_v44  ;;  %v6145_v44 = vld [vmem:[%s6625_s25 + $0x99c] ss:$24 sps:$4 sm:$0xff]  }
 0x19d   : > { %4442 = vmatpush1.bf16.msra.mxu0 %v6050_v45  ;;  %4185 = vmatprep.subr.bf16.mxu1 %v6055_v46  ;;  %v6148_v45 = vld [vmem:[%s6625_s25 + $0x9a4] ss:$24 sps:$4 sm:$0xff]   ;;  %v6143_v46 = vld [vmem:[%s6625_s25 + $0x998] ss:$24 sps:$4 sm:$0xff]  }
 0x19e   : > { %4443 = vmatprep.subr.bf16.mxu0 %v6058_v47  ;;  %v6146_v47 = vld [vmem:[%s6625_s25 + $0x9a0] ss:$24 sps:$4 sm:$0xff]  }
 0x1a0   : > { %4186 = vmatpush1.bf16.msra.mxu1 %v6053_v48  ;;  %v6151_v48 = vld [vmem:[%s6625_s25 + $0x9cc] ss:$24 sps:$4 sm:$0xff]  }
 0x1a1   : > { %4444 = vmatpush1.bf16.msra.mxu0 %v6056_v49  ;;  %4187 = vmatprep.subr.bf16.mxu1 %v6061_v50  ;;  %v6154_v49 = vld [vmem:[%s6625_s25 + $0x9d4] ss:$24 sps:$4 sm:$0xff]   ;;  %v6149_v50 = vld [vmem:[%s6625_s25 + $0x9c8] ss:$24 sps:$4 sm:$0xff]  }
 0x1a2   : > { %4445 = vmatprep.subr.bf16.mxu0 %v6064_v51  ;;  %v6152_v51 = vld [vmem:[%s6625_s25 + $0x9d0] ss:$24 sps:$4 sm:$0xff]  }
 0x1a4   : > { %4188 = vmatpush1.bf16.msra.mxu1 %v6059_v52  ;;  %v6157_v52 = vld [vmem:[%s6625_s25 + $0x9fc] ss:$24 sps:$4 sm:$0xff]  }
 0x1a5   : > { %4446 = vmatpush1.bf16.msra.mxu0 %v6062_v53  ;;  %4189 = vmatprep.subr.bf16.mxu1 %v6067_v54  ;;  %v6160_v53 = vld [vmem:[%s6625_s25 + $0xa04] ss:$24 sps:$4 sm:$0xff]   ;;  %v6155_v54 = vld [vmem:[%s6625_s25 + $0x9f8] ss:$24 sps:$4 sm:$0xff]  }
 0x1a6   : > { %4447 = vmatprep.subr.bf16.mxu0 %v6070_v55  ;;  %v6158_v55 = vld [vmem:[%s6625_s25 + $0xa00] ss:$24 sps:$4 sm:$0xff]  }
 0x1a8   : > { %4190 = vmatpush1.bf16.msra.mxu1 %v6065_v56  ;;  %v6163_v56 = vld [vmem:[%s6625_s25 + $0xa2c] ss:$24 sps:$4 sm:$0xff]  }
 0x1a9   : > { %4448 = vmatpush1.bf16.msra.mxu0 %v6068_v57  ;;  %4191 = vmatprep.subr.bf16.mxu1 %v6073_v58  ;;  %v6166_v57 = vld [vmem:[%s6625_s25 + $0xa34] ss:$24 sps:$4 sm:$0xff]  }
 0x1aa   : > { %4449 = vmatprep.subr.bf16.mxu0 %v6076_v59  ;;  %v293_v59 = vld [vmem:[#allocation2] sm:$0xff] }
 0x1ac   : > { %4192 = vmatpush1.bf16.msra.mxu1 %v6071_v60 }
 0x1ad   : > { %4450 = vmatpush1.bf16.msra.mxu0 %v6074_v61  ;;  %4193 = vmatprep.subr.bf16.mxu1 %v6079_v62 }
 0x1ae   : > { %4451 = vmatprep.subr.bf16.mxu0 %v6082_v63  ;;  %v294_v63 = vld [vmem:[#allocation2 + $0x8] sm:$0xff] }
 0x1b0   : > { %4194 = vmatpush1.bf16.msra.mxu1 %v6077_v0 }
 0x1b1   : > { %4452 = vmatpush1.bf16.msra.mxu0 %v6080_v1  ;;  %4195 = vmatprep.subr.bf16.mxu1 %v6085_v2  ;;  %v6161_v1 = vld [vmem:[%s6625_s25 + $0xa28] ss:$24 sps:$4 sm:$0xff]  }
 0x1b2   : > { %4453 = vmatprep.subr.bf16.mxu0 %v6088_v3 }
 0x1b4   : > { %4196 = vmatpush1.bf16.msra.mxu1 %v6083_v4  ;;  %v299_v4 = vld [vmem:[#allocation2 + $0x30] sm:$0xff] }
 0x1b5   : > { %4454 = vmatpush1.bf16.msra.mxu0 %v6086_v5  ;;  %4197 = vmatprep.subr.bf16.mxu1 %v6091_v6  ;;  %v300_v6 = vld [vmem:[#allocation2 + $0x38] sm:$0xff] }
 0x1b6   : > { %4455 = vmatprep.subr.bf16.mxu0 %v6094_v7  ;;  %v6164_v7 = vld [vmem:[%s6625_s25 + $0xa30] ss:$24 sps:$4 sm:$0xff]  }
 0x1b8   : > { %4198 = vmatpush1.bf16.msra.mxu1 %v6089_v8 }
 0x1b9   : > { %4456 = vmatpush1.bf16.msra.mxu0 %v6092_v9  ;;  %4199 = vmatprep.subr.bf16.mxu1 %v6097_v10 }
 0x1ba   : > { %4457 = vmatprep.subr.bf16.mxu0 %v6100_v11 }
 0x1bc   : > { %4200 = vmatpush1.bf16.msra.mxu1 %v6095_v12  ;;  %v6169_v12 = vld [vmem:[%s6625_s25 + $0xa5c] ss:$24 sps:$4 sm:$0xff]  }
 0x1bd   : > { %4458 = vmatpush1.bf16.msra.mxu0 %v6098_v13  ;;  %4201 = vmatprep.subr.bf16.mxu1 %v6103_v14  ;;  %v6172_v13 = vld [vmem:[%s6625_s25 + $0xa64] ss:$24 sps:$4 sm:$0xff]  }
 0x1be   : > { %4459 = vmatprep.subr.bf16.mxu0 %v6106_v15 }
 0x1c0   : > { %4202 = vmatpush1.bf16.msra.mxu1 %v6101_v16 }
 0x1c1   : > { %4460 = vmatpush1.bf16.msra.mxu0 %v6104_v17  ;;  %4203 = vmatprep.subr.bf16.mxu1 %v6109_v18  ;;  %v6167_v18 = vld [vmem:[%s6625_s25 + $0xa58] ss:$24 sps:$4 sm:$0xff]  }
 0x1c2   : > { %4461 = vmatprep.subr.bf16.mxu0 %v6112_v19  ;;  %v6170_v19 = vld [vmem:[%s6625_s25 + $0xa60] ss:$24 sps:$4 sm:$0xff]  }
 0x1c4   : > { %4204 = vmatpush1.bf16.msra.mxu1 %v6107_v20  ;;  %v6175_v20 = vld [vmem:[%s6625_s25 + $0xa8c] ss:$24 sps:$4 sm:$0xff]  }
 0x1c5   : > { %4462 = vmatpush1.bf16.msra.mxu0 %v6110_v21  ;;  %4205 = vmatprep.subr.bf16.mxu1 %v6115_v22  ;;  %v6178_v21 = vld [vmem:[%s6625_s25 + $0xa94] ss:$24 sps:$4 sm:$0xff]   ;;  %v6173_v22 = vld [vmem:[%s6625_s25 + $0xa88] ss:$24 sps:$4 sm:$0xff]  }
 0x1c6   : > { %4463 = vmatprep.subr.bf16.mxu0 %v6118_v23  ;;  %v6176_v23 = vld [vmem:[%s6625_s25 + $0xa90] ss:$24 sps:$4 sm:$0xff]  }
 0x1c8   : > { %4206 = vmatpush1.bf16.msra.mxu1 %v6113_v24  ;;  %v6181_v24 = vld [vmem:[%s6625_s25 + $0xabc] ss:$24 sps:$4 sm:$0xff]  }
 0x1c9   : > { %4464 = vmatpush1.bf16.msra.mxu0 %v6116_v25  ;;  %4207 = vmatprep.subr.bf16.mxu1 %v6121_v26  ;;  %v6184_v25 = vld [vmem:[%s6625_s25 + $0xac4] ss:$24 sps:$4 sm:$0xff]   ;;  %v6179_v26 = vld [vmem:[%s6625_s25 + $0xab8] ss:$24 sps:$4 sm:$0xff]  }
 0x1ca   : > { %4465 = vmatprep.subr.bf16.mxu0 %v6124_v27  ;;  %v6182_v27 = vld [vmem:[%s6625_s25 + $0xac0] ss:$24 sps:$4 sm:$0xff]  }
 0x1cc   : > { %4208 = vmatpush1.bf16.msra.mxu1 %v6119_v28  ;;  %v6187_v28 = vld [vmem:[%s6625_s25 + $0xaec] ss:$24 sps:$4 sm:$0xff]  }
 0x1cd   : > { %4466 = vmatpush1.bf16.msra.mxu0 %v6122_v29  ;;  %4220 = vmatprep.subr.bf16.mxu1 %v6127_v30  ;;  %v6190_v29 = vld [vmem:[%s6625_s25 + $0xaf4] ss:$24 sps:$4 sm:$0xff]   ;;  %v6185_v30 = vld [vmem:[%s6625_s25 + $0xae8] ss:$24 sps:$4 sm:$0xff]  }
 0x1ce   : > { %4478 = vmatprep.subr.bf16.mxu0 %v6130_v31  ;;  %v6188_v31 = vld [vmem:[%s6625_s25 + $0xaf0] ss:$24 sps:$4 sm:$0xff]  }
 0x1cf   : > { %4210 = vmatmul.mubr.bf16.vlgmr.msra.gmra.mrb[4].mxu1 %v6418_v36 }
 0x1d0   : > { %4468 = vmatmul.mubr.bf16.vlgmr.msra.gmra.mrb[4].mxu0 %v6418_v36  ;;  %4221 = vmatpush1.bf16.msra.mxu1 %v6125_v32  ;;  %v6193_v32 = vld [vmem:[%s6625_s25 + $0xb1c] ss:$24 sps:$4 sm:$0xff]   ;;  %v6199_v36 = vld [vmem:[%s6625_s25 + $0xb4c] ss:$24 sps:$4 sm:$0xff]  }
 0x1d1   : > { %4479 = vmatpush1.bf16.msra.mxu0 %v6128_v33  ;;  %4222 = vmatprep.subr.bf16.mxu1 %v6133_v34  ;;  %v6196_v33 = vld [vmem:[%s6625_s25 + $0xb24] ss:$24 sps:$4 sm:$0xff]   ;;  %v6191_v34 = vld [vmem:[%s6625_s25 + $0xb18] ss:$24 sps:$4 sm:$0xff]  }
 0x1d2   : > { %4480 = vmatprep.subr.bf16.mxu0 %v6136_v35  ;;  %4252 = vmatprep.mubr.bf16.mxu1 %v6419_v41  ;;  %v6194_v35 = vld [vmem:[%s6625_s25 + $0xb20] ss:$24 sps:$4 sm:$0xff]  }
 0x1d3   : > { %4510 = vmatprep.mubr.bf16.mxu0 %v6419_v41  ;;  %v6208_v41 = vld [vmem:[%s6625_s25 + $0xb84] ss:$24 sps:$4 sm:$0xff]  }
 0x1d4   : > { %4223 = vmatpush1.bf16.msra.mxu1 %v6131_v37  ;;  %v6202_v37 = vld [vmem:[%s6625_s25 + $0xb54] ss:$24 sps:$4 sm:$0xff]  }
 0x1d5   : > { %4481 = vmatpush1.bf16.msra.mxu0 %v6134_v38  ;;  %4224 = vmatprep.subr.bf16.mxu1 %v6139_v39  ;;  %v6197_v38 = vld [vmem:[%s6625_s25 + $0xb48] ss:$24 sps:$4 sm:$0xff]  }
 0x1d6   : > { %4482 = vmatprep.subr.bf16.mxu0 %v6142_v40  ;;  %v6200_v39 = vld [vmem:[%s6625_s25 + $0xb50] ss:$24 sps:$4 sm:$0xff]   ;;  %v6205_v40 = vld [vmem:[%s6625_s25 + $0xb7c] ss:$24 sps:$4 sm:$0xff]  }
 0x1d8   : > { %4225 = vmatpush1.bf16.msra.mxu1 %v6137_v42  ;;  %v6203_v42 = vld [vmem:[%s6625_s25 + $0xb78] ss:$24 sps:$4 sm:$0xff]  }
 0x1d9   : > { %4483 = vmatpush1.bf16.msra.mxu0 %v6140_v43  ;;  %4226 = vmatprep.subr.bf16.mxu1 %v6145_v44  ;;  %v6206_v43 = vld [vmem:[%s6625_s25 + $0xb80] ss:$24 sps:$4 sm:$0xff]   ;;  %v6211_v44 = vld [vmem:[%s6625_s25 + $0xbac] ss:$24 sps:$4 sm:$0xff]  }
 0x1da   : > { %4484 = vmatprep.subr.bf16.mxu0 %v6148_v45  ;;  %v6214_v45 = vld [vmem:[%s6625_s25 + $0xbb4] ss:$24 sps:$4 sm:$0xff]  }
 0x1dc   : > { %4227 = vmatpush1.bf16.msra.mxu1 %v6143_v46  ;;  %v6209_v46 = vld [vmem:[%s6625_s25 + $0xba8] ss:$24 sps:$4 sm:$0xff]  }
 0x1dd   : > { %4485 = vmatpush1.bf16.msra.mxu0 %v6146_v47  ;;  %4228 = vmatprep.subr.bf16.mxu1 %v6151_v48  ;;  %v6212_v47 = vld [vmem:[%s6625_s25 + $0xbb0] ss:$24 sps:$4 sm:$0xff]   ;;  %v6217_v48 = vld [vmem:[%s6625_s25 + $0xbdc] ss:$24 sps:$4 sm:$0xff]  }
 0x1de   : > { %4486 = vmatprep.subr.bf16.mxu0 %v6154_v49  ;;  %v6220_v49 = vld [vmem:[%s6625_s25 + $0xbe4] ss:$24 sps:$4 sm:$0xff]  }
 0x1e0   : > { %4229 = vmatpush1.bf16.msra.mxu1 %v6149_v50  ;;  %v6215_v50 = vld [vmem:[%s6625_s25 + $0xbd8] ss:$24 sps:$4 sm:$0xff]  }
 0x1e1   : > { %4487 = vmatpush1.bf16.msra.mxu0 %v6152_v51  ;;  %4230 = vmatprep.subr.bf16.mxu1 %v6157_v52  ;;  %v6218_v51 = vld [vmem:[%s6625_s25 + $0xbe0] ss:$24 sps:$4 sm:$0xff]   ;;  %v6223_v52 = vld [vmem:[%s6625_s25 + $0xc0c] ss:$24 sps:$4 sm:$0xff]  }
 0x1e2   : > { %4488 = vmatprep.subr.bf16.mxu0 %v6160_v53  ;;  %v3953_v58 = vpop.f32.mrb[0].mxu1  ;;  %v6226_v53 = vld [vmem:[%s6625_s25 + $0xc14] ss:$24 sps:$4 sm:$0xff]  }
 0x1e3   : > { %v4082_v60 = vpop.f32.mrb[0].mxu0  ;;  %v3955_v62 = vpop.f32.mrb[1].mxu1 }
 0x1e4   : > { %v5412_v61 = vadd.f32 %v4082_v60, %v3953_v58  ;;  %v4084_v0 = vpop.f32.mrb[1].mxu0  ;;  %v3957_v3 = vpop.f32.mrb[2].mxu1  ;;  %4231 = vmatpush1.bf16.msra.mxu1 %v6155_v54  ;;  %v6221_v54 = vld [vmem:[%s6625_s25 + $0xc08] ss:$24 sps:$4 sm:$0xff]  }
 0x1e5   : > { %v5413_v2 = vadd.f32 %v4084_v0, %v3955_v62  ;;  %v4086_v5 = vpop.f32.mrb[2].mxu0  ;;  %4489 = vmatpush1.bf16.msra.mxu0 %v6158_v55  ;;  %v3959_v10 = vpop.f32.mrb[3].mxu1  ;;  %4232 = vmatprep.subr.bf16.mxu1 %v6163_v56  ;;  %v6224_v55 = vld [vmem:[%s6625_s25 + $0xc10] ss:$24 sps:$4 sm:$0xff]   ;;  %v6229_v56 = vld [vmem:[%s6625_s25 + $0xc3c] ss:$24 sps:$4 sm:$0xff]  }
 0x1e6   : > { %v4607_v8 = vadd.f32 %v5412_v61, %v293_v59  ;;  %v5414_v9 = vadd.f32 %v4086_v5, %v3957_v3  ;;  %v4088_v11 = vpop.f32.mrb[3].mxu0  ;;  %4490 = vmatprep.subr.bf16.mxu0 %v6166_v57  ;;  %v6232_v57 = vld [vmem:[%s6625_s25 + $0xc44] ss:$24 sps:$4 sm:$0xff]   ;;  %v6420_v58 = vld [vmem:[%s6623_s20 + $0x18] ss:$48 sps:$4 sm:$0xff]  }
 0x1e7   : > { %v4608_v14 = vadd.f32 %v5413_v2, %v294_v63  ;;  %v5415_v15 = vadd.f32 %v4088_v11, %v3959_v10  ;;  %v6227_v59 = vld [vmem:[%s6625_s25 + $0xc38] ss:$24 sps:$4 sm:$0xff]   ;;  %v6235_v61 = vld [vmem:[%s6625_s25 + $0xc6c] ss:$24 sps:$4 sm:$0xff]   ;;  %v6233_v0 = vld [vmem:[%s6625_s25 + $0xc68] ss:$24 sps:$4 sm:$0xff]  }
 0x1e8   : > { %4619 = vst [vmem:[#allocation2] sm:$0xff] %v4607_v8  ;;  %v4613_v16 = vadd.f32 %v5414_v9, %v299_v4  ;;  %4233 = vmatpush1.bf16.msra.mxu1 %v6161_v1  ;;  %v6230_v60 = vld [vmem:[%s6625_s25 + $0xc40] ss:$24 sps:$4 sm:$0xff]   ;;  %v6238_v62 = vld [vmem:[%s6625_s25 + $0xc74] ss:$24 sps:$4 sm:$0xff]  }
 0x1e9   : > { %4620 = vst [vmem:[#allocation2 + $0x8] sm:$0xff] %v4608_v14  ;;  %v4614_v17 = vadd.f32 %v5415_v15, %v300_v6  ;;  %4491 = vmatpush1.bf16.msra.mxu0 %v6164_v7  ;;  %4234 = vmatprep.subr.bf16.mxu1 %v6169_v12  ;;  %v6421_v63 = vld [vmem:[%s6623_s20 + $0x24] ss:$48 sps:$4 sm:$0xff]   ;;  %v6236_v1 = vld [vmem:[%s6625_s25 + $0xc70] ss:$24 sps:$4 sm:$0xff]  }
 0x1ea   : > { %4625 = vst [vmem:[#allocation2 + $0x30] sm:$0xff] %v4613_v16  ;;  %4492 = vmatprep.subr.bf16.mxu0 %v6172_v13  ;;  %v6241_v2 = vld [vmem:[%s6625_s25 + $0xc9c] ss:$24 sps:$4 sm:$0xff]   ;;  %v6239_v4 = vld [vmem:[%s6625_s25 + $0xc98] ss:$24 sps:$4 sm:$0xff]  }
 0x1eb   : > { %4626 = vst [vmem:[#allocation2 + $0x38] sm:$0xff] %v4614_v17  ;;  %v6244_v3 = vld [vmem:[%s6625_s25 + $0xca4] ss:$24 sps:$4 sm:$0xff]   ;;  %v6242_v5 = vld [vmem:[%s6625_s25 + $0xca0] ss:$24 sps:$4 sm:$0xff]  }
 0x1ec   : > { %4235 = vmatpush1.bf16.msra.mxu1 %v6167_v18  ;;  %v6247_v6 = vld [vmem:[%s6625_s25 + $0xccc] ss:$24 sps:$4 sm:$0xff]   ;;  %v6245_v8 = vld [vmem:[%s6625_s25 + $0xcc8] ss:$24 sps:$4 sm:$0xff]   ;;  %v6253_v10 = vld [vmem:[%s6625_s25 + $0xcfc] ss:$24 sps:$4 sm:$0xff]  }
 0x1ed   : > { %4493 = vmatpush1.bf16.msra.mxu0 %v6170_v19  ;;  %4236 = vmatprep.subr.bf16.mxu1 %v6175_v20  ;;  %v6250_v7 = vld [vmem:[%s6625_s25 + $0xcd4] ss:$24 sps:$4 sm:$0xff]   ;;  %v6248_v9 = vld [vmem:[%s6625_s25 + $0xcd0] ss:$24 sps:$4 sm:$0xff]   ;;  %v6256_v11 = vld [vmem:[%s6625_s25 + $0xd04] ss:$24 sps:$4 sm:$0xff]  }
 0x1ee   : > { %4494 = vmatprep.subr.bf16.mxu0 %v6178_v21  ;;  %v6251_v12 = vld [vmem:[%s6625_s25 + $0xcf8] ss:$24 sps:$4 sm:$0xff]   ;;  %v6259_v14 = vld [vmem:[%s6625_s25 + $0xd2c] ss:$24 sps:$4 sm:$0xff]   ;;  %v6257_v16 = vld [vmem:[%s6625_s25 + $0xd28] ss:$24 sps:$4 sm:$0xff]  }
 0x1ef   : > { %v6254_v13 = vld [vmem:[%s6625_s25 + $0xd00] ss:$24 sps:$4 sm:$0xff]   ;;  %v6262_v15 = vld [vmem:[%s6625_s25 + $0xd34] ss:$24 sps:$4 sm:$0xff]   ;;  %v6260_v17 = vld [vmem:[%s6625_s25 + $0xd30] ss:$24 sps:$4 sm:$0xff]  }
 0x1f0   : > { %4237 = vmatpush1.bf16.msra.mxu1 %v6173_v22  ;;  %v6265_v18 = vld [vmem:[%s6625_s25 + $0xd5c] ss:$24 sps:$4 sm:$0xff]   ;;  %v6263_v20 = vld [vmem:[%s6625_s25 + $0xd58] ss:$24 sps:$4 sm:$0xff]   ;;  %v6271_v22 = vld [vmem:[%s6625_s25 + $0xd8c] ss:$24 sps:$4 sm:$0xff]  }
 0x1f1   : > { %4495 = vmatpush1.bf16.msra.mxu0 %v6176_v23  ;;  %4238 = vmatprep.subr.bf16.mxu1 %v6181_v24  ;;  %v6268_v19 = vld [vmem:[%s6625_s25 + $0xd64] ss:$24 sps:$4 sm:$0xff]   ;;  %v6266_v21 = vld [vmem:[%s6625_s25 + $0xd60] ss:$24 sps:$4 sm:$0xff]   ;;  %v6274_v23 = vld [vmem:[%s6625_s25 + $0xd94] ss:$24 sps:$4 sm:$0xff]  }
 0x1f2   : > { %4496 = vmatprep.subr.bf16.mxu0 %v6184_v25  ;;  %v6269_v24 = vld [vmem:[%s6625_s25 + $0xd88] ss:$24 sps:$4 sm:$0xff]  }
 0x1f3   : > { %v6272_v25 = vld [vmem:[%s6625_s25 + $0xd90] ss:$24 sps:$4 sm:$0xff]  }
 0x1f4   : > { %4239 = vmatpush1.bf16.msra.mxu1 %v6179_v26  ;;  %v6277_v26 = vld [vmem:[%s6625_s25 + $0xdbc] ss:$24 sps:$4 sm:$0xff]  }
 0x1f5   : > { %4497 = vmatpush1.bf16.msra.mxu0 %v6182_v27  ;;  %4240 = vmatprep.subr.bf16.mxu1 %v6187_v28  ;;  %v6280_v27 = vld [vmem:[%s6625_s25 + $0xdc4] ss:$24 sps:$4 sm:$0xff]   ;;  %v6275_v28 = vld [vmem:[%s6625_s25 + $0xdb8] ss:$24 sps:$4 sm:$0xff]  }
 0x1f6   : > { %4498 = vmatprep.subr.bf16.mxu0 %v6190_v29  ;;  %v6278_v29 = vld [vmem:[%s6625_s25 + $0xdc0] ss:$24 sps:$4 sm:$0xff]  }
 0x1f8   : > { %4241 = vmatpush1.bf16.msra.mxu1 %v6185_v30  ;;  %v6283_v30 = vld [vmem:[%s6625_s25 + $0xdec] ss:$24 sps:$4 sm:$0xff]  }
 0x1f9   : > { %4499 = vmatpush1.bf16.msra.mxu0 %v6188_v31  ;;  %4242 = vmatprep.subr.bf16.mxu1 %v6193_v32  ;;  %v6286_v31 = vld [vmem:[%s6625_s25 + $0xdf4] ss:$24 sps:$4 sm:$0xff]   ;;  %v6281_v32 = vld [vmem:[%s6625_s25 + $0xde8] ss:$24 sps:$4 sm:$0xff]  }
 0x1fa   : > { %4500 = vmatprep.subr.bf16.mxu0 %v6196_v33  ;;  %v6284_v33 = vld [vmem:[%s6625_s25 + $0xdf0] ss:$24 sps:$4 sm:$0xff]  }
 0x1fc   : > { %4243 = vmatpush1.bf16.msra.mxu1 %v6191_v34  ;;  %v6289_v34 = vld [vmem:[%s6625_s25 + $0xe1c] ss:$24 sps:$4 sm:$0xff]  }
 0x1fd   : > { %4501 = vmatpush1.bf16.msra.mxu0 %v6194_v35  ;;  %4244 = vmatprep.subr.bf16.mxu1 %v6199_v36  ;;  %v6292_v35 = vld [vmem:[%s6625_s25 + $0xe24] ss:$24 sps:$4 sm:$0xff]   ;;  %v6287_v36 = vld [vmem:[%s6625_s25 + $0xe18] ss:$24 sps:$4 sm:$0xff]  }
 0x1fe   : > { %4502 = vmatprep.subr.bf16.mxu0 %v6202_v37  ;;  %v6290_v37 = vld [vmem:[%s6625_s25 + $0xe20] ss:$24 sps:$4 sm:$0xff]  }
 0x200   : > { %4245 = vmatpush1.bf16.msra.mxu1 %v6197_v38  ;;  %v6295_v38 = vld [vmem:[%s6625_s25 + $0xe4c] ss:$24 sps:$4 sm:$0xff]  }
 0x201   : > { %4503 = vmatpush1.bf16.msra.mxu0 %v6200_v39  ;;  %4246 = vmatprep.subr.bf16.mxu1 %v6205_v40  ;;  %v6298_v39 = vld [vmem:[%s6625_s25 + $0xe54] ss:$24 sps:$4 sm:$0xff]   ;;  %v6293_v40 = vld [vmem:[%s6625_s25 + $0xe48] ss:$24 sps:$4 sm:$0xff]  }
 0x202   : > { %4504 = vmatprep.subr.bf16.mxu0 %v6208_v41  ;;  %v6296_v41 = vld [vmem:[%s6625_s25 + $0xe50] ss:$24 sps:$4 sm:$0xff]  }
 0x204   : > { %4247 = vmatpush1.bf16.msra.mxu1 %v6203_v42  ;;  %v6301_v42 = vld [vmem:[%s6625_s25 + $0xe7c] ss:$24 sps:$4 sm:$0xff]  }
 0x205   : > { %4505 = vmatpush1.bf16.msra.mxu0 %v6206_v43  ;;  %4248 = vmatprep.subr.bf16.mxu1 %v6211_v44  ;;  %v6304_v43 = vld [vmem:[%s6625_s25 + $0xe84] ss:$24 sps:$4 sm:$0xff]   ;;  %v6299_v44 = vld [vmem:[%s6625_s25 + $0xe78] ss:$24 sps:$4 sm:$0xff]  }
 0x206   : > { %4506 = vmatprep.subr.bf16.mxu0 %v6214_v45  ;;  %v6302_v45 = vld [vmem:[%s6625_s25 + $0xe80] ss:$24 sps:$4 sm:$0xff]  }
 0x208   : > { %4249 = vmatpush1.bf16.msra.mxu1 %v6209_v46  ;;  %v6307_v46 = vld [vmem:[%s6625_s25 + $0xeac] ss:$24 sps:$4 sm:$0xff]  }
 0x209   : > { %4507 = vmatpush1.bf16.msra.mxu0 %v6212_v47  ;;  %4250 = vmatprep.subr.bf16.mxu1 %v6217_v48  ;;  %v6310_v47 = vld [vmem:[%s6625_s25 + $0xeb4] ss:$24 sps:$4 sm:$0xff]   ;;  %v6305_v48 = vld [vmem:[%s6625_s25 + $0xea8] ss:$24 sps:$4 sm:$0xff]  }
 0x20a   : > { %4508 = vmatprep.subr.bf16.mxu0 %v6220_v49  ;;  %v6308_v49 = vld [vmem:[%s6625_s25 + $0xeb0] ss:$24 sps:$4 sm:$0xff]  }
 0x20c   : > { %4251 = vmatpush1.bf16.msra.mxu1 %v6215_v50  ;;  %v6313_v50 = vld [vmem:[%s6625_s25 + $0xedc] ss:$24 sps:$4 sm:$0xff]  }
 0x20d   : > { %4509 = vmatpush1.bf16.msra.mxu0 %v6218_v51  ;;  %4263 = vmatprep.subr.bf16.mxu1 %v6223_v52  ;;  %v6316_v51 = vld [vmem:[%s6625_s25 + $0xee4] ss:$24 sps:$4 sm:$0xff]   ;;  %v6311_v52 = vld [vmem:[%s6625_s25 + $0xed8] ss:$24 sps:$4 sm:$0xff]  }
 0x20e   : > { %4521 = vmatprep.subr.bf16.mxu0 %v6226_v53  ;;  %v6314_v53 = vld [vmem:[%s6625_s25 + $0xee0] ss:$24 sps:$4 sm:$0xff]  }
 0x20f   : > { %4253 = vmatmul.mubr.bf16.vlgmr.msra.gmra.mrb[4].mxu1 %v6420_v58 }
 0x210   : > { %4511 = vmatmul.mubr.bf16.vlgmr.msra.gmra.mrb[4].mxu0 %v6420_v58  ;;  %4264 = vmatpush1.bf16.msra.mxu1 %v6221_v54  ;;  %v6319_v54 = vld [vmem:[%s6625_s25 + $0xf0c] ss:$24 sps:$4 sm:$0xff]   ;;  %v6325_v58 = vld [vmem:[%s6625_s25 + $0xf3c] ss:$24 sps:$4 sm:$0xff]  }
 0x211   : > { %4522 = vmatpush1.bf16.msra.mxu0 %v6224_v55  ;;  %4265 = vmatprep.subr.bf16.mxu1 %v6229_v56  ;;  %v6322_v55 = vld [vmem:[%s6625_s25 + $0xf14] ss:$24 sps:$4 sm:$0xff]   ;;  %v6317_v56 = vld [vmem:[%s6625_s25 + $0xf08] ss:$24 sps:$4 sm:$0xff]  }
 0x212   : > { %4523 = vmatprep.subr.bf16.mxu0 %v6232_v57  ;;  %4295 = vmatprep.mubr.bf16.mxu1 %v6421_v63  ;;  %v6320_v57 = vld [vmem:[%s6625_s25 + $0xf10] ss:$24 sps:$4 sm:$0xff]  }
 0x213   : > { %4553 = vmatprep.mubr.bf16.mxu0 %v6421_v63  ;;  %v6331_v63 = vld [vmem:[%s6625_s25 + $0xf6c] ss:$24 sps:$4 sm:$0xff]  }
 0x214   : > { %4266 = vmatpush1.bf16.msra.mxu1 %v6227_v59  ;;  %v6328_v59 = vld [vmem:[%s6625_s25 + $0xf44] ss:$24 sps:$4 sm:$0xff]  }
 0x215   : > { %4524 = vmatpush1.bf16.msra.mxu0 %v6230_v60  ;;  %4267 = vmatprep.subr.bf16.mxu1 %v6235_v61  ;;  %v6422_v60 = vld [vmem:[%s6623_s20 + $0x20] ss:$48 sps:$4 sm:$0xff]  }
 0x216   : > { %4525 = vmatprep.subr.bf16.mxu0 %v6238_v62  ;;  %v6323_v61 = vld [vmem:[%s6625_s25 + $0xf38] ss:$24 sps:$4 sm:$0xff]  }
 0x217   : > { %v6326_v62 = vld [vmem:[%s6625_s25 + $0xf40] ss:$24 sps:$4 sm:$0xff]  }
 0x218   : > { %4268 = vmatpush1.bf16.msra.mxu1 %v6233_v0  ;;  %v6334_v0 = vld [vmem:[%s6625_s25 + $0xf74] ss:$24 sps:$4 sm:$0xff]  }
 0x219   : > { %4526 = vmatpush1.bf16.msra.mxu0 %v6236_v1  ;;  %4269 = vmatprep.subr.bf16.mxu1 %v6241_v2  ;;  %v6423_v1 = vld [vmem:[%s6623_s20 + $0x2c] ss:$48 sps:$4 sm:$0xff]   ;;  %v6329_v2 = vld [vmem:[%s6625_s25 + $0xf68] ss:$24 sps:$4 sm:$0xff]  }
 0x21a   : > { %4527 = vmatprep.subr.bf16.mxu0 %v6244_v3  ;;  %v6332_v3 = vld [vmem:[%s6625_s25 + $0xf70] ss:$24 sps:$4 sm:$0xff]  }
 0x21c   : > { %4270 = vmatpush1.bf16.msra.mxu1 %v6239_v4  ;;  %v6337_v4 = vld [vmem:[%s6625_s25 + $0xf9c] ss:$24 sps:$4 sm:$0xff]  }
 0x21d   : > { %4528 = vmatpush1.bf16.msra.mxu0 %v6242_v5  ;;  %4271 = vmatprep.subr.bf16.mxu1 %v6247_v6  ;;  %v6340_v5 = vld [vmem:[%s6625_s25 + $0xfa4] ss:$24 sps:$4 sm:$0xff]   ;;  %v6335_v6 = vld [vmem:[%s6625_s25 + $0xf98] ss:$24 sps:$4 sm:$0xff]  }
 0x21e   : > { %4529 = vmatprep.subr.bf16.mxu0 %v6250_v7  ;;  %v6338_v7 = vld [vmem:[%s6625_s25 + $0xfa0] ss:$24 sps:$4 sm:$0xff]  }
 0x220   : > { %4272 = vmatpush1.bf16.msra.mxu1 %v6245_v8  ;;  %v6343_v8 = vld [vmem:[%s6625_s25 + $0xfcc] ss:$24 sps:$4 sm:$0xff]  }
 0x221   : > { %4530 = vmatpush1.bf16.msra.mxu0 %v6248_v9  ;;  %4273 = vmatprep.subr.bf16.mxu1 %v6253_v10  ;;  %v6346_v9 = vld [vmem:[%s6625_s25 + $0xfd4] ss:$24 sps:$4 sm:$0xff]   ;;  %v6341_v10 = vld [vmem:[%s6625_s25 + $0xfc8] ss:$24 sps:$4 sm:$0xff]  }
 0x222   : > { %4531 = vmatprep.subr.bf16.mxu0 %v6256_v11  ;;  %v6344_v11 = vld [vmem:[%s6625_s25 + $0xfd0] ss:$24 sps:$4 sm:$0xff]  }
 0x224   : > { %4274 = vmatpush1.bf16.msra.mxu1 %v6251_v12  ;;  %v6349_v12 = vld [vmem:[%s6625_s25 + $0xffc] ss:$24 sps:$4 sm:$0xff]  }
 0x225   : > { %4532 = vmatpush1.bf16.msra.mxu0 %v6254_v13  ;;  %4275 = vmatprep.subr.bf16.mxu1 %v6259_v14  ;;  %v6352_v13 = vld [vmem:[%s6625_s25 + $0x1004] ss:$24 sps:$4 sm:$0xff]   ;;  %v6347_v14 = vld [vmem:[%s6625_s25 + $0xff8] ss:$24 sps:$4 sm:$0xff]  }
 0x226   : > { %4533 = vmatprep.subr.bf16.mxu0 %v6262_v15  ;;  %v6350_v15 = vld [vmem:[%s6625_s25 + $0x1000] ss:$24 sps:$4 sm:$0xff]  }
 0x228   : > { %4276 = vmatpush1.bf16.msra.mxu1 %v6257_v16  ;;  %v6355_v16 = vld [vmem:[%s6625_s25 + $0x102c] ss:$24 sps:$4 sm:$0xff]  }
 0x229   : > { %4534 = vmatpush1.bf16.msra.mxu0 %v6260_v17  ;;  %4277 = vmatprep.subr.bf16.mxu1 %v6265_v18  ;;  %v6358_v17 = vld [vmem:[%s6625_s25 + $0x1034] ss:$24 sps:$4 sm:$0xff]   ;;  %v6353_v18 = vld [vmem:[%s6625_s25 + $0x1028] ss:$24 sps:$4 sm:$0xff]  }
 0x22a   : > { %4535 = vmatprep.subr.bf16.mxu0 %v6268_v19  ;;  %v6356_v19 = vld [vmem:[%s6625_s25 + $0x1030] ss:$24 sps:$4 sm:$0xff]  }
 0x22c   : > { %4278 = vmatpush1.bf16.msra.mxu1 %v6263_v20  ;;  %v6361_v20 = vld [vmem:[%s6625_s25 + $0x105c] ss:$24 sps:$4 sm:$0xff]  }
 0x22d   : > { %4536 = vmatpush1.bf16.msra.mxu0 %v6266_v21  ;;  %4279 = vmatprep.subr.bf16.mxu1 %v6271_v22  ;;  %v6364_v21 = vld [vmem:[%s6625_s25 + $0x1064] ss:$24 sps:$4 sm:$0xff]   ;;  %v6359_v22 = vld [vmem:[%s6625_s25 + $0x1058] ss:$24 sps:$4 sm:$0xff]  }
 0x22e   : > { %4537 = vmatprep.subr.bf16.mxu0 %v6274_v23  ;;  %v6362_v23 = vld [vmem:[%s6625_s25 + $0x1060] ss:$24 sps:$4 sm:$0xff]  }
 0x230   : > { %4280 = vmatpush1.bf16.msra.mxu1 %v6269_v24  ;;  %v6367_v24 = vld [vmem:[%s6625_s25 + $0x108c] ss:$24 sps:$4 sm:$0xff]  }
 0x231   : > { %4538 = vmatpush1.bf16.msra.mxu0 %v6272_v25  ;;  %4281 = vmatprep.subr.bf16.mxu1 %v6277_v26  ;;  %v6370_v25 = vld [vmem:[%s6625_s25 + $0x1094] ss:$24 sps:$4 sm:$0xff]   ;;  %v6365_v26 = vld [vmem:[%s6625_s25 + $0x1088] ss:$24 sps:$4 sm:$0xff]  }
 0x232   : > { %4539 = vmatprep.subr.bf16.mxu0 %v6280_v27  ;;  %v6368_v27 = vld [vmem:[%s6625_s25 + $0x1090] ss:$24 sps:$4 sm:$0xff]  }
 0x234   : > { %4282 = vmatpush1.bf16.msra.mxu1 %v6275_v28  ;;  %v6373_v28 = vld [vmem:[%s6625_s25 + $0x10bc] ss:$24 sps:$4 sm:$0xff]  }
 0x235   : > { %4540 = vmatpush1.bf16.msra.mxu0 %v6278_v29  ;;  %4283 = vmatprep.subr.bf16.mxu1 %v6283_v30  ;;  %v6376_v29 = vld [vmem:[%s6625_s25 + $0x10c4] ss:$24 sps:$4 sm:$0xff]   ;;  %v6371_v30 = vld [vmem:[%s6625_s25 + $0x10b8] ss:$24 sps:$4 sm:$0xff]  }
 0x236   : > { %4541 = vmatprep.subr.bf16.mxu0 %v6286_v31  ;;  %v6374_v31 = vld [vmem:[%s6625_s25 + $0x10c0] ss:$24 sps:$4 sm:$0xff]  }
 0x238   : > { %4284 = vmatpush1.bf16.msra.mxu1 %v6281_v32  ;;  %v6379_v32 = vld [vmem:[%s6625_s25 + $0x10ec] ss:$24 sps:$4 sm:$0xff]  }
 0x239   : > { %4542 = vmatpush1.bf16.msra.mxu0 %v6284_v33  ;;  %4285 = vmatprep.subr.bf16.mxu1 %v6289_v34  ;;  %v6382_v33 = vld [vmem:[%s6625_s25 + $0x10f4] ss:$24 sps:$4 sm:$0xff]   ;;  %v6377_v34 = vld [vmem:[%s6625_s25 + $0x10e8] ss:$24 sps:$4 sm:$0xff]  }
 0x23a   : > { %4543 = vmatprep.subr.bf16.mxu0 %v6292_v35  ;;  %v6380_v35 = vld [vmem:[%s6625_s25 + $0x10f0] ss:$24 sps:$4 sm:$0xff]  }
 0x23c   : > { %4286 = vmatpush1.bf16.msra.mxu1 %v6287_v36  ;;  %v6385_v36 = vld [vmem:[%s6625_s25 + $0x111c] ss:$24 sps:$4 sm:$0xff]  }
 0x23d   : > { %4544 = vmatpush1.bf16.msra.mxu0 %v6290_v37  ;;  %4287 = vmatprep.subr.bf16.mxu1 %v6295_v38  ;;  %v6388_v37 = vld [vmem:[%s6625_s25 + $0x1124] ss:$24 sps:$4 sm:$0xff]   ;;  %v6383_v38 = vld [vmem:[%s6625_s25 + $0x1118] ss:$24 sps:$4 sm:$0xff]  }
 0x23e   : > { %4545 = vmatprep.subr.bf16.mxu0 %v6298_v39  ;;  %v6386_v39 = vld [vmem:[%s6625_s25 + $0x1120] ss:$24 sps:$4 sm:$0xff]  }
 0x240   : > { %4288 = vmatpush1.bf16.msra.mxu1 %v6293_v40  ;;  %v6391_v40 = vld [vmem:[%s6625_s25 + $0x114c] ss:$24 sps:$4 sm:$0xff]  }
 0x241   : > { %4546 = vmatpush1.bf16.msra.mxu0 %v6296_v41  ;;  %4289 = vmatprep.subr.bf16.mxu1 %v6301_v42  ;;  %v6394_v41 = vld [vmem:[%s6625_s25 + $0x1154] ss:$24 sps:$4 sm:$0xff]   ;;  %v6389_v42 = vld [vmem:[%s6625_s25 + $0x1148] ss:$24 sps:$4 sm:$0xff]  }
 0x242   : > { %4547 = vmatprep.subr.bf16.mxu0 %v6304_v43  ;;  %v6392_v43 = vld [vmem:[%s6625_s25 + $0x1150] ss:$24 sps:$4 sm:$0xff]  }
 0x244   : > { %4290 = vmatpush1.bf16.msra.mxu1 %v6299_v44  ;;  %v6397_v44 = vld [vmem:[%s6625_s25 + $0x117c] ss:$24 sps:$4 sm:$0xff]  }
 0x245   : > { %4548 = vmatpush1.bf16.msra.mxu0 %v6302_v45  ;;  %4291 = vmatprep.subr.bf16.mxu1 %v6307_v46  ;;  %v6400_v45 = vld [vmem:[%s6625_s25 + $0x1184] ss:$24 sps:$4 sm:$0xff]   ;;  %v6395_v46 = vld [vmem:[%s6625_s25 + $0x1178] ss:$24 sps:$4 sm:$0xff]  }
 0x246   : > { %4549 = vmatprep.subr.bf16.mxu0 %v6310_v47  ;;  %v6398_v47 = vld [vmem:[%s6625_s25 + $0x1180] ss:$24 sps:$4 sm:$0xff]  }
 0x248   : > { %4292 = vmatpush1.bf16.msra.mxu1 %v6305_v48  ;;  %v6403_v48 = vld [vmem:[%s6625_s25 + $0x11ac] ss:$24 sps:$4 sm:$0xff]  }
 0x249   : > { %4550 = vmatpush1.bf16.msra.mxu0 %v6308_v49  ;;  %4293 = vmatprep.subr.bf16.mxu1 %v6313_v50  ;;  %v6406_v49 = vld [vmem:[%s6625_s25 + $0x11b4] ss:$24 sps:$4 sm:$0xff]   ;;  %v6401_v50 = vld [vmem:[%s6625_s25 + $0x11a8] ss:$24 sps:$4 sm:$0xff]  }
 0x24a   : > { %4551 = vmatprep.subr.bf16.mxu0 %v6316_v51  ;;  %v6404_v51 = vld [vmem:[%s6625_s25 + $0x11b0] ss:$24 sps:$4 sm:$0xff]  }
 0x24c   : > { %4294 = vmatpush1.bf16.msra.mxu1 %v6311_v52  ;;  %v6409_v52 = vld [vmem:[%s6625_s25 + $0x11dc] ss:$24 sps:$4 sm:$0xff]  }
 0x24d   : > { %4552 = vmatpush1.bf16.msra.mxu0 %v6314_v53  ;;  %4306 = vmatprep.subr.bf16.mxu1 %v6319_v54  ;;  %v6412_v53 = vld [vmem:[%s6625_s25 + $0x11e4] ss:$24 sps:$4 sm:$0xff]   ;;  %v6407_v54 = vld [vmem:[%s6625_s25 + $0x11d8] ss:$24 sps:$4 sm:$0xff]  }
 0x24e   : > { %4564 = vmatprep.subr.bf16.mxu0 %v6322_v55  ;;  %v6410_v55 = vld [vmem:[%s6625_s25 + $0x11e0] ss:$24 sps:$4 sm:$0xff]  }
 0x24f   : > { %4296 = vmatmul.mubr.bf16.vlgmr.msra.gmra.mrb[4].mxu1 %v6422_v60 }
 0x250   : > { %4554 = vmatmul.mubr.bf16.vlgmr.msra.gmra.mrb[4].mxu0 %v6422_v60  ;;  %4307 = vmatpush1.bf16.msra.mxu1 %v6317_v56  ;;  %v6424_v56 = vld [vmem:[%s6623_s20 + $0x28] ss:$48 sps:$4 sm:$0xff]  }
 0x251   : > { %4565 = vmatpush1.bf16.msra.mxu0 %v6320_v57  ;;  %4308 = vmatprep.subr.bf16.mxu1 %v6325_v58  ;;  %v295_v57 = vld [vmem:[#allocation2 + $0x10] sm:$0xff]  ;;  %v297_v58 = vld [vmem:[#allocation2 + $0x20] sm:$0xff]  ;;  %v298_v60 = vld [vmem:[#allocation2 + $0x28] sm:$0xff] }
 0x252   : > { %4566 = vmatprep.subr.bf16.mxu0 %v6328_v59  ;;  %4338 = vmatprep.mubr.bf16.mxu1 %v6423_v1  ;;  %v296_v59 = vld [vmem:[#allocation2 + $0x18] sm:$0xff] }
 0x253   : > { %4596 = vmatprep.mubr.bf16.mxu0 %v6423_v1 }
 0x254   : > { %4309 = vmatpush1.bf16.msra.mxu1 %v6323_v61 }
 0x255   : > { %4567 = vmatpush1.bf16.msra.mxu0 %v6326_v62  ;;  %4310 = vmatprep.subr.bf16.mxu1 %v6331_v63  ;;  %v301_v63 = vld [vmem:[#allocation2 + $0x40] sm:$0xff] }
 0x256   : > { %4568 = vmatprep.subr.bf16.mxu0 %v6334_v0  ;;  %v303_v0 = vld [vmem:[#allocation2 + $0x50] sm:$0xff] }
 0x258   : > { %4311 = vmatpush1.bf16.msra.mxu1 %v6329_v2 }
 0x259   : > { %4569 = vmatpush1.bf16.msra.mxu0 %v6332_v3  ;;  %4312 = vmatprep.subr.bf16.mxu1 %v6337_v4 }
 0x25a   : > { %4570 = vmatprep.subr.bf16.mxu0 %v6340_v5  ;;  %v302_v5 = vld [vmem:[#allocation2 + $0x48] sm:$0xff] }
 0x25c   : > { %4313 = vmatpush1.bf16.msra.mxu1 %v6335_v6  ;;  %v304_v6 = vld [vmem:[#allocation2 + $0x58] sm:$0xff] }
 0x25d   : > { %4571 = vmatpush1.bf16.msra.mxu0 %v6338_v7  ;;  %4314 = vmatprep.subr.bf16.mxu1 %v6343_v8 }
 0x25e   : > { %4572 = vmatprep.subr.bf16.mxu0 %v6346_v9 }
 0x260   : > { %4315 = vmatpush1.bf16.msra.mxu1 %v6341_v10 }
 0x261   : > { %4573 = vmatpush1.bf16.msra.mxu0 %v6344_v11  ;;  %4316 = vmatprep.subr.bf16.mxu1 %v6349_v12 }
 0x262   : > { %4574 = vmatprep.subr.bf16.mxu0 %v6352_v13 }
 0x264   : > { %4317 = vmatpush1.bf16.msra.mxu1 %v6347_v14 }
 0x265   : > { %4575 = vmatpush1.bf16.msra.mxu0 %v6350_v15  ;;  %4318 = vmatprep.subr.bf16.mxu1 %v6355_v16 }
 0x266   : > { %4576 = vmatprep.subr.bf16.mxu0 %v6358_v17  ;;  %v4649_v17 = vlaneseq (!%p5406_p7) }
 0x268   : > { %4319 = vmatpush1.bf16.msra.mxu1 %v6353_v18  ;;  %v4650_v18 = vshrl.u32 (!%p5406_p7), %v4649_v17, 7 }
 0x269   : > { %4577 = vmatpush1.bf16.msra.mxu0 %v6356_v19  ;;  %4320 = vmatprep.subr.bf16.mxu1 %v6361_v20  ;;  %v4647_v19 = vld [vmem:[%s7292_s2] sm:$0x3f] (!%p5406_p7) }
 0x26a   : > { %4578 = vmatprep.subr.bf16.mxu0 %v6364_v21  ;;  %v4635_v20 = vld [vmem:[#allocation2] sm:$0xff] (!%p5406_p7)  ;;  %v4651_v21 = vsub.s32 (!%p5406_p7), 0, %v4650_v18 }
 0x26c   : > { %4321 = vmatpush1.bf16.msra.mxu1 %v6359_v22  ;;  %v4636_v22 = vld [vmem:[#allocation2 + $0x8] sm:$0xff] (!%p5406_p7) }
 0x26d   : > { %4579 = vmatpush1.bf16.msra.mxu0 %v6362_v23  ;;  %4322 = vmatprep.subr.bf16.mxu1 %v6367_v24  ;;  %v4655_v23 = vsub.s32 (!%p5406_p7), 1, %v4650_v18  ;;  %v4659_v24 = vsub.s32 (!%p5406_p7), 2, %v4650_v18 }
 0x26e   : > { %4580 = vmatprep.subr.bf16.mxu0 %v6370_v25  ;;  %v4663_v25 = vsub.s32 (!%p5406_p7), 3, %v4650_v18 }
 0x270   : > { %4323 = vmatpush1.bf16.msra.mxu1 %v6365_v26 }
 0x271   : > { %4581 = vmatpush1.bf16.msra.mxu0 %v6368_v27  ;;  %4324 = vmatprep.subr.bf16.mxu1 %v6373_v28 }
 0x272   : > { %4582 = vmatprep.subr.bf16.mxu0 %v6376_v29  ;;  %v4667_v29 = vsub.s32 (!%p5406_p7), 4, %v4650_v18 }
 0x274   : > { %4325 = vmatpush1.bf16.msra.mxu1 %v6371_v30  ;;  %v4671_v30 = vsub.s32 (!%p5406_p7), 5, %v4650_v18 }
 0x275   : > { %4583 = vmatpush1.bf16.msra.mxu0 %v6374_v31  ;;  %4326 = vmatprep.subr.bf16.mxu1 %v6379_v32  ;;  %v4652_v31 = vrot.slane (!%p5406_p7), %v4647_v19, %v4651_v21  ;;  %v4656_v32 = vrot.slane (!%p5406_p7), %v4647_v19, %v4655_v23 }
 0x276   : > { %4584 = vmatprep.subr.bf16.mxu0 %v6382_v33  ;;  %v4660_v33 = vrot.slane (!%p5406_p7), %v4647_v19, %v4659_v24 }
 0x278   : > { %4327 = vmatpush1.bf16.msra.mxu1 %v6377_v34  ;;  %v4664_v34 = vrot.slane (!%p5406_p7), %v4647_v19, %v4663_v25 }
 0x279   : > { %4585 = vmatpush1.bf16.msra.mxu0 %v6380_v35  ;;  %4328 = vmatprep.subr.bf16.mxu1 %v6385_v36  ;;  %v4641_v36 = vld [vmem:[#allocation2 + $0x30] sm:$0xff] (!%p5406_p7) }
 0x27a   : > { %4586 = vmatprep.subr.bf16.mxu0 %v6388_v37  ;;  %v4642_v37 = vld [vmem:[#allocation2 + $0x38] sm:$0xff] (!%p5406_p7) }
 0x27c   : > { %4329 = vmatpush1.bf16.msra.mxu1 %v6383_v38  ;;  %v4668_v38 = vrot.slane (!%p5406_p7), %v4647_v19, %v4667_v29 }
 0x27d   : > { %4587 = vmatpush1.bf16.msra.mxu0 %v6386_v39  ;;  %4330 = vmatprep.subr.bf16.mxu1 %v6391_v40  ;;  %v4672_v39 = vrot.slane (!%p5406_p7), %v4647_v19, %v4671_v30  ;;  %v4679_v40 = vadd.f32 (!%p5406_p7), %v4652_v31, %v4635_v20 }
 0x27e   : > { %4588 = vmatprep.subr.bf16.mxu0 %v6394_v41  ;;  %v4680_v41 = vadd.f32 (!%p5406_p7), %v4656_v32, %v4636_v22 }
 0x280   : > { %4331 = vmatpush1.bf16.msra.mxu1 %v6389_v42 }
 0x281   : > { %4589 = vmatpush1.bf16.msra.mxu0 %v6392_v43  ;;  %4332 = vmatprep.subr.bf16.mxu1 %v6397_v44 }
 0x282   : > { %4590 = vmatprep.subr.bf16.mxu0 %v6400_v45 }
 0x284   : > { %4333 = vmatpush1.bf16.msra.mxu1 %v6395_v46 }
 0x285   : > { %4591 = vmatpush1.bf16.msra.mxu0 %v6398_v47  ;;  %4334 = vmatprep.subr.bf16.mxu1 %v6403_v48  ;;  %v4685_v47 = vadd.f32 (!%p5406_p7), %v4652_v31, %v4641_v36  ;;  %v4686_v48 = vadd.f32 (!%p5406_p7), %v4656_v32, %v4642_v37 }
 0x286   : > { %4592 = vmatprep.subr.bf16.mxu0 %v6406_v49 }
 0x288   : > { %4335 = vmatpush1.bf16.msra.mxu1 %v6401_v50 }
 0x289   : > { %4593 = vmatpush1.bf16.msra.mxu0 %v6404_v51  ;;  %4336 = vmatprep.subr.bf16.mxu1 %v6409_v52  ;;  %v4691_v52 = vmax.f32 (!%p5406_p7), %v4679_v40, 0.0 }
 0x28a   : > { %4594 = vmatprep.subr.bf16.mxu0 %v6412_v53  ;;  %v4692_v53 = vmax.f32 (!%p5406_p7), %v4680_v41, 0.0 }
 0x28b   : > { %4703 = vst [vmem:[%s7293_s3] sm:$0xff] (!%p5406_p7), %v4691_v52 }
 0x28c   : > { %4337 = vmatpush1.bf16.msra.mxu1 %v6407_v54  ;;  %4704 = vst [vmem:[%s7293_s3 + $0x8] sm:$0xff] (!%p5406_p7), %v4692_v53 }
 0x28d   : > { %4595 = vmatpush1.bf16.msra.mxu0 %v6410_v55 }
 0x28f   : > { %4339 = vmatmul.mubr.bf16.vlgmr.msra.gmra.mrb[4].mxu1 %v6424_v56 }
 0x290   : > { %4597 = vmatmul.mubr.bf16.vlgmr.msra.gmra.mrb[4].mxu0 %v6424_v56 }
 0x362   : > { %v4340_v61 = vpop.f32.mrb[4].mxu1 }
 0x363   : > { %v4598_v62 = vpop.f32.mrb[4].mxu0  ;;  %v4609_v1 = vadd.f32 %v4340_v61, %v295_v57  ;;  %v4342_v3 = vpop.f32.mrb[5].mxu1  ;;  %4634 = sbr.rel (%p5406_p7) target bundleno = 886 (0x376), region = 67 }
 0x364   : > { %v4611_v2 = vadd.f32 %v4598_v62, %v297_v58  ;;  %v4600_v4 = vpop.f32.mrb[5].mxu0  ;;  %v4610_v7 = vadd.f32 %v4342_v3, %v296_v59  ;;  %v4344_v9 = vpop.f32.mrb[6].mxu1  ;;  %v4697_v58 = vmax.f32 (!%p5406_p7), %v4685_v47, 0.0  ;;  %v4698_v59 = vmax.f32 (!%p5406_p7), %v4686_v48, 0.0 }
 0x365   : > { %v4612_v8 = vadd.f32 %v4600_v4, %v298_v60  ;;  %v4602_v10 = vpop.f32.mrb[6].mxu0  ;;  %4621 = vst [vmem:[#allocation2 + $0x10] sm:$0xff] %v4609_v1  ;;  %v4615_v11 = vadd.f32 %v4344_v9, %v301_v63  ;;  %v4346_v13 = vpop.f32.mrb[7].mxu1 }
 0x366   : > { %4623 = vst [vmem:[#allocation2 + $0x20] sm:$0xff] %v4611_v2  ;;  %v4617_v12 = vadd.f32 %v4602_v10, %v303_v0  ;;  %v4604_v14 = vpop.f32.mrb[7].mxu0  ;;  %4622 = vst [vmem:[#allocation2 + $0x18] sm:$0xff] %v4610_v7  ;;  %v4616_v15 = vadd.f32 %v4346_v13, %v302_v5 }
 0x367   : > { %4624 = vst [vmem:[#allocation2 + $0x28] sm:$0xff] %v4612_v8  ;;  %v4618_v16 = vadd.f32 %v4604_v14, %v304_v6  ;;  %4627 = vst [vmem:[#allocation2 + $0x40] sm:$0xff] %v4615_v11 }
 0x368   : > { %4629 = vst [vmem:[#allocation2 + $0x50] sm:$0xff] %v4617_v12  ;;  %4628 = vst [vmem:[#allocation2 + $0x48] sm:$0xff] %v4616_v15 }
 0x369   : > { %4630 = vst [vmem:[#allocation2 + $0x58] sm:$0xff] %v4618_v16  ;;  %4709 = vst [vmem:[%s7293_s3 + $0x30] sm:$0xff] (!%p5406_p7), %v4697_v58 }
 0x36a   : > { %4710 = vst [vmem:[%s7293_s3 + $0x38] sm:$0xff] %v4698_v59 }
 0x36c   : > { %v4637_v26 = vld [vmem:[#allocation2 + $0x10] sm:$0xff] }
 0x36d   : > { %v4638_v27 = vld [vmem:[#allocation2 + $0x18] sm:$0xff]  ;;  %v4639_v28 = vld [vmem:[#allocation2 + $0x20] sm:$0xff]  ;;  %v4681_v42 = vadd.f32 %v4660_v33, %v4637_v26 }
 0x36e   : > { %v4640_v35 = vld [vmem:[#allocation2 + $0x28] sm:$0xff]  ;;  %v4682_v43 = vadd.f32 %v4664_v34, %v4638_v27  ;;  %v4643_v44 = vld [vmem:[#allocation2 + $0x40] sm:$0xff]  ;;  %v4683_v45 = vadd.f32 %v4668_v38, %v4639_v28 }
 0x36f   : > { %v4684_v46 = vadd.f32 %v4672_v39, %v4640_v35  ;;  %v4644_v49 = vld [vmem:[#allocation2 + $0x48] sm:$0xff]  ;;  %v4645_v50 = vld [vmem:[#allocation2 + $0x50] sm:$0xff]  ;;  %v4693_v54 = vmax.f32 %v4681_v42, 0.0  ;;  %v4687_v60 = vadd.f32 %v4660_v33, %v4643_v44 }
 0x370   : > { %v4646_v51 = vld [vmem:[#allocation2 + $0x58] sm:$0xff]  ;;  %v4694_v55 = vmax.f32 %v4682_v43, 0.0  ;;  %v4695_v56 = vmax.f32 %v4683_v45, 0.0  ;;  %v4688_v61 = vadd.f32 %v4664_v34, %v4644_v49  ;;  %v4689_v62 = vadd.f32 %v4668_v38, %v4645_v50 }
 0x371   : > { %v4696_v57 = vmax.f32 %v4684_v46, 0.0  ;;  %4705 = vst [vmem:[%s7293_s3 + $0x10] sm:$0xff] %v4693_v54  ;;  %v4690_v63 = vadd.f32 %v4672_v39, %v4646_v51  ;;  %v4699_v0 = vmax.f32 %v4687_v60, 0.0 }
 0x372   : > { %4706 = vst [vmem:[%s7293_s3 + $0x18] sm:$0xff] %v4694_v55  ;;  %4707 = vst [vmem:[%s7293_s3 + $0x20] sm:$0xff] %v4695_v56  ;;  %v4700_v1 = vmax.f32 %v4688_v61, 0.0  ;;  %v4701_v2 = vmax.f32 %v4689_v62, 0.0 }
 0x373   : > { %4708 = vst [vmem:[%s7293_s3 + $0x28] sm:$0xff] %v4696_v57  ;;  %v4702_v3 = vmax.f32 %v4690_v63, 0.0  ;;  %4711 = vst [vmem:[%s7293_s3 + $0x40] sm:$0xff] %v4699_v0 }
 0x374   : > { %4712 = vst [vmem:[%s7293_s3 + $0x48] sm:$0xff] %v4700_v1  ;;  %4713 = vst [vmem:[%s7293_s3 + $0x50] sm:$0xff] %v4701_v2 }
 0x375   : > { %4714 = vst [vmem:[%s7293_s3 + $0x58] sm:$0xff] %v4702_v3 }
 0x376 PF: > { %s16_s17 = sadd.s32 1, %s6503_s17   ;;  %s7296_s12 = smov %s6487_s13 }
 0x377   : > { %p13_p2 = scmp.ge.s32.totalorder %s16_s17, 10   ;;  %s7297_s13 = smov %s6491_s14 }
 0x378   : > { %s7298_s14 = smov %s6577_s24  ;;  %s7299_s15 = smov %s6499_s16 }
 0x379   : > { %s7300_s16 = smov %s7302_s19  ;;  %15 = sbr.rel (!%p13_p2) target bundleno = 4 (0x4), region = 111 }
 0x380   :  { %4739 = vsyncpa [#allocation5], 1 }
 0x381   :  { %4741 = vsyncpa [#allocation5 + $0x1], 1 }

</bundles_post_ra>
